<compile_context>
chip_gen: v7x
topology: tpu7x:2x2x1
jax: 0.10.0
libtpu: 0.0.40
codegen_flags: <defaults>
</compile_context>

<pallas_src>
import functools

import jax
import jax.numpy as jnp
import numpy as np
from jax.experimental import pallas as pl
from jax.experimental.pallas import tpu as pltpu


# ------------------------------ fused kernel ------------------------------

def _net_kernel(x_ref, w1_ref, b1_ref, w2_ref, b2_ref,
                wfc1_ref, bfc1_ref, wfc2_ref, bfc2_ref, wfc3_ref, bfc3_ref,
                out_ref, *, BI):
    f32, bf16 = jnp.float32, jnp.bfloat16

    x = x_ref[...]                                         # (32*BI, 96) bf16, row = h*BI+n

    # ---- conv1: 5x5, 3->6.  rows oy*BI+n, cols ox*6+co ----
    acc = jnp.dot(x[0:28 * BI, :], w1_ref[0], preferred_element_type=f32)
    for i in range(1, 5):
        acc = acc + jnp.dot(x[i * BI:(i + 28) * BI, :], w1_ref[i],
                            preferred_element_type=f32)
    h1 = jnp.maximum(acc + b1_ref[...], 0.0)               # (28*BI, 168) f32

    # ---- pool1 (2x2/2): horizontal + vertical max; column/row decimation is
    #      folded into conv2's weight packing / slice offsets ----
    hm1 = jnp.maximum(h1[:, 0:162], h1[:, 6:168])          # (28*BI, 162), cols w'*6+c
    v1 = jnp.maximum(hm1[0:27 * BI, :],
                     hm1[BI:28 * BI, :]).astype(bf16)      # (27*BI, 162), rows k*BI+n

    # ---- conv2: 5x5, 6->16 over every vertical offset k0 in 0..18 (valid pool
    #      rows are the even k0); keeps all slices contiguous & aligned ----
    acc = jnp.dot(v1[0:19 * BI, :], w2_ref[0], preferred_element_type=f32)
    for i in range(1, 5):
        acc = acc + jnp.dot(v1[2 * i * BI:(2 * i + 19) * BI, :], w2_ref[i],
                            preferred_element_type=f32)
    h2 = jnp.maximum(acc + b2_ref[...], 0.0)               # (19*BI, 160), cols ox2*16+co

    # ---- pool2 ----
    hm2 = jnp.maximum(h2[:, 0:144], h2[:, 16:160])         # (19*BI, 144), cols w''*16+c
    v2 = jnp.maximum(hm2[0:17 * BI, :],
                     hm2[2 * BI:19 * BI, :]).astype(bf16)  # (17*BI, 144)

    # ---- fc1: 400 -> 120 (valid pool2 rows live at offsets 4*h*BI; torch NCHW
    #      flatten order + column decimation are folded into wfc1 packing) ----
    a = jnp.dot(v2[0:BI, :], wfc1_ref[0], preferred_element_type=f32)
    for h in range(1, 5):
        a = a + jnp.dot(v2[4 * h * BI:(4 * h + 1) * BI, :], wfc1_ref[h],
                        preferred_element_type=f32)
    a = jnp.maximum(a + bfc1_ref[...], 0.0).astype(bf16)   # (BI, 120)

    # ---- fc2: 120 -> 84 ----
    a = jnp.maximum(jnp.dot(a, wfc2_ref[...], preferred_element_type=f32)
                    + bfc2_ref[...], 0.0).astype(bf16)     # (BI, 84)

    # ---- fc3: 84 -> 10 ----
    out_ref[...] = (jnp.dot(a, wfc3_ref[...], preferred_element_type=f32)
                    + bfc3_ref[...])                       # (BI, 10) f32


# --------------------------- one-time weight packing ---------------------------

def pack_params(p):
    """Repack PyTorch-layout parameters into the kernel's layouts (done once)."""
    f32 = np.float32
    c1 = np.asarray(p["conv1_w"], f32); c1b = np.asarray(p["conv1_b"], f32)
    c2 = np.asarray(p["conv2_w"], f32); c2b = np.asarray(p["conv2_b"], f32)
    f1 = np.asarray(p["fc1_w"], f32);   f1b = np.asarray(p["fc1_b"], f32)
    f2 = np.asarray(p["fc2_w"], f32);   f2b = np.asarray(p["fc2_b"], f32)
    f3 = np.asarray(p["fc3_w"], f32);   f3b = np.asarray(p["fc3_b"], f32)

    # conv1 banded taps: w1[i, 3*win + c, 6*ox + co] = c1[co, c, i, win-ox]
    w1 = np.zeros((5, 96, 168), f32)
    for i in range(5):
        for j in range(5):
            tap = c1[:, :, i, j].T                         # (3, 6) = (c, co)
            for ox in range(28):
                win = ox + j
                w1[i, 3 * win:3 * win + 3, 6 * ox:6 * ox + 6] = tap

    # conv2 banded taps against the *un-column-decimated* pool1 layout
    # (pool1 spatial col wp lives at column 12*wp + c of v1):
    # w2[i, 12*(ox+j) + c, 16*ox + co] = c2[co, c, i, j]
    w2 = np.zeros((5, 162, 160), f32)
    for i in range(5):
        for j in range(5):
            tap = c2[:, :, i, j].T                         # (6, 16)
            for ox in range(10):
                wp = ox + j
                w2[i, 12 * wp:12 * wp + 6, 16 * ox:16 * ox + 16] = tap

    # fc1: fold torch NCHW flatten (k = c*25 + h*5 + w) and pool2 column
    # positions (spatial w lives at column 32*w + c of v2) into the packing.
    wf1 = np.zeros((5, 144, 120), f32)
    f1r = f1.reshape(120, 16, 5, 5)                        # (m, c, h, w)
    for h in range(5):
        for w in range(5):
            for c in range(16):
                wf1[h, 32 * w + c, :] = f1r[:, c, h, w]

    bf16 = jnp.bfloat16
    return {
        "w1":   jnp.asarray(w1, bf16),                                   # (5, 96, 168)
        "b1":   jnp.asarray(np.tile(c1b, 28).reshape(1, 168), jnp.float32),
        "w2":   jnp.asarray(w2, bf16),                                   # (5, 162, 160)
        "b2":   jnp.asarray(np.tile(c2b, 10).reshape(1, 160), jnp.float32),
        "wfc1": jnp.asarray(wf1, bf16),                                  # (5, 144, 120)
        "bfc1": jnp.asarray(f1b.reshape(1, 120), jnp.float32),
        "wfc2": jnp.asarray(f2.T, bf16),                                 # (120, 84)
        "bfc2": jnp.asarray(f2b.reshape(1, 84), jnp.float32),
        "wfc3": jnp.asarray(f3.T, bf16),                                 # (84, 10)
        "bfc3": jnp.asarray(f3b.reshape(1, 10), jnp.float32),
    }


# ------------------------------- forward pass -------------------------------

_CONST_ORDER = ["w1", "b1", "w2", "b2",
                "wfc1", "bfc1", "wfc2", "bfc2", "wfc3", "bfc3"]


def net_forward(packed, x_nchw, *, block_images=8):
    BI = block_images
    assert BI % 8 == 0, "block_images must be a multiple of 8 (sublane tile)"
    B = x_nchw.shape[0]
    G = -(-B // BI)
    Bp = G * BI

    x = x_nchw
    if Bp != B:
        x = jnp.pad(x, ((0, Bp - B), (0, 0), (0, 0), (0, 0)))

    # (Bp,3,32,32)[n,c,h,w] -> (G,h,n_local,w,c) -> (G*32*BI, 96) bf16,
    # i.e. per grid block: row = h*BI + n_local, col = w*3 + c.
    x2 = (x.reshape(G, BI, 3, 32, 32)
            .transpose(0, 3, 1, 4, 2)
            .reshape(G * 32 * BI, 96)
            .astype(jnp.bfloat16))

    consts = [packed[k] for k in _CONST_ORDER]

    def resident(a):
        nz = (0,) * a.ndim
        return pl.BlockSpec(a.shape, lambda g, _z=nz: _z)   # same block every step

    kernel = functools.partial(_net_kernel, BI=BI)
    out = pl.pallas_call(
        kernel,
        out_shape=jax.ShapeDtypeStruct((Bp, 10), jnp.float32),
        grid=(G,),
        in_specs=[pl.BlockSpec((32 * BI, 96), lambda g: (g, 0))]
                 + [resident(a) for a in consts],
        out_specs=pl.BlockSpec((BI, 10), lambda g: (g, 0)),
        compiler_params=pltpu.CompilerParams(
            dimension_semantics=("parallel",)),
    )(x2, *consts)
    return out[:B]


# ----------------------------- pure-JAX reference -----------------------------

def _reference_forward(p, x):
    dn = ("NCHW", "OIHW", "NCHW")

    def conv(x, w, b):
        y = jax.lax.conv_general_dilated(x, w, (1, 1), "VALID",
                                         dimension_numbers=dn)
        return jax.nn.relu(y + b[None, :, None, None])

    def pool(x):
        b, c, h, w = x.shape
        return x.reshape(b, c, h // 2, 2, w // 2, 2).max(axis=(3, 5))

    x = pool(conv(x, p["conv1_w"], p["conv1_b"]))
    x = pool(conv(x, p["conv2_w"], p["conv2_b"]))
    x = x.reshape(x.shape[0], -1)                      # NCHW flatten, like torch .view
    x = jax.nn.relu(x @ p["fc1_w"].T + p["fc1_b"])
    x = jax.nn.relu(x @ p["fc2_w"].T + p["fc2_b"])
    return x @ p["fc3_w"].T + p["fc3_b"]


# ------------------------------ init & driver ------------------------------

def init_params(key):
    """Deterministic init matching the PyTorch module's parameter shapes."""
    ks = jax.random.split(key, 10)

    def uni(k, shape, fan_in):
        bound = 1.0 / (fan_in ** 0.5)
        return jax.random.uniform(k, shape, jnp.float32, -bound, bound)

    return {
        "conv1_w": uni(ks[0], (6, 3, 5, 5), 3 * 5 * 5),
        "conv1_b": uni(ks[1], (6,), 3 * 5 * 5),
        "conv2_w": uni(ks[2], (16, 6, 5, 5), 6 * 5 * 5),
        "conv2_b": uni(ks[3], (16,), 6 * 5 * 5),
        "fc1_w": uni(ks[4], (120, 16 * 5 * 5), 16 * 5 * 5),
        "fc1_b": uni(ks[5], (120,), 16 * 5 * 5),
        "fc2_w": uni(ks[6], (84, 120), 120),
        "fc2_b": uni(ks[7], (84,), 120),
        "fc3_w": uni(ks[8], (10, 84), 84),
        "fc3_b": uni(ks[9], (10,), 84),
    }


if __name__ == "__main__":
    key = jax.random.PRNGKey(0)
    pkey, xkey = jax.random.split(key)
    params = init_params(pkey)
    packed = pack_params(params)                      # one-time weight packing

    # fc1 (16*5*5 inputs) implies 3x32x32 images; 16 images -> 2 grid steps of 8.
    x = jax.random.normal(xkey, (16, 3, 32, 32), jnp.float32)

    out = jax.block_until_ready(jax.jit(net_forward)(packed, x))
    assert out.shape == (16, 10) and out.dtype == jnp.float32

    ref = _reference_forward(params, x)
    np.testing.assert_allclose(np.asarray(out), np.asarray(ref),
                               rtol=0.05, atol=0.02)
    print("KERNEL_OK")
</pallas_src>

<mosaic_0001>
module attributes {stable_mosaic.version = 11 : i64} {
  func.func @_net_kernel(%arg0: i32, %arg1: memref<256x96xbf16, #tpu.memory_space<vmem>>, %arg2: memref<5x96x168xbf16, #tpu.memory_space<vmem>>, %arg3: memref<1x168xf32, #tpu.memory_space<vmem>>, %arg4: memref<5x162x160xbf16, #tpu.memory_space<vmem>>, %arg5: memref<1x160xf32, #tpu.memory_space<vmem>>, %arg6: memref<5x144x120xbf16, #tpu.memory_space<vmem>>, %arg7: memref<1x120xf32, #tpu.memory_space<vmem>>, %arg8: memref<120x84xbf16, #tpu.memory_space<vmem>>, %arg9: memref<1x84xf32, #tpu.memory_space<vmem>>, %arg10: memref<84x10xbf16, #tpu.memory_space<vmem>>, %arg11: memref<1x10xf32, #tpu.memory_space<vmem>>, %arg12: memref<8x10xf32, #tpu.memory_space<vmem>>) attributes {dimension_semantics = [#tpu.dimension_semantics<parallel>], iteration_bounds = array<i64: 2>, scalar_prefetch = 0 : i64, scratch_operands = 0 : i64, tpu.core_type = #tpu.core_type<tc>, window_params = [{transform_indices = @transform_0, window_bounds = array<i64: 256, 96>}, {pipeline_mode = #tpu.pipeline_mode<synchronous>, transform_indices = @transform_1, window_bounds = array<i64: 5, 96, 168>}, {pipeline_mode = #tpu.pipeline_mode<synchronous>, transform_indices = @transform_2, window_bounds = array<i64: 1, 168>}, {pipeline_mode = #tpu.pipeline_mode<synchronous>, transform_indices = @transform_3, window_bounds = array<i64: 5, 162, 160>}, {pipeline_mode = #tpu.pipeline_mode<synchronous>, transform_indices = @transform_4, window_bounds = array<i64: 1, 160>}, {pipeline_mode = #tpu.pipeline_mode<synchronous>, transform_indices = @transform_5, window_bounds = array<i64: 5, 144, 120>}, {pipeline_mode = #tpu.pipeline_mode<synchronous>, transform_indices = @transform_6, window_bounds = array<i64: 1, 120>}, {pipeline_mode = #tpu.pipeline_mode<synchronous>, transform_indices = @transform_7, window_bounds = array<i64: 120, 84>}, {pipeline_mode = #tpu.pipeline_mode<synchronous>, transform_indices = @transform_8, window_bounds = array<i64: 1, 84>}, {pipeline_mode = #tpu.pipeline_mode<synchronous>, transform_indices = @transform_9, window_bounds = array<i64: 84, 10>}, {pipeline_mode = #tpu.pipeline_mode<synchronous>, transform_indices = @transform_10, window_bounds = array<i64: 1, 10>}, {transform_indices = @transform_11, window_bounds = array<i64: 8, 10>}]} {
    %c0 = arith.constant 0 : index
    %c0_0 = arith.constant 0 : index
    %0 = vector.load %arg1[%c0, %c0_0] : memref<256x96xbf16, #tpu.memory_space<vmem>>, vector<256x96xbf16>
    %1 = vector.extract_strided_slice %0 {offsets = [0, 0], sizes = [224, 96], strides = [1, 1]} : vector<256x96xbf16> to vector<224x96xbf16>
    %c0_1 = arith.constant 0 : index
    %c0_2 = arith.constant 0 : index
    %c0_3 = arith.constant 0 : index
    %2 = vector.load %arg2[%c0_1, %c0_2, %c0_3] : memref<5x96x168xbf16, #tpu.memory_space<vmem>>, vector<1x96x168xbf16>
    %3 = vector.shape_cast %2 : vector<1x96x168xbf16> to vector<96x168xbf16>
    %cst = arith.constant dense<0.000000e+00> : vector<224x168xf32>
    %4 = tpu.matmul %1, %3, %cst {dimension_numbers = #tpu.dot_dimension_numbers<[1], [0], [0], [1], [0, 0, 1, 1], [], []>} : vector<224x96xbf16>, vector<96x168xbf16>, vector<224x168xf32> -> vector<224x168xf32>
    %5 = vector.extract_strided_slice %0 {offsets = [8, 0], sizes = [224, 96], strides = [1, 1]} : vector<256x96xbf16> to vector<224x96xbf16>
    %c1 = arith.constant 1 : index
    %c0_4 = arith.constant 0 : index
    %c0_5 = arith.constant 0 : index
    %6 = vector.load %arg2[%c1, %c0_4, %c0_5] : memref<5x96x168xbf16, #tpu.memory_space<vmem>>, vector<1x96x168xbf16>
    %7 = vector.shape_cast %6 : vector<1x96x168xbf16> to vector<96x168xbf16>
    %cst_6 = arith.constant dense<0.000000e+00> : vector<224x168xf32>
    %8 = tpu.matmul %5, %7, %cst_6 {dimension_numbers = #tpu.dot_dimension_numbers<[1], [0], [0], [1], [0, 0, 1, 1], [], []>} : vector<224x96xbf16>, vector<96x168xbf16>, vector<224x168xf32> -> vector<224x168xf32>
    %9 = arith.addf %4, %8 : vector<224x168xf32>
    %10 = vector.extract_strided_slice %0 {offsets = [16, 0], sizes = [224, 96], strides = [1, 1]} : vector<256x96xbf16> to vector<224x96xbf16>
    %c2 = arith.constant 2 : index
    %c0_7 = arith.constant 0 : index
    %c0_8 = arith.constant 0 : index
    %11 = vector.load %arg2[%c2, %c0_7, %c0_8] : memref<5x96x168xbf16, #tpu.memory_space<vmem>>, vector<1x96x168xbf16>
    %12 = vector.shape_cast %11 : vector<1x96x168xbf16> to vector<96x168xbf16>
    %cst_9 = arith.constant dense<0.000000e+00> : vector<224x168xf32>
    %13 = tpu.matmul %10, %12, %cst_9 {dimension_numbers = #tpu.dot_dimension_numbers<[1], [0], [0], [1], [0, 0, 1, 1], [], []>} : vector<224x96xbf16>, vector<96x168xbf16>, vector<224x168xf32> -> vector<224x168xf32>
    %14 = arith.addf %9, %13 : vector<224x168xf32>
    %15 = vector.extract_strided_slice %0 {offsets = [24, 0], sizes = [224, 96], strides = [1, 1]} : vector<256x96xbf16> to vector<224x96xbf16>
    %c3 = arith.constant 3 : index
    %c0_10 = arith.constant 0 : index
    %c0_11 = arith.constant 0 : index
    %16 = vector.load %arg2[%c3, %c0_10, %c0_11] : memref<5x96x168xbf16, #tpu.memory_space<vmem>>, vector<1x96x168xbf16>
    %17 = vector.shape_cast %16 : vector<1x96x168xbf16> to vector<96x168xbf16>
    %cst_12 = arith.constant dense<0.000000e+00> : vector<224x168xf32>
    %18 = tpu.matmul %15, %17, %cst_12 {dimension_numbers = #tpu.dot_dimension_numbers<[1], [0], [0], [1], [0, 0, 1, 1], [], []>} : vector<224x96xbf16>, vector<96x168xbf16>, vector<224x168xf32> -> vector<224x168xf32>
    %19 = arith.addf %14, %18 : vector<224x168xf32>
    %20 = vector.extract_strided_slice %0 {offsets = [32, 0], sizes = [224, 96], strides = [1, 1]} : vector<256x96xbf16> to vector<224x96xbf16>
    %c4 = arith.constant 4 : index
    %c0_13 = arith.constant 0 : index
    %c0_14 = arith.constant 0 : index
    %21 = vector.load %arg2[%c4, %c0_13, %c0_14] : memref<5x96x168xbf16, #tpu.memory_space<vmem>>, vector<1x96x168xbf16>
    %22 = vector.shape_cast %21 : vector<1x96x168xbf16> to vector<96x168xbf16>
    %cst_15 = arith.constant dense<0.000000e+00> : vector<224x168xf32>
    %23 = tpu.matmul %20, %22, %cst_15 {dimension_numbers = #tpu.dot_dimension_numbers<[1], [0], [0], [1], [0, 0, 1, 1], [], []>} : vector<224x96xbf16>, vector<96x168xbf16>, vector<224x168xf32> -> vector<224x168xf32>
    %24 = arith.addf %19, %23 : vector<224x168xf32>
    %c0_16 = arith.constant 0 : index
    %c0_17 = arith.constant 0 : index
    %25 = vector.load %arg3[%c0_16, %c0_17] : memref<1x168xf32, #tpu.memory_space<vmem>>, vector<1x168xf32>
    %26 = vector.broadcast %25 : vector<1x168xf32> to vector<224x168xf32>
    %27 = arith.addf %24, %26 : vector<224x168xf32>
    %cst_18 = arith.constant 0.000000e+00 : f32
    %28 = vector.broadcast %cst_18 : f32 to vector<224x168xf32>
    %29 = arith.maximumf %27, %28 : vector<224x168xf32>
    %30 = vector.extract_strided_slice %29 {offsets = [0, 0], sizes = [224, 162], strides = [1, 1]} : vector<224x168xf32> to vector<224x162xf32>
    %31 = vector.extract_strided_slice %29 {offsets = [0, 6], sizes = [224, 162], strides = [1, 1]} : vector<224x168xf32> to vector<224x162xf32>
    %32 = arith.maximumf %30, %31 : vector<224x162xf32>
    %33 = vector.extract_strided_slice %32 {offsets = [0, 0], sizes = [216, 162], strides = [1, 1]} : vector<224x162xf32> to vector<216x162xf32>
    %34 = vector.extract_strided_slice %32 {offsets = [8, 0], sizes = [216, 162], strides = [1, 1]} : vector<224x162xf32> to vector<216x162xf32>
    %35 = arith.maximumf %33, %34 : vector<216x162xf32>
    %36 = arith.truncf %35 : vector<216x162xf32> to vector<216x162xbf16>
    %37 = vector.extract_strided_slice %36 {offsets = [0, 0], sizes = [152, 162], strides = [1, 1]} : vector<216x162xbf16> to vector<152x162xbf16>
    %c0_19 = arith.constant 0 : index
    %c0_20 = arith.constant 0 : index
    %c0_21 = arith.constant 0 : index
    %38 = vector.load %arg4[%c0_19, %c0_20, %c0_21] : memref<5x162x160xbf16, #tpu.memory_space<vmem>>, vector<1x162x160xbf16>
    %39 = vector.shape_cast %38 : vector<1x162x160xbf16> to vector<162x160xbf16>
    %cst_22 = arith.constant dense<0.000000e+00> : vector<152x160xf32>
    %40 = tpu.matmul %37, %39, %cst_22 {dimension_numbers = #tpu.dot_dimension_numbers<[1], [0], [0], [1], [0, 0, 1, 1], [], []>} : vector<152x162xbf16>, vector<162x160xbf16>, vector<152x160xf32> -> vector<152x160xf32>
    %41 = vector.extract_strided_slice %36 {offsets = [16, 0], sizes = [152, 162], strides = [1, 1]} : vector<216x162xbf16> to vector<152x162xbf16>
    %c1_23 = arith.constant 1 : index
    %c0_24 = arith.constant 0 : index
    %c0_25 = arith.constant 0 : index
    %42 = vector.load %arg4[%c1_23, %c0_24, %c0_25] : memref<5x162x160xbf16, #tpu.memory_space<vmem>>, vector<1x162x160xbf16>
    %43 = vector.shape_cast %42 : vector<1x162x160xbf16> to vector<162x160xbf16>
    %cst_26 = arith.constant dense<0.000000e+00> : vector<152x160xf32>
    %44 = tpu.matmul %41, %43, %cst_26 {dimension_numbers = #tpu.dot_dimension_numbers<[1], [0], [0], [1], [0, 0, 1, 1], [], []>} : vector<152x162xbf16>, vector<162x160xbf16>, vector<152x160xf32> -> vector<152x160xf32>
    %45 = arith.addf %40, %44 : vector<152x160xf32>
    %46 = vector.extract_strided_slice %36 {offsets = [32, 0], sizes = [152, 162], strides = [1, 1]} : vector<216x162xbf16> to vector<152x162xbf16>
    %c2_27 = arith.constant 2 : index
    %c0_28 = arith.constant 0 : index
    %c0_29 = arith.constant 0 : index
    %47 = vector.load %arg4[%c2_27, %c0_28, %c0_29] : memref<5x162x160xbf16, #tpu.memory_space<vmem>>, vector<1x162x160xbf16>
    %48 = vector.shape_cast %47 : vector<1x162x160xbf16> to vector<162x160xbf16>
    %cst_30 = arith.constant dense<0.000000e+00> : vector<152x160xf32>
    %49 = tpu.matmul %46, %48, %cst_30 {dimension_numbers = #tpu.dot_dimension_numbers<[1], [0], [0], [1], [0, 0, 1, 1], [], []>} : vector<152x162xbf16>, vector<162x160xbf16>, vector<152x160xf32> -> vector<152x160xf32>
    %50 = arith.addf %45, %49 : vector<152x160xf32>
    %51 = vector.extract_strided_slice %36 {offsets = [48, 0], sizes = [152, 162], strides = [1, 1]} : vector<216x162xbf16> to vector<152x162xbf16>
    %c3_31 = arith.constant 3 : index
    %c0_32 = arith.constant 0 : index
    %c0_33 = arith.constant 0 : index
    %52 = vector.load %arg4[%c3_31, %c0_32, %c0_33] : memref<5x162x160xbf16, #tpu.memory_space<vmem>>, vector<1x162x160xbf16>
    %53 = vector.shape_cast %52 : vector<1x162x160xbf16> to vector<162x160xbf16>
    %cst_34 = arith.constant dense<0.000000e+00> : vector<152x160xf32>
    %54 = tpu.matmul %51, %53, %cst_34 {dimension_numbers = #tpu.dot_dimension_numbers<[1], [0], [0], [1], [0, 0, 1, 1], [], []>} : vector<152x162xbf16>, vector<162x160xbf16>, vector<152x160xf32> -> vector<152x160xf32>
    %55 = arith.addf %50, %54 : vector<152x160xf32>
    %56 = vector.extract_strided_slice %36 {offsets = [64, 0], sizes = [152, 162], strides = [1, 1]} : vector<216x162xbf16> to vector<152x162xbf16>
    %c4_35 = arith.constant 4 : index
    %c0_36 = arith.constant 0 : index
    %c0_37 = arith.constant 0 : index
    %57 = vector.load %arg4[%c4_35, %c0_36, %c0_37] : memref<5x162x160xbf16, #tpu.memory_space<vmem>>, vector<1x162x160xbf16>
    %58 = vector.shape_cast %57 : vector<1x162x160xbf16> to vector<162x160xbf16>
    %cst_38 = arith.constant dense<0.000000e+00> : vector<152x160xf32>
    %59 = tpu.matmul %56, %58, %cst_38 {dimension_numbers = #tpu.dot_dimension_numbers<[1], [0], [0], [1], [0, 0, 1, 1], [], []>} : vector<152x162xbf16>, vector<162x160xbf16>, vector<152x160xf32> -> vector<152x160xf32>
    %60 = arith.addf %55, %59 : vector<152x160xf32>
    %c0_39 = arith.constant 0 : index
    %c0_40 = arith.constant 0 : index
    %61 = vector.load %arg5[%c0_39, %c0_40] : memref<1x160xf32, #tpu.memory_space<vmem>>, vector<1x160xf32>
    %62 = vector.broadcast %61 : vector<1x160xf32> to vector<152x160xf32>
    %63 = arith.addf %60, %62 : vector<152x160xf32>
    %cst_41 = arith.constant 0.000000e+00 : f32
    %64 = vector.broadcast %cst_41 : f32 to vector<152x160xf32>
    %65 = arith.maximumf %63, %64 : vector<152x160xf32>
    %66 = vector.extract_strided_slice %65 {offsets = [0, 0], sizes = [152, 144], strides = [1, 1]} : vector<152x160xf32> to vector<152x144xf32>
    %67 = vector.extract_strided_slice %65 {offsets = [0, 16], sizes = [152, 144], strides = [1, 1]} : vector<152x160xf32> to vector<152x144xf32>
    %68 = arith.maximumf %66, %67 : vector<152x144xf32>
    %69 = vector.extract_strided_slice %68 {offsets = [0, 0], sizes = [136, 144], strides = [1, 1]} : vector<152x144xf32> to vector<136x144xf32>
    %70 = vector.extract_strided_slice %68 {offsets = [16, 0], sizes = [136, 144], strides = [1, 1]} : vector<152x144xf32> to vector<136x144xf32>
    %71 = arith.maximumf %69, %70 : vector<136x144xf32>
    %72 = arith.truncf %71 : vector<136x144xf32> to vector<136x144xbf16>
    %73 = vector.extract_strided_slice %72 {offsets = [0, 0], sizes = [8, 144], strides = [1, 1]} : vector<136x144xbf16> to vector<8x144xbf16>
    %c0_42 = arith.constant 0 : index
    %c0_43 = arith.constant 0 : index
    %c0_44 = arith.constant 0 : index
    %74 = vector.load %arg6[%c0_42, %c0_43, %c0_44] : memref<5x144x120xbf16, #tpu.memory_space<vmem>>, vector<1x144x120xbf16>
    %75 = vector.shape_cast %74 : vector<1x144x120xbf16> to vector<144x120xbf16>
    %cst_45 = arith.constant dense<0.000000e+00> : vector<8x120xf32>
    %76 = tpu.matmul %73, %75, %cst_45 {dimension_numbers = #tpu.dot_dimension_numbers<[1], [0], [0], [1], [0, 0, 1, 1], [], []>} : vector<8x144xbf16>, vector<144x120xbf16>, vector<8x120xf32> -> vector<8x120xf32>
    %77 = vector.extract_strided_slice %72 {offsets = [32, 0], sizes = [8, 144], strides = [1, 1]} : vector<136x144xbf16> to vector<8x144xbf16>
    %c1_46 = arith.constant 1 : index
    %c0_47 = arith.constant 0 : index
    %c0_48 = arith.constant 0 : index
    %78 = vector.load %arg6[%c1_46, %c0_47, %c0_48] : memref<5x144x120xbf16, #tpu.memory_space<vmem>>, vector<1x144x120xbf16>
    %79 = vector.shape_cast %78 : vector<1x144x120xbf16> to vector<144x120xbf16>
    %cst_49 = arith.constant dense<0.000000e+00> : vector<8x120xf32>
    %80 = tpu.matmul %77, %79, %cst_49 {dimension_numbers = #tpu.dot_dimension_numbers<[1], [0], [0], [1], [0, 0, 1, 1], [], []>} : vector<8x144xbf16>, vector<144x120xbf16>, vector<8x120xf32> -> vector<8x120xf32>
    %81 = arith.addf %76, %80 : vector<8x120xf32>
    %82 = vector.extract_strided_slice %72 {offsets = [64, 0], sizes = [8, 144], strides = [1, 1]} : vector<136x144xbf16> to vector<8x144xbf16>
    %c2_50 = arith.constant 2 : index
    %c0_51 = arith.constant 0 : index
    %c0_52 = arith.constant 0 : index
    %83 = vector.load %arg6[%c2_50, %c0_51, %c0_52] : memref<5x144x120xbf16, #tpu.memory_space<vmem>>, vector<1x144x120xbf16>
    %84 = vector.shape_cast %83 : vector<1x144x120xbf16> to vector<144x120xbf16>
    %cst_53 = arith.constant dense<0.000000e+00> : vector<8x120xf32>
    %85 = tpu.matmul %82, %84, %cst_53 {dimension_numbers = #tpu.dot_dimension_numbers<[1], [0], [0], [1], [0, 0, 1, 1], [], []>} : vector<8x144xbf16>, vector<144x120xbf16>, vector<8x120xf32> -> vector<8x120xf32>
    %86 = arith.addf %81, %85 : vector<8x120xf32>
    %87 = vector.extract_strided_slice %72 {offsets = [96, 0], sizes = [8, 144], strides = [1, 1]} : vector<136x144xbf16> to vector<8x144xbf16>
    %c3_54 = arith.constant 3 : index
    %c0_55 = arith.constant 0 : index
    %c0_56 = arith.constant 0 : index
    %88 = vector.load %arg6[%c3_54, %c0_55, %c0_56] : memref<5x144x120xbf16, #tpu.memory_space<vmem>>, vector<1x144x120xbf16>
    %89 = vector.shape_cast %88 : vector<1x144x120xbf16> to vector<144x120xbf16>
    %cst_57 = arith.constant dense<0.000000e+00> : vector<8x120xf32>
    %90 = tpu.matmul %87, %89, %cst_57 {dimension_numbers = #tpu.dot_dimension_numbers<[1], [0], [0], [1], [0, 0, 1, 1], [], []>} : vector<8x144xbf16>, vector<144x120xbf16>, vector<8x120xf32> -> vector<8x120xf32>
    %91 = arith.addf %86, %90 : vector<8x120xf32>
    %92 = vector.extract_strided_slice %72 {offsets = [128, 0], sizes = [8, 144], strides = [1, 1]} : vector<136x144xbf16> to vector<8x144xbf16>
    %c4_58 = arith.constant 4 : index
    %c0_59 = arith.constant 0 : index
    %c0_60 = arith.constant 0 : index
    %93 = vector.load %arg6[%c4_58, %c0_59, %c0_60] : memref<5x144x120xbf16, #tpu.memory_space<vmem>>, vector<1x144x120xbf16>
    %94 = vector.shape_cast %93 : vector<1x144x120xbf16> to vector<144x120xbf16>
    %cst_61 = arith.constant dense<0.000000e+00> : vector<8x120xf32>
    %95 = tpu.matmul %92, %94, %cst_61 {dimension_numbers = #tpu.dot_dimension_numbers<[1], [0], [0], [1], [0, 0, 1, 1], [], []>} : vector<8x144xbf16>, vector<144x120xbf16>, vector<8x120xf32> -> vector<8x120xf32>
    %96 = arith.addf %91, %95 : vector<8x120xf32>
    %c0_62 = arith.constant 0 : index
    %c0_63 = arith.constant 0 : index
    %97 = vector.load %arg7[%c0_62, %c0_63] : memref<1x120xf32, #tpu.memory_space<vmem>>, vector<1x120xf32>
    %98 = vector.broadcast %97 : vector<1x120xf32> to vector<8x120xf32>
    %99 = arith.addf %96, %98 : vector<8x120xf32>
    %cst_64 = arith.constant 0.000000e+00 : f32
    %100 = vector.broadcast %cst_64 : f32 to vector<8x120xf32>
    %101 = arith.maximumf %99, %100 : vector<8x120xf32>
    %102 = arith.truncf %101 : vector<8x120xf32> to vector<8x120xbf16>
    %c0_65 = arith.constant 0 : index
    %c0_66 = arith.constant 0 : index
    %103 = vector.load %arg8[%c0_65, %c0_66] : memref<120x84xbf16, #tpu.memory_space<vmem>>, vector<120x84xbf16>
    %cst_67 = arith.constant dense<0.000000e+00> : vector<8x84xf32>
    %104 = tpu.matmul %102, %103, %cst_67 {dimension_numbers = #tpu.dot_dimension_numbers<[1], [0], [0], [1], [0, 0, 1, 1], [], []>} : vector<8x120xbf16>, vector<120x84xbf16>, vector<8x84xf32> -> vector<8x84xf32>
    %c0_68 = arith.constant 0 : index
    %c0_69 = arith.constant 0 : index
    %105 = vector.load %arg9[%c0_68, %c0_69] : memref<1x84xf32, #tpu.memory_space<vmem>>, vector<1x84xf32>
    %106 = vector.broadcast %105 : vector<1x84xf32> to vector<8x84xf32>
    %107 = arith.addf %104, %106 : vector<8x84xf32>
    %cst_70 = arith.constant 0.000000e+00 : f32
    %108 = vector.broadcast %cst_70 : f32 to vector<8x84xf32>
    %109 = arith.maximumf %107, %108 : vector<8x84xf32>
    %110 = arith.truncf %109 : vector<8x84xf32> to vector<8x84xbf16>
    %c0_71 = arith.constant 0 : index
    %c0_72 = arith.constant 0 : index
    %111 = vector.load %arg10[%c0_71, %c0_72] : memref<84x10xbf16, #tpu.memory_space<vmem>>, vector<84x10xbf16>
    %cst_73 = arith.constant dense<0.000000e+00> : vector<8x10xf32>
    %112 = tpu.matmul %110, %111, %cst_73 {dimension_numbers = #tpu.dot_dimension_numbers<[1], [0], [0], [1], [0, 0, 1, 1], [], []>} : vector<8x84xbf16>, vector<84x10xbf16>, vector<8x10xf32> -> vector<8x10xf32>
    %c0_74 = arith.constant 0 : index
    %c0_75 = arith.constant 0 : index
    %113 = vector.load %arg11[%c0_74, %c0_75] : memref<1x10xf32, #tpu.memory_space<vmem>>, vector<1x10xf32>
    %114 = vector.broadcast %113 : vector<1x10xf32> to vector<8x10xf32>
    %115 = arith.addf %112, %114 : vector<8x10xf32>
    %c0_76 = arith.constant 0 : index
    %c0_77 = arith.constant 0 : index
    %116 = vector.load %arg12[%c0_76, %c0_77] : memref<8x10xf32, #tpu.memory_space<vmem>>, vector<8x10xf32>
    tpu.vector_store %arg12[%c0_76, %c0_77], %115 {strides = array<i32>} : memref<8x10xf32, #tpu.memory_space<vmem>>, vector<8x10xf32>,
    return
  }
  func.func @transform_0(%arg0: i32) -> (i32, i32) {
    %c0_i32 = arith.constant 0 : i32
    %c0_i32_0 = arith.constant 0 : i32
    return %arg0, %c0_i32 : i32, i32
  }
  func.func @transform_1(%arg0: i32) -> (i32, i32, i32) {
    %c0_i32 = arith.constant 0 : i32
    %c0_i32_0 = arith.constant 0 : i32
    %c0_i32_1 = arith.constant 0 : i32
    %c0_i32_2 = arith.constant 0 : i32
    return %c0_i32, %c0_i32_0, %c0_i32_1 : i32, i32, i32
  }
  func.func @transform_2(%arg0: i32) -> (i32, i32) {
    %c0_i32 = arith.constant 0 : i32
    %c0_i32_0 = arith.constant 0 : i32
    %c0_i32_1 = arith.constant 0 : i32
    return %c0_i32, %c0_i32_0 : i32, i32
  }
  func.func @transform_3(%arg0: i32) -> (i32, i32, i32) {
    %c0_i32 = arith.constant 0 : i32
    %c0_i32_0 = arith.constant 0 : i32
    %c0_i32_1 = arith.constant 0 : i32
    %c0_i32_2 = arith.constant 0 : i32
    return %c0_i32, %c0_i32_0, %c0_i32_1 : i32, i32, i32
  }
  func.func @transform_4(%arg0: i32) -> (i32, i32) {
    %c0_i32 = arith.constant 0 : i32
    %c0_i32_0 = arith.constant 0 : i32
    %c0_i32_1 = arith.constant 0 : i32
    return %c0_i32, %c0_i32_0 : i32, i32
  }
  func.func @transform_5(%arg0: i32) -> (i32, i32, i32) {
    %c0_i32 = arith.constant 0 : i32
    %c0_i32_0 = arith.constant 0 : i32
    %c0_i32_1 = arith.constant 0 : i32
    %c0_i32_2 = arith.constant 0 : i32
    return %c0_i32, %c0_i32_0, %c0_i32_1 : i32, i32, i32
  }
  func.func @transform_6(%arg0: i32) -> (i32, i32) {
    %c0_i32 = arith.constant 0 : i32
    %c0_i32_0 = arith.constant 0 : i32
    %c0_i32_1 = arith.constant 0 : i32
    return %c0_i32, %c0_i32_0 : i32, i32
  }
  func.func @transform_7(%arg0: i32) -> (i32, i32) {
    %c0_i32 = arith.constant 0 : i32
    %c0_i32_0 = arith.constant 0 : i32
    %c0_i32_1 = arith.constant 0 : i32
    return %c0_i32, %c0_i32_0 : i32, i32
  }
  func.func @transform_8(%arg0: i32) -> (i32, i32) {
    %c0_i32 = arith.constant 0 : i32
    %c0_i32_0 = arith.constant 0 : i32
    %c0_i32_1 = arith.constant 0 : i32
    return %c0_i32, %c0_i32_0 : i32, i32
  }
  func.func @transform_9(%arg0: i32) -> (i32, i32) {
    %c0_i32 = arith.constant 0 : i32
    %c0_i32_0 = arith.constant 0 : i32
    %c0_i32_1 = arith.constant 0 : i32
    return %c0_i32, %c0_i32_0 : i32, i32
  }
  func.func @transform_10(%arg0: i32) -> (i32, i32) {
    %c0_i32 = arith.constant 0 : i32
    %c0_i32_0 = arith.constant 0 : i32
    %c0_i32_1 = arith.constant 0 : i32
    return %c0_i32, %c0_i32_0 : i32, i32
  }
  func.func @transform_11(%arg0: i32) -> (i32, i32) {
    %c0_i32 = arith.constant 0 : i32
    %c0_i32_0 = arith.constant 0 : i32
    return %arg0, %c0_i32 : i32, i32
  }
}

</mosaic_0001>

<bundles_post_ra>
// kernel: net_forward.1
= control target key start
LH: loop header
LB: loop body
LE: loop exit
PB: predicated region body
PF: predicated region fallthrough
CT: control target
= control target key end

     0   :  { %16 = vsyncpa [#allocation3], 0  ;;  %s9288_s0 = inlined_call_operand.vmem [shape: bf16[512,96], index: 0, kind: input, shape index: {}]   ;;  %s9289_s1 = inlined_call_operand.vmem [shape: bf16[5,96,168], index: 1, kind: input, shape index: {}]   ;;  %s9290_s2 = inlined_call_operand.vmem [shape: f32[1,168], index: 2, kind: input, shape index: {}]   ;;  %s9291_s3 = inlined_call_operand.vmem [shape: bf16[5,162,160], index: 3, kind: input, shape index: {}]   ;;  %s9292_s4 = inlined_call_operand.vmem [shape: f32[1,160], index: 4, kind: input, shape index: {}]   ;;  %s9293_s5 = inlined_call_operand.vmem [shape: bf16[5,144,120], index: 5, kind: input, shape index: {}]   ;;  %s9294_s6 = inlined_call_operand.vmem [shape: f32[1,120], index: 6, kind: input, shape index: {}]   ;;  %s9295_s7 = inlined_call_operand.vmem [shape: bf16[120,84], index: 7, kind: input, shape index: {}]   ;;  %s9296_s8 = inlined_call_operand.vmem [shape: f32[1,84], index: 8, kind: input, shape index: {}]   ;;  %s9297_s9 = inlined_call_operand.vmem [shape: bf16[84,10], index: 9, kind: input, shape index: {}]   ;;  %s9298_s10 = inlined_call_operand.vmem [shape: f32[1,10], index: 10, kind: input, shape index: {}]   ;;  %s9299_s11 = inlined_call_operand.hbm [shape: f32[16,10], index: 11, kind: output, shape index: {}]  }
   0x1   :  { %18 = vsyncpa [#allocation3 + $0x1], 0  ;;  %s6935_s17 = smov 0   ;;  %s6937_s18 = smov 0  }
   0x2   :  { %s6939_s19 = smov 0   ;;  %s6941_s20 = smov 0  }
   0x3 LB: > { %s6956_s21 = sadd.s32 4294967295, %s6867_s20   ;;  %s5177_s22 = sadd.s32 4294967294, %s6867_s20   ;;  %s6867_s20 = sphi %s6941_s20, %s9512_s20   ;;  %s6863_s19 = sphi %s6939_s19, %s9511_s19   ;;  %s6859_s18 = sphi %s6937_s18, %s9510_s18   ;;  %s6855_s17 = sphi %s6935_s17, %s9509_s17  }
   0x4   : > { %s6960_s23 = sadd.s32 1, %s6867_s20   ;;  %s267_s24 = sadd.s32 1, %s6863_s19 }
   0x5   : > { %s264_s25 = ssub.s32 %s6867_s20, %s6960_s23  ;;  %p277_p0 = scmp.ne.s32.totalorder %s6863_s19, %s6859_s18 }
   0x6   : > { %p265_p1 = scmp.eq.s32.totalorder %s264_s25, 0  ;;  %p278_p2 = scmp.eq.s32.totalorder %s6956_s21, 1 }
   0x7   : > { %p283_p3 = scmp.ne.s32.totalorder %s6859_s18, %s6855_s17  ;;  %p284_p4 = scmp.eq.s32.totalorder %s5177_s22, 1 }
   0x8   : > { %s6971_s26 = scalar_select %p265_p1, %s6863_s19, %s267_s24  }
   0x9   : > { %p6973_p5 = por %p278_p2, %p277_p0  ;;  %p6977_p6 = por %p284_p4, %p283_p3 }
   0xa   : > { %9398 = sst [smem:[#allocation5_spill]] %s6971_s26  ;;  %p5180_p7 = scmp.ge.s32.totalorder %s6867_s20, 1 }
   0xb   : > { %p341_p8 = scmp.lt.s32.totalorder %s6867_s20, 3 }
   0xd   : > { %p342_p9 = pnand %p5180_p7, %p341_p8 }
   0xf   : > { %345 = sbr.rel (%p342_p9) target bundleno = 2319 (0x90f), region = 64 }
  0x16   : > { %v6465_v0 = vld [vmem:[%s9289_s1 + $0x64] ss:$8 sps:$4 sm:$0xff]   ;;  %s5182_s12 = sshll.u32 %s6956_s21, 5  ;;  %v6467_v1 = vld [vmem:[%s9289_s1 + $0x60] ss:$8 sps:$4 sm:$0xff]   ;;  %v9302_v2 = vmov 0  }
  0x17   : > { %650 = vmatprep.mubr.bf16.mxu0 %v9302_v2  ;;  %p382_p10 = scmp.lt.s32.totalorder %s5182_s12, 63  ;;  %618 = vmatprep.subr.bf16.mxu0 %v6465_v0  ;;  %v6468_v3 = vld [vmem:[%s9289_s1 + $0x74] ss:$8 sps:$4 sm:$0xff]   ;;  %v6470_v4 = vld [vmem:[%s9289_s1 + $0x70] ss:$8 sps:$4 sm:$0xff]   ;;  %vm575_vm0 = vcmask 785408  }
  0x18   : > { %619 = vmatpush1.bf16.msra.mxu0 %v6467_v1  ;;  %v6471_v5 = vld [vmem:[%s9289_s1 + $0x84] ss:$8 sps:$4 sm:$0xff]   ;;  %v6473_v6 = vld [vmem:[%s9289_s1 + $0x80] ss:$8 sps:$4 sm:$0xff]   ;;  %v6474_v7 = vld [vmem:[%s9289_s1 + $0x94] ss:$8 sps:$4 sm:$0xff]  }
  0x19   : > { %s9514_s12 = smov (!%p382_p10, %s5182_s12), 63  ;;  %620 = vmatprep.subr.bf16.mxu0 %v6468_v3  ;;  %v6476_v10 = vld [vmem:[%s9289_s1 + $0x90] ss:$8 sps:$4 sm:$0xff]   ;;  %v6477_v12 = vld [vmem:[%s9289_s1 + $0xa4] ss:$8 sps:$4 sm:$0xff]   ;;  %vm2700_vm1 = vcmask 1040384  }
  0x1a   : > { %s5183_s30 = sshll.u32 %s9514_s12, 2  ;;  %v6479_v13 = vld [vmem:[%s9289_s1 + $0xa0] ss:$8 sps:$4 sm:$0xff]   ;;  %v6480_v14 = vld [vmem:[%s9289_s1 + $0xb4] ss:$8 sps:$4 sm:$0xff]   ;;  %s6870_s14 = smov 122  }
  0x1b   : > { %s7006_s16 = scalar_lea.vmem %s9288_s0, %s5183_s30  ;;  %v6482_v17 = vld [vmem:[%s9289_s1 + $0xb0] ss:$8 sps:$4 sm:$0xff]   ;;  %v6487_v20 = vld [vmem:[%s9289_s1 + $0x4] ss:$8 sps:$4 sm:$0xff]   ;;  %v6485_v22 = vld [vmem:[%s9289_s1] ss:$8 sps:$4 sm:$0xff]  }
  0x1c   : > { %621 = vmatpush1.bf16.msra.mxu0 %v6470_v4  ;;  %v390_v8 = vld [vmem:[%s7006_s16 + $0x8] sm:$0xf]  ;;  %v391_v9 = vld [vmem:[%s7006_s16 + $0xc] sm:$0xf]  ;;  %v392_v15 = vld [vmem:[%s7006_s16 + $0x10] sm:$0xf] }
  0x1d   : > { %622 = vmatprep.subr.bf16.mxu0 %v6471_v5  ;;  %v7016_v11 = vcombine.low %v390_v8, %v391_v9  ;;  %v393_v16 = vld [vmem:[%s7006_s16 + $0x14] sm:$0xf]  ;;  %v7033_v18 = vld [vmem:[%s7006_s16 + $0x4] sm:$0xf]  ;;  %v394_v24 = vld [vmem:[%s7006_s16 + $0x18] sm:$0xf]  ;;  %v7062_v30 = vcombine.low %v391_v9, %v392_v15 }
  0x1e   : > { %v7035_v19 = vcombine.low %v392_v15, %v393_v16  ;;  %v5196_v21 = vcombine.low %v7033_v18, %v390_v8  ;;  %v6492_v23 = vld [vmem:[%s9289_s1 + $0x14] ss:$8 sps:$4 sm:$0xff]   ;;  %v6490_v26 = vld [vmem:[%s9289_s1 + $0x10] ss:$8 sps:$4 sm:$0xff]   ;;  %v6497_v28 = vld [vmem:[%s9289_s1 + $0x24] ss:$8 sps:$4 sm:$0xff]   ;;  %v7083_v38 = vcombine.low %v393_v16, %v394_v24 }
  0x1f   : > { %v395_v25 = vld [vmem:[%s7006_s16 + $0x1c] sm:$0xf]  ;;  %v6495_v29 = vld [vmem:[%s9289_s1 + $0x20] ss:$8 sps:$4 sm:$0xff]   ;;  %v397_v33 = vld [vmem:[%s7006_s16 + $0x24] sm:$0xf] }
  0x20   : > { %623 = vmatpush1.bf16.msra.mxu0 %v6473_v6  ;;  %v7054_v27 = vcombine.low %v394_v24, %v395_v25  ;;  %v6503_v31 = vld [vmem:[%s9289_s1 + $0x34] ss:$8 sps:$4 sm:$0xff]   ;;  %v396_v32 = vld [vmem:[%s7006_s16 + $0x20] sm:$0xf]  ;;  %v6501_v34 = vld [vmem:[%s9289_s1 + $0x30] ss:$8 sps:$4 sm:$0xff]  }
  0x21   : > { %624 = vmatprep.subr.bf16.mxu0 %v6474_v7  ;;  %v6508_v35 = vld [vmem:[%s9289_s1 + $0x44] ss:$8 sps:$4 sm:$0xff]   ;;  %v7078_v36 = vcombine.low %v396_v32, %v397_v33  ;;  %v6506_v37 = vld [vmem:[%s9289_s1 + $0x40] ss:$8 sps:$4 sm:$0xff]   ;;  %v6513_v39 = vld [vmem:[%s9289_s1 + $0x54] ss:$8 sps:$4 sm:$0xff]   ;;  %v7101_v45 = vcombine.low %v395_v25, %v396_v32 }
  0x22   : > { %v398_v40 = vld [vmem:[%s7006_s16 + $0x28] sm:$0xf]  ;;  %v399_v41 = vld [vmem:[%s7006_s16 + $0x2c] sm:$0xf]  ;;  %v6511_v42 = vld [vmem:[%s9289_s1 + $0x50] ss:$8 sps:$4 sm:$0xff]  }
  0x23   : > { %v6518_v43 = vld [vmem:[%s9289_s1 + $0xc4] ss:$8 sps:$4 sm:$0xff]   ;;  %v7099_v44 = vcombine.low %v398_v40, %v399_v41  ;;  %v400_v46 = vld [vmem:[%s7006_s16 + $0x30] sm:$0xf]  ;;  %v401_v47 = vld [vmem:[%s7006_s16 + $0x34] sm:$0xf]  ;;  %v7110_v49 = vcombine.low %v397_v33, %v398_v40 }
  0x24   : > { %625 = vmatpush1.bf16.msra.mxu0 %v6476_v10  ;;  %v7108_v48 = vcombine.low %v400_v46, %v401_v47  ;;  %v402_v50 = vld [vmem:[%s7006_s16 + $0x38] sm:$0xf]  ;;  %v403_v51 = vld [vmem:[%s7006_s16 + $0x3c] sm:$0xf]  ;;  %v7119_v53 = vcombine.low %v399_v41, %v400_v46  ;;  %v404_v54 = vld [vmem:[%s7006_s16 + $0x40] sm:$0xf] }
  0x25   : > { %626 = vmatprep.subr.bf16.mxu0 %v6477_v12  ;;  %v7117_v52 = vcombine.low %v402_v50, %v403_v51  ;;  %v405_v55 = vld [vmem:[%s7006_s16 + $0x44] sm:$0xf]  ;;  %v7128_v57 = vcombine.low %v401_v47, %v402_v50  ;;  %v406_v58 = vld [vmem:[%s7006_s16 + $0x48] sm:$0xf]  ;;  %v407_v59 = vld [vmem:[%s7006_s16 + $0x4c] sm:$0xf]  ;;  %v7137_v61 = vcombine.low %v403_v51, %v404_v54 }
  0x26   : > { %v7126_v56 = vcombine.low %v404_v54, %v405_v55  ;;  %v7135_v60 = vcombine.low %v406_v58, %v407_v59  ;;  %v408_v62 = vld [vmem:[%s7006_s16 + $0x50] sm:$0xf]  ;;  %v409_v63 = vld [vmem:[%s7006_s16 + $0x54] sm:$0xf]  ;;  %v7146_v1 = vcombine.low %v405_v55, %v406_v58  ;;  %v7156_v4 = vld [vmem:[%s7006_s16 + $0x58] sm:$0xf] }
  0x27   : > { %v7144_v0 = vcombine.low %v408_v62, %v409_v63  ;;  %v7151_v3 = vcombine.low %v407_v59, %v408_v62  ;;  %v7160_v5 = vcombine.low %v409_v63, %v7156_v4  ;;  %v7163_v6 = vld [vmem:[%s7006_s16 + $0x5c] sm:$0xf]  ;;  %v7166_v7 = vld [vmem:[%s7006_s16 + $0x60] sm:$0xf]  ;;  %v413_v9 = vld [vmem:[%s7006_s16 + $0x64] sm:$0xf] }
  0x28   : > { %627 = vmatpush1.bf16.msra.mxu0 %v6479_v13  ;;  %v7173_v8 = vcombine.low %v7163_v6, %v7166_v7  ;;  %v7180_v10 = vld [vmem:[%s7006_s16 + $0x68] sm:$0xf]  ;;  %v415_v13 = vld [vmem:[%s7006_s16 + $0x6c] sm:$0xf]  ;;  %v388_v16 = vld [vmem:[%s7006_s16] sm:$0xf]  ;;  %v7270_v33 = vcombine.low %v7156_v4, %v7163_v6 }
  0x29   : > { %628 = vmatprep.subr.bf16.mxu0 %v6480_v14  ;;  %v7183_v12 = vcombine.low %v413_v9, %v7180_v10  ;;  %v7190_v14 = vld [vmem:[%s7006_s16 + $0x70] sm:$0xf]  ;;  %v6534_v24 = vld [vmem:[%s9289_s1 + $0xf4] ss:$8 sps:$4 sm:$0xff]   ;;  %v6549_v32 = vld [vmem:[%s9289_s1 + $0x124] ss:$8 sps:$4 sm:$0xff]  }
  0x2a   : > { %v7193_v15 = vcombine.low %v415_v13, %v7190_v14  ;;  %v6532_v25 = vld [vmem:[%s9289_s1 + $0xf0] ss:$8 sps:$4 sm:$0xff]   ;;  %v6555_v41 = vld [vmem:[%s9289_s1 + $0x144] ss:$8 sps:$4 sm:$0xff]   ;;  %v6559_v47 = vld [vmem:[%s9289_s1 + $0x160] ss:$8 sps:$4 sm:$0xff]  }
  0x2b   : > { %v6550_v40 = vld [vmem:[%s9289_s1 + $0x130] ss:$8 sps:$4 sm:$0xff]   ;;  %v6561_v46 = vld [vmem:[%s9289_s1 + $0x164] ss:$8 sps:$4 sm:$0xff]   ;;  %v6564_v50 = vld [vmem:[%s9289_s1 + $0x174] ss:$8 sps:$4 sm:$0xff]  }
  0x2c   : > { %629 = vmatpush1.bf16.msra.mxu0 %v6482_v17  ;;  %v5236_v17 = vcombine.low %v388_v16, %v7033_v18  ;;  %v6528_v18 = vld [vmem:[%s9289_s1 + $0xe4] ss:$8 sps:$4 sm:$0xff]   ;;  %v6562_v51 = vld [vmem:[%s9289_s1 + $0x170] ss:$8 sps:$4 sm:$0xff]   ;;  %v417_v55 = vld [vmem:[%s7006_s16 + $0x74] sm:$0xf] }
  0x2d   : > { %909 = vmatprep.subr.bf16.mxu0 %v6487_v20  ;;  %v6516_v20 = vld [vmem:[%s9289_s1 + $0xc0] ss:$8 sps:$4 sm:$0xff]   ;;  %v6568_v54 = vld [vmem:[%s9289_s1 + $0x184] ss:$8 sps:$4 sm:$0xff]   ;;  %v7364_v58 = vcombine.low %v7190_v14, %v417_v55  ;;  %v6571_v62 = vld [vmem:[%s9289_s1 + $0x194] ss:$8 sps:$4 sm:$0xff]  }
  0x2e   : > { %v6566_v59 = vld [vmem:[%s9289_s1 + $0x180] ss:$8 sps:$4 sm:$0xff]   ;;  %v6569_v63 = vld [vmem:[%s9289_s1 + $0x190] ss:$8 sps:$4 sm:$0xff]   ;;  %v6574_v4 = vld [vmem:[%s9289_s1 + $0x1a4] ss:$8 sps:$4 sm:$0xff]  }
  0x2f   : > { %5222 = vmatmul.mubr.msk.bf16.vlgmr.msra.gmra.mrb[0].mxu0 %vm575_vm0, %v5196_v21  ;;  %v6523_v21 = vld [vmem:[%s9289_s1 + $0xd4] ss:$8 sps:$4 sm:$0xff]   ;;  %v6572_v6 = vld [vmem:[%s9289_s1 + $0x1a0] ss:$8 sps:$4 sm:$0xff]   ;;  %vm2298_vm2 = vcmask 998400   ;;  %vm2669_vm3 = vcmask 277504  }
  0x30   : > { %910 = vmatpush1.bf16.msra.mxu0 %v6485_v22  ;;  %660 = vmatprep.mubr.bf16.mxu0 %v9302_v2  ;;  %v6521_v22 = vld [vmem:[%s9289_s1 + $0xd0] ss:$8 sps:$4 sm:$0xff]   ;;  %vm4174_vm4 = vcmask 916480   ;;  %vm4384_vm5 = vcmask 130048   ;;  %vm4957_vm6 = vcmask 1043456   ;;  %vm6873_vm7 = vmmov 0  }
  0x31   : > { %911 = vmatprep.subr.bf16.mxu0 %v6492_v23  ;;  %v6526_v23 = vld [vmem:[%s9289_s1 + $0xe0] ss:$8 sps:$4 sm:$0xff]   ;;  %vm4953_vm8 = vcmask 982016   ;;  %vm5058_vm9 = vcmask 1041408   ;;  %vm5054_vm10 = vcmask 687104   ;;  %s378_s30 = sand.u32 1, %s6859_s18  }
  0x32   : > { %s5181_s13 = sshll.u32 %s378_s30, 3  ;;  %s5784_s22 = sshll.u32 %s6956_s21, 7  ;;  %vm5102_vm11 = vcmask 80896  }
  0x33   : > { %s380_s24 = scalar_lea.vmem [#allocation2], %s5181_s13  ;;  %s9246_s29 = scalar_lea.hbm %s9299_s11, %s5784_s22 }
  0x34   : > { %912 = vmatpush1.bf16.msra.mxu0 %v6490_v26  ;;  %v6539_v26 = vld [vmem:[%s9289_s1 + $0x104] ss:$8 sps:$4 sm:$0xff]   ;;  %s5118_s12 = sshll.u32 %s380_s24, 4  ;;  %s5105_s21 = scalar_lea.sflag [#allocation3], %s378_s30  ;;  %s9248_s12 = int_to_ptr.vmem [resolvable:$true] %s5118_s12 }
  0x35   : > { %913 = vmatprep.subr.bf16.mxu0 %v6497_v28  ;;  %v6537_v28 = vld [vmem:[%s9289_s1 + $0x100] ss:$8 sps:$4 sm:$0xff]   ;;  %s6874_s13 = smov [#allocation2]  }
  0x37   : > { %5223 = vmatmul.mubr.msk.bf16.gmra.mrb[4].mxu0 %vm575_vm0, %v7062_v30 }
  0x38   : > { %670 = vmatprep.mubr.bf16.mxu0 %v9302_v2  ;;  %914 = vmatpush1.bf16.msra.mxu0 %v6495_v29  ;;  %v6544_v29 = vld [vmem:[%s9289_s1 + $0x114] ss:$8 sps:$4 sm:$0xff]  }
  0x39   : > { %915 = vmatprep.subr.bf16.mxu0 %v6503_v31  ;;  %v6542_v31 = vld [vmem:[%s9289_s1 + $0x110] ss:$8 sps:$4 sm:$0xff]  }
  0x3c   : > { %916 = vmatpush1.bf16.msra.mxu0 %v6501_v34  ;;  %v7276_v34 = vcombine.low %v7166_v7, %v413_v9  ;;  %v6575_v7 = vld [vmem:[%s9289_s1 + $0x1b0] ss:$8 sps:$4 sm:$0xff]   ;;  %v6580_v9 = vld [vmem:[%s9289_s1 + $0x1c4] ss:$8 sps:$4 sm:$0xff]  }
  0x3d   : > { %917 = vmatprep.subr.bf16.mxu0 %v6508_v35  ;;  %v7282_v35 = vcombine.low %v7180_v10, %v415_v13  ;;  %v6578_v10 = vld [vmem:[%s9289_s1 + $0x1c0] ss:$8 sps:$4 sm:$0xff]   ;;  %v6581_v13 = vld [vmem:[%s9289_s1 + $0x1d0] ss:$8 sps:$4 sm:$0xff]  }
  0x3f   : > { %5224 = vmatmul.mubr.msk.bf16.gmra.mrb[8].mxu0 %vm575_vm0, %v7083_v38 }
  0x40   : > { %680 = vmatprep.mubr.bf16.mxu0 %v9302_v2  ;;  %918 = vmatpush1.bf16.msra.mxu0 %v6506_v37  ;;  %v6547_v37 = vld [vmem:[%s9289_s1 + $0x120] ss:$8 sps:$4 sm:$0xff]  }
  0x41   : > { %919 = vmatprep.subr.bf16.mxu0 %v6513_v39  ;;  %v6552_v39 = vld [vmem:[%s9289_s1 + $0x134] ss:$8 sps:$4 sm:$0xff]  }
  0x44   : > { %920 = vmatpush1.bf16.msra.mxu0 %v6511_v42  ;;  %v6553_v42 = vld [vmem:[%s9289_s1 + $0x140] ss:$8 sps:$4 sm:$0xff]  }
  0x45   : > { %1161 = vmatprep.subr.bf16.mxu0 %v6518_v43  ;;  %v6556_v43 = vld [vmem:[%s9289_s1 + $0x150] ss:$8 sps:$4 sm:$0xff]  }
  0x47   : > { %5225 = vmatmul.mubr.msk.bf16.gmra.mrb[12].mxu0 %vm575_vm0, %v7101_v45 }
  0x48   : > { %690 = vmatprep.mubr.bf16.mxu0 %v9302_v2 }
  0x4f   : > { %5226 = vmatmul.mubr.msk.bf16.gmra.mrb[16].mxu0 %vm575_vm0, %v7110_v49 }
  0x50   : > { %700 = vmatprep.mubr.bf16.mxu0 %v9302_v2 }
  0x57   : > { %5227 = vmatmul.mubr.msk.bf16.gmra.mrb[20].mxu0 %vm575_vm0, %v7119_v53 }
  0x58   : > { %710 = vmatprep.mubr.bf16.mxu0 %v9302_v2 }
  0x5f   : > { %5228 = vmatmul.mubr.msk.bf16.gmra.mrb[24].mxu0 %vm575_vm0, %v7128_v57 }
  0x60   : > { %720 = vmatprep.mubr.bf16.mxu0 %v9302_v2 }
  0x67   : > { %5229 = vmatmul.mubr.msk.bf16.gmra.mrb[28].mxu0 %vm575_vm0, %v7137_v61 }
  0x68   : > { %730 = vmatprep.mubr.bf16.mxu0 %v9302_v2 }
  0x6f   : > { %5230 = vmatmul.mubr.msk.bf16.gmra.mrb[32].mxu0 %vm575_vm0, %v7146_v1 }
  0x70   : > { %740 = vmatprep.mubr.bf16.mxu0 %v9302_v2 }
  0x77   : > { %5231 = vmatmul.mubr.msk.bf16.gmra.mrb[36].mxu0 %vm575_vm0, %v7151_v3 }
  0x78   : > { %750 = vmatprep.mubr.bf16.mxu0 %v9302_v2 }
  0x7f   : > { %5232 = vmatmul.mubr.msk.bf16.gmra.mrb[40].mxu0 %vm575_vm0, %v7160_v5 }
  0x80   : > { %760 = vmatprep.mubr.bf16.mxu0 %v9302_v2 }
  0x87   : > { %5233 = vmatmul.mubr.msk.bf16.gmra.mrb[44].mxu0 %vm575_vm0, %v7173_v8 }
  0x88   : > { %770 = vmatprep.mubr.bf16.mxu0 %v9302_v2 }
  0x8f   : > { %5234 = vmatmul.mubr.msk.bf16.gmra.mrb[48].mxu0 %vm575_vm0, %v7183_v12 }
  0x90   : > { %780 = vmatprep.mubr.bf16.mxu0 %v9302_v2 }
  0x97   : > { %5235 = vmatmul.mubr.msk.bf16.gmra.mrb[52].mxu0 %vm575_vm0, %v7193_v15 }
  0x98   : > { %941 = vmatprep.mubr.bf16.mxu0 %v9302_v2 }
  0x9f   : > { %5262 = vmatmul.mubr.msk.bf16.vlgmr.msra.gmra.mrb[0].mxu0 %vm575_vm0, %v5236_v17 }
  0xa0   : > { %1162 = vmatpush1.bf16.msra.mxu0 %v6516_v20  ;;  %951 = vmatprep.mubr.bf16.mxu0 %v9302_v2  ;;  %v6607_v20 = vld [vmem:[%s9291_s3 + $0x11c] ss:$8 sps:$4 sm:$0xff]  }
  0xa1   : > { %1163 = vmatprep.subr.bf16.mxu0 %v6523_v21 }
  0xa4   : > { %1164 = vmatpush1.bf16.msra.mxu0 %v6521_v22 }
  0xa5   : > { %1165 = vmatprep.subr.bf16.mxu0 %v6528_v18  ;;  %v6609_v18 = vld [vmem:[%s9291_s3 + $0x118] ss:$8 sps:$4 sm:$0xff]  }
  0xa7   : > { %5263 = vmatmul.mubr.msk.bf16.gmra.mrb[4].mxu0 %vm575_vm0, %v7016_v11 }
  0xa8   : > { %961 = vmatprep.mubr.bf16.mxu0 %v9302_v2  ;;  %1166 = vmatpush1.bf16.msra.mxu0 %v6526_v23  ;;  %v2006_v23 = vld [vmem:[%s9290_s2] sm:$0x3] }
  0xa9   : > { %1167 = vmatprep.subr.bf16.mxu0 %v6534_v24 }
  0xac   : > { %1168 = vmatpush1.bf16.msra.mxu0 %v6532_v25  ;;  %v6610_v25 = vld [vmem:[%s9291_s3 + $0x12c] ss:$8 sps:$4 sm:$0xff]  }
  0xad   : > { %1169 = vmatprep.subr.bf16.mxu0 %v6539_v26 }
  0xaf   : > { %5264 = vmatmul.mubr.msk.bf16.gmra.mrb[8].mxu0 %vm575_vm0, %v7035_v19 }
  0xb0   : > { %971 = vmatprep.mubr.bf16.mxu0 %v9302_v2  ;;  %1170 = vmatpush1.bf16.msra.mxu0 %v6537_v28  ;;  %v6612_v28 = vld [vmem:[%s9291_s3 + $0x128] ss:$8 sps:$4 sm:$0xff]  }
  0xb1   : > { %1171 = vmatprep.subr.bf16.mxu0 %v6544_v29 }
  0xb4   : > { %1172 = vmatpush1.bf16.msra.mxu0 %v6542_v31 }
  0xb5   : > { %1469 = vmatprep.subr.bf16.mxu0 %v6549_v32 }
  0xb7   : > { %5265 = vmatmul.mubr.msk.bf16.gmra.mrb[12].mxu0 %vm575_vm0, %v7054_v27 }
  0xb8   : > { %981 = vmatprep.mubr.bf16.mxu0 %v9302_v2 }
  0xbf   : > { %5266 = vmatmul.mubr.msk.bf16.gmra.mrb[16].mxu0 %vm575_vm0, %v7078_v36 }
  0xc0   : > { %991 = vmatprep.mubr.bf16.mxu0 %v9302_v2 }
  0xc7   : > { %5267 = vmatmul.mubr.msk.bf16.gmra.mrb[20].mxu0 %vm575_vm0, %v7099_v44 }
  0xc8   : > { %1001 = vmatprep.mubr.bf16.mxu0 %v9302_v2 }
  0xcf   : > { %5268 = vmatmul.mubr.msk.bf16.gmra.mrb[24].mxu0 %vm575_vm0, %v7108_v48 }
  0xd0   : > { %1011 = vmatprep.mubr.bf16.mxu0 %v9302_v2 }
  0xd7   : > { %5269 = vmatmul.mubr.msk.bf16.gmra.mrb[28].mxu0 %vm575_vm0, %v7117_v52 }
  0xd8   : > { %1021 = vmatprep.mubr.bf16.mxu0 %v9302_v2 }
  0xdf   : > { %5270 = vmatmul.mubr.msk.bf16.gmra.mrb[32].mxu0 %vm575_vm0, %v7126_v56 }
  0xe0   : > { %1031 = vmatprep.mubr.bf16.mxu0 %v9302_v2 }
  0xe7   : > { %5271 = vmatmul.mubr.msk.bf16.gmra.mrb[36].mxu0 %vm575_vm0, %v7135_v60 }
  0xe8   : > { %1041 = vmatprep.mubr.bf16.mxu0 %v9302_v2 }
  0xef   : > { %5272 = vmatmul.mubr.msk.bf16.gmra.mrb[40].mxu0 %vm575_vm0, %v7144_v0 }
  0xf0   : > { %1051 = vmatprep.mubr.bf16.mxu0 %v9302_v2 }
  0xf7   : > { %5273 = vmatmul.mubr.msk.bf16.gmra.mrb[44].mxu0 %vm575_vm0, %v7270_v33 }
  0xf8   : > { %1061 = vmatprep.mubr.bf16.mxu0 %v9302_v2 }
  0xff   : > { %5274 = vmatmul.mubr.msk.bf16.gmra.mrb[48].mxu0 %vm575_vm0, %v7276_v34 }
 0x100   : > { %1071 = vmatprep.mubr.bf16.mxu0 %v9302_v2 }
 0x107   : > { %5275 = vmatmul.mubr.msk.bf16.gmra.mrb[52].mxu0 %vm575_vm0, %v7282_v35 }
 0x108   : > { %1193 = vmatprep.mubr.bf16.mxu0 %v9302_v2 }
 0x10f   : > { %5301 = vmatmul.mubr.msk.bf16.vlgmr.msra.gmra.mrb[0].mxu0 %vm575_vm0, %v7016_v11  ;;  %v6558_v11 = vld [vmem:[%s9289_s1 + $0x154] ss:$8 sps:$4 sm:$0xff]  }
 0x110   : > { %1470 = vmatpush1.bf16.msra.mxu0 %v6547_v37  ;;  %1203 = vmatprep.mubr.bf16.mxu0 %v9302_v2  ;;  %v6613_v37 = vld [vmem:[%s9291_s3 + $0x13c] ss:$8 sps:$4 sm:$0xff]  }
 0x111   : > { %1471 = vmatprep.subr.bf16.mxu0 %v6552_v39 }
 0x114   : > { %1472 = vmatpush1.bf16.msra.mxu0 %v6550_v40 }
 0x115   : > { %1473 = vmatprep.subr.bf16.mxu0 %v6555_v41 }
 0x117   : > { %5302 = vmatmul.mubr.msk.bf16.gmra.mrb[4].mxu0 %vm575_vm0, %v7035_v19 }
 0x118   : > { %1213 = vmatprep.mubr.bf16.mxu0 %v9302_v2  ;;  %1474 = vmatpush1.bf16.msra.mxu0 %v6553_v42  ;;  %v6615_v42 = vld [vmem:[%s9291_s3 + $0x138] ss:$8 sps:$4 sm:$0xff]  }
 0x119   : > { %1475 = vmatprep.subr.bf16.mxu0 %v6558_v11 }
 0x11c   : > { %1476 = vmatpush1.bf16.msra.mxu0 %v6556_v43 }
 0x11d   : > { %1477 = vmatprep.subr.bf16.mxu0 %v6561_v46 }
 0x11f   : > { %5303 = vmatmul.mubr.msk.bf16.gmra.mrb[8].mxu0 %vm575_vm0, %v7054_v27 }
 0x120   : > { %1223 = vmatprep.mubr.bf16.mxu0 %v9302_v2  ;;  %1478 = vmatpush1.bf16.msra.mxu0 %v6559_v47  ;;  %v5413_v47 = vld [vmem:[%s9291_s3 + $0x148] sm:$0x11] }
 0x121   : > { %1479 = vmatprep.subr.bf16.mxu0 %v6564_v50 }
 0x124   : > { %1480 = vmatpush1.bf16.msra.mxu0 %v6562_v51 }
 0x125   : > { %1777 = vmatprep.subr.bf16.mxu0 %v6568_v54  ;;  %v5435_v54 = vcombine.high %v5413_v47, %v5413_v47 }
 0x127   : > { %5304 = vmatmul.mubr.msk.bf16.gmra.mrb[12].mxu0 %vm575_vm0, %v7078_v36 }
 0x128   : > { %1233 = vmatprep.mubr.bf16.mxu0 %v9302_v2 }
 0x12f   : > { %5305 = vmatmul.mubr.msk.bf16.gmra.mrb[16].mxu0 %vm575_vm0, %v7099_v44 }
 0x130   : > { %1243 = vmatprep.mubr.bf16.mxu0 %v9302_v2 }
 0x137   : > { %5306 = vmatmul.mubr.msk.bf16.gmra.mrb[20].mxu0 %vm575_vm0, %v7108_v48 }
 0x138   : > { %1253 = vmatprep.mubr.bf16.mxu0 %v9302_v2 }
 0x13f   : > { %5307 = vmatmul.mubr.msk.bf16.gmra.mrb[24].mxu0 %vm575_vm0, %v7117_v52 }
 0x140   : > { %1263 = vmatprep.mubr.bf16.mxu0 %v9302_v2 }
 0x147   : > { %5308 = vmatmul.mubr.msk.bf16.gmra.mrb[28].mxu0 %vm575_vm0, %v7126_v56 }
 0x148   : > { %1273 = vmatprep.mubr.bf16.mxu0 %v9302_v2 }
 0x14f   : > { %5309 = vmatmul.mubr.msk.bf16.gmra.mrb[32].mxu0 %vm575_vm0, %v7135_v60 }
 0x150   : > { %1283 = vmatprep.mubr.bf16.mxu0 %v9302_v2 }
 0x157   : > { %5310 = vmatmul.mubr.msk.bf16.gmra.mrb[36].mxu0 %vm575_vm0, %v7144_v0 }
 0x158   : > { %1293 = vmatprep.mubr.bf16.mxu0 %v9302_v2 }
 0x15f   : > { %5311 = vmatmul.mubr.msk.bf16.gmra.mrb[40].mxu0 %vm575_vm0, %v7270_v33 }
 0x160   : > { %1303 = vmatprep.mubr.bf16.mxu0 %v9302_v2 }
 0x167   : > { %5312 = vmatmul.mubr.msk.bf16.gmra.mrb[44].mxu0 %vm575_vm0, %v7276_v34 }
 0x168   : > { %1313 = vmatprep.mubr.bf16.mxu0 %v9302_v2 }
 0x16f   : > { %5313 = vmatmul.mubr.msk.bf16.gmra.mrb[48].mxu0 %vm575_vm0, %v7282_v35 }
 0x170   : > { %1323 = vmatprep.mubr.bf16.mxu0 %v9302_v2 }
 0x177   : > { %5314 = vmatmul.mubr.msk.bf16.gmra.mrb[52].mxu0 %vm575_vm0, %v7364_v58 }
 0x178   : > { %1501 = vmatprep.mubr.bf16.mxu0 %v9302_v2 }
 0x17f   : > { %5340 = vmatmul.mubr.msk.bf16.vlgmr.msra.gmra.mrb[0].mxu0 %vm575_vm0, %v7062_v30  ;;  %v6577_v30 = vld [vmem:[%s9289_s1 + $0x1b4] ss:$8 sps:$4 sm:$0xff]  }
 0x180   : > { %1778 = vmatpush1.bf16.msra.mxu0 %v6566_v59  ;;  %1511 = vmatprep.mubr.bf16.mxu0 %v9302_v2 }
 0x181   : > { %1779 = vmatprep.subr.bf16.mxu0 %v6571_v62 }
 0x184   : > { %1780 = vmatpush1.bf16.msra.mxu0 %v6569_v63 }
 0x185   : > { %1781 = vmatprep.subr.bf16.mxu0 %v6574_v4 }
 0x187   : > { %5341 = vmatmul.mubr.msk.bf16.gmra.mrb[4].mxu0 %vm575_vm0, %v7083_v38  ;;  %v6583_v38 = vld [vmem:[%s9289_s1 + $0x1d4] ss:$8 sps:$4 sm:$0xff]  }
 0x188   : > { %1521 = vmatprep.mubr.bf16.mxu0 %v9302_v2  ;;  %1782 = vmatpush1.bf16.msra.mxu0 %v6572_v6 }
 0x189   : > { %1783 = vmatprep.subr.bf16.mxu0 %v6577_v30 }
 0x18c   : > { %1784 = vmatpush1.bf16.msra.mxu0 %v6575_v7 }
 0x18d   : > { %1785 = vmatprep.subr.bf16.mxu0 %v6580_v9 }
 0x18f   : > { %5342 = vmatmul.mubr.msk.bf16.gmra.mrb[8].mxu0 %vm575_vm0, %v7101_v45  ;;  %v418_v45 = vld [vmem:[%s7006_s16 + $0x78] sm:$0xf] }
 0x190   : > { %1531 = vmatprep.mubr.bf16.mxu0 %v9302_v2  ;;  %1786 = vmatpush1.bf16.msra.mxu0 %v6578_v10 }
 0x191   : > { %1787 = vmatprep.subr.bf16.mxu0 %v6583_v38 }
 0x194   : > { %1788 = vmatpush1.bf16.msra.mxu0 %v6581_v13 }
 0x195   : > { %4835 = vmatprep.subr.bf16.mxu0 %v9302_v2 }
 0x197   : > { %5343 = vmatmul.mubr.msk.bf16.gmra.mrb[12].mxu0 %vm575_vm0, %v7110_v49  ;;  %v5327_v49 = vcombine.low %v417_v55, %v418_v45  ;;  %v5434_v55 = vcombine.low %v5413_v47, %v5413_v47 }
 0x198   : > { %1541 = vmatprep.mubr.bf16.mxu0 %v9302_v2 }
 0x199   : > { %v2702_v59 = vsel %vm2700_vm1, %v5434_v55, 0 }
 0x19f   : > { %5344 = vmatmul.mubr.msk.bf16.gmra.mrb[16].mxu0 %vm575_vm0, %v7119_v53  ;;  %v6592_v53 = vld [vmem:[%s9291_s3 + $0xcc] ss:$8 sps:$4 sm:$0xff]  }
 0x1a0   : > { %1551 = vmatprep.mubr.bf16.mxu0 %v9302_v2 }
 0x1a7   : > { %5345 = vmatmul.mubr.msk.bf16.gmra.mrb[20].mxu0 %vm575_vm0, %v7128_v57  ;;  %v6595_v57 = vld [vmem:[%s9291_s3 + $0xdc] ss:$8 sps:$4 sm:$0xff]  }
 0x1a8   : > { %1561 = vmatprep.mubr.bf16.mxu0 %v9302_v2 }
 0x1af   : > { %5346 = vmatmul.mubr.msk.bf16.gmra.mrb[24].mxu0 %vm575_vm0, %v7137_v61  ;;  %v6598_v61 = vld [vmem:[%s9291_s3 + $0xec] ss:$8 sps:$4 sm:$0xff]  }
 0x1b0   : > { %1571 = vmatprep.mubr.bf16.mxu0 %v9302_v2 }
 0x1b7   : > { %5347 = vmatmul.mubr.msk.bf16.gmra.mrb[28].mxu0 %vm575_vm0, %v7146_v1  ;;  %v6601_v1 = vld [vmem:[%s9291_s3 + $0xfc] ss:$8 sps:$4 sm:$0xff]  }
 0x1b8   : > { %1581 = vmatprep.mubr.bf16.mxu0 %v9302_v2 }
 0x1bf   : > { %5348 = vmatmul.mubr.msk.bf16.gmra.mrb[32].mxu0 %vm575_vm0, %v7151_v3  ;;  %v6603_v3 = vld [vmem:[%s9291_s3 + $0xf8] ss:$8 sps:$4 sm:$0xff]  }
 0x1c0   : > { %1591 = vmatprep.mubr.bf16.mxu0 %v9302_v2 }
 0x1c7   : > { %5349 = vmatmul.mubr.msk.bf16.gmra.mrb[36].mxu0 %vm575_vm0, %v7160_v5  ;;  %v6604_v5 = vld [vmem:[%s9291_s3 + $0x10c] ss:$8 sps:$4 sm:$0xff]  }
 0x1c8   : > { %1601 = vmatprep.mubr.bf16.mxu0 %v9302_v2 }
 0x1cf   : > { %5350 = vmatmul.mubr.msk.bf16.gmra.mrb[40].mxu0 %vm575_vm0, %v7173_v8  ;;  %v2008_v8 = vlaneseq }
 0x1d0   : > { %1611 = vmatprep.mubr.bf16.mxu0 %v9302_v2 }
 0x1d1   : > { %v7528_v14 = vshrl.u32 %v2008_v8, 7 }
 0x1d3   : > { %9401 = vst [vmem:[#allocation6_spill] sm:$0xff] %v7528_v14  ;;  %v9301_v21 = vsub.s32 0, %v7528_v14  ;;  %v9300_v24 = vsub.s32 1, %v7528_v14 }
 0x1d5   : > { %v7554_v26 = vrot.slane %v2006_v23, %v9301_v21  ;;  %v7561_v29 = vrot.slane %v2006_v23, %v9300_v24 }
 0x1d7   : > { %5351 = vmatmul.mubr.msk.bf16.gmra.mrb[44].mxu0 %vm575_vm0, %v7183_v12  ;;  %v6606_v12 = vld [vmem:[%s9291_s3 + $0x108] ss:$8 sps:$4 sm:$0xff]  }
 0x1d8   : > { %1621 = vmatprep.mubr.bf16.mxu0 %v9302_v2 }
 0x1df   : > { %5352 = vmatmul.mubr.msk.bf16.gmra.mrb[48].mxu0 %vm575_vm0, %v7193_v15 }
 0x1e0   : > { %1631 = vmatprep.mubr.bf16.mxu0 %v9302_v2 }
 0x1e7   : > { %5353 = vmatmul.mubr.msk.bf16.gmra.mrb[52].mxu0 %vm575_vm0, %v5327_v49 }
 0x1e8   : > { %1809 = vmatprep.mubr.bf16.mxu0 %v9302_v2 }
 0x1ef   : > { %5379 = vmatmul.mubr.msk.bf16.vlgmr.msra.gmra.mrb[0].mxu0 %vm575_vm0, %v7035_v19  ;;  %v419_v19 = vld [vmem:[%s7006_s16 + $0x7c] sm:$0xf]  ;;  %s6805_s16 = scalar_lea.vmem %s9248_s12, 128 }
 0x1f0   : > { %1819 = vmatprep.mubr.bf16.mxu0 %v9302_v2  ;;  %p6806_p11 = scmp.ne.s32.totalorder %s9248_s12, %s6805_s16 }
 0x1f2   : > { %p6807_p12 = pnand %p6806_p11, %p6973_p5 }
 0x1f4   : > { %p6808_p13 = pneg %p6807_p12 }
 0x1f7   : > { %5380 = vmatmul.mubr.msk.bf16.gmra.mrb[4].mxu0 %vm575_vm0, %v7054_v27  ;;  %v5366_v27 = vcombine.low %v418_v45, %v419_v19 }
 0x1f8   : > { %1829 = vmatprep.mubr.bf16.mxu0 %v9302_v2 }
 0x1ff   : > { %5381 = vmatmul.mubr.msk.bf16.gmra.mrb[8].mxu0 %vm575_vm0, %v7078_v36  ;;  %v6586_v36 = vld [vmem:[%s9291_s3 + $0xac] ss:$8 sps:$4 sm:$0xff]  }
 0x200   : > { %1839 = vmatprep.mubr.bf16.mxu0 %v9302_v2  ;;  %2707 = vmatprep.subr.bf16.mxu1 %v6586_v36 }
 0x207   : > { %5382 = vmatmul.mubr.msk.bf16.gmra.mrb[12].mxu0 %vm575_vm0, %v7099_v44  ;;  %v6588_v44 = vld [vmem:[%s9291_s3 + $0xa8] ss:$8 sps:$4 sm:$0xff]  }
 0x208   : > { %1849 = vmatprep.mubr.bf16.mxu0 %v9302_v2  ;;  %2708 = vmatpush1.bf16.msra.mxu1 %v6588_v44 }
 0x20f   : > { %5383 = vmatmul.mubr.msk.bf16.gmra.mrb[16].mxu0 %vm575_vm0, %v7108_v48  ;;  %v6589_v48 = vld [vmem:[%s9291_s3 + $0xbc] ss:$8 sps:$4 sm:$0xff]  }
 0x210   : > { %1859 = vmatprep.mubr.bf16.mxu0 %v9302_v2  ;;  %2709 = vmatprep.subr.bf16.mxu1 %v6589_v48 }
 0x217   : > { %5384 = vmatmul.mubr.msk.bf16.gmra.mrb[20].mxu0 %vm575_vm0, %v7117_v52  ;;  %v6591_v52 = vld [vmem:[%s9291_s3 + $0xb8] ss:$8 sps:$4 sm:$0xff]  }
 0x218   : > { %1869 = vmatprep.mubr.bf16.mxu0 %v9302_v2  ;;  %2710 = vmatpush1.bf16.msra.mxu1 %v6591_v52 }
 0x219   : > { %2711 = vmatprep.subr.bf16.mxu1 %v6592_v53 }
 0x21f   : > { %5385 = vmatmul.mubr.msk.bf16.gmra.mrb[24].mxu0 %vm575_vm0, %v7126_v56  ;;  %v6594_v56 = vld [vmem:[%s9291_s3 + $0xc8] ss:$8 sps:$4 sm:$0xff]  }
 0x220   : > { %1879 = vmatprep.mubr.bf16.mxu0 %v9302_v2  ;;  %2712 = vmatpush1.bf16.msra.mxu1 %v6594_v56 }
 0x221   : > { %2713 = vmatprep.subr.bf16.mxu1 %v6595_v57 }
 0x227   : > { %5386 = vmatmul.mubr.msk.bf16.gmra.mrb[28].mxu0 %vm575_vm0, %v7135_v60  ;;  %v6597_v60 = vld [vmem:[%s9291_s3 + $0xd8] ss:$8 sps:$4 sm:$0xff]  }
 0x228   : > { %1889 = vmatprep.mubr.bf16.mxu0 %v9302_v2  ;;  %2714 = vmatpush1.bf16.msra.mxu1 %v6597_v60 }
 0x229   : > { %2715 = vmatprep.subr.bf16.mxu1 %v6598_v61 }
 0x22f   : > { %5387 = vmatmul.mubr.msk.bf16.gmra.mrb[32].mxu0 %vm575_vm0, %v7144_v0  ;;  %v6600_v0 = vld [vmem:[%s9291_s3 + $0xe8] ss:$8 sps:$4 sm:$0xff]  }
 0x230   : > { %1899 = vmatprep.mubr.bf16.mxu0 %v9302_v2  ;;  %2716 = vmatpush1.bf16.msra.mxu1 %v6600_v0 }
 0x231   : > { %2717 = vmatprep.subr.bf16.mxu1 %v6601_v1 }
 0x234   : > { %2718 = vmatpush1.bf16.msra.mxu1 %v6603_v3 }
 0x235   : > { %2719 = vmatprep.subr.bf16.mxu1 %v6604_v5 }
 0x237   : > { %5388 = vmatmul.mubr.msk.bf16.gmra.mrb[36].mxu0 %vm575_vm0, %v7270_v33 }
 0x238   : > { %1909 = vmatprep.mubr.bf16.mxu0 %v9302_v2  ;;  %2720 = vmatpush1.bf16.msra.mxu1 %v6606_v12 }
 0x239   : > { %2721 = vmatprep.subr.bf16.mxu1 %v6607_v20 }
 0x23c   : > { %2722 = vmatpush1.bf16.msra.mxu1 %v6609_v18 }
 0x23d   : > { %2723 = vmatprep.subr.bf16.mxu1 %v6610_v25 }
 0x23f   : > { %5389 = vmatmul.mubr.msk.bf16.gmra.mrb[40].mxu0 %vm575_vm0, %v7276_v34 }
 0x240   : > { %1919 = vmatprep.mubr.bf16.mxu0 %v9302_v2  ;;  %2724 = vmatpush1.bf16.msra.mxu1 %v6612_v28 }
 0x241   : > { %2725 = vmatprep.subr.bf16.mxu1 %v6613_v37 }
 0x244   : > { %2726 = vmatpush1.bf16.msra.mxu1 %v6615_v42 }
 0x245   : > { %5436 = vmatprep.subr.msk.bf16.mxu1 %vm2700_vm1, %v5435_v54 }
 0x247   : > { %5390 = vmatmul.mubr.msk.bf16.gmra.mrb[44].mxu0 %vm575_vm0, %v7282_v35 }
 0x248   : > { %1929 = vmatprep.mubr.bf16.mxu0 %v9302_v2  ;;  %2728 = vmatpush1.bf16.msra.mxu1 %v2702_v59 }
 0x24f   : > { %5391 = vmatmul.mubr.msk.bf16.gmra.mrb[48].mxu0 %vm575_vm0, %v7364_v58 }
 0x250   : > { %1939 = vmatprep.mubr.bf16.mxu0 %v9302_v2 }
 0x257   : > { %5392 = vmatmul.mubr.msk.bf16.gmra.mrb[52].mxu0 %vm575_vm0, %v5366_v27  ;;  %v6620_v27 = vld [vmem:[%s9291_s3 + $0x4] ss:$8 sps:$4 sm:$0xff]  }
 0x258   : > { %2950 = vmatprep.subr.bf16.mxu1 %v6620_v27 }
 0x2c2   : > { %v7530_v15 = vpop.f32.mrb[0].mxu0 }
 0x2c3   : > { %v7532_v16 = vpop.f32.mrb[1].mxu0 }
 0x2c4   : > { %v7534_v17 = vpop.f32.mrb[2].mxu0 }
 0x2c5   : > { %v7540_v22 = vpop.f32.mrb[3].mxu0 }
 0x2ca   : > { %v1821_v31 = vpop.f32.mrb[4].mxu0 }
 0x2cb   : > { %v7564_v32 = vadd.f32 %v7554_v26, %v1821_v31  ;;  %v1823_v33 = vpop.f32.mrb[5].mxu0 }
 0x2cc   : > { %v7567_v34 = vadd.f32 %v7561_v29, %v1823_v33  ;;  %v1825_v35 = vpop.f32.mrb[6].mxu0 }
 0x2cd   : > { %v9339_v39 = vmax.f32 %v7564_v32, 0.0  ;;  %v7574_v40 = vadd.f32 %v7554_v26, %v1825_v35  ;;  %v1827_v41 = vpop.f32.mrb[7].mxu0 }
 0x2ce   : > { %v9341_v11 = vmax.f32 %v7567_v34, 0.0  ;;  %v7581_v43 = vadd.f32 %v7561_v29, %v1827_v41 }
 0x2cf   : > { %v9344_v46 = vmax.f32 %v7574_v40, 0.0 }
 0x2d0   : > { %v9349_v50 = vmax.f32 %v7581_v43, 0.0  ;;  %v6235_v51 = vpack.i.bf16 %v9341_v11, %v9339_v39 }
 0x2d2   : > { %6236 = vrot.lane.b32.xlu0 %v6235_v51, %s6870_s14  ;;  %v1831_v58 = vpop.f32.mrb[8].mxu0  ;;  %v6240_v4 = vpack.i.bf16 %v9349_v50, %v9344_v46 }
 0x2d3   : > { %v7596_v62 = vadd.f32 %v7554_v26, %v1831_v58  ;;  %v1833_v63 = vpop.f32.mrb[9].mxu0 }
 0x2d4   : > { %v7603_v6 = vadd.f32 %v7561_v29, %v1833_v63  ;;  %v1835_v30 = vpop.f32.mrb[10].mxu0 }
 0x2d5   : > { %v9336_v7 = vmax.f32 %v7596_v62, 0.0  ;;  %v7607_v9 = vadd.f32 %v7554_v26, %v1835_v30  ;;  %v1837_v10 = vpop.f32.mrb[11].mxu0 }
 0x2d6   : > { %v9340_v38 = vmax.f32 %v7603_v6, 0.0  ;;  %v7611_v13 = vadd.f32 %v7561_v29, %v1837_v10  ;;  %6241 = vrot.lane.b32.xlu0 %v6240_v4, %s6870_s14 }
 0x2d7   : > { %v9332_v45 = vmax.f32 %v7607_v9, 0.0 }
 0x2d8   : > { %v9333_v49 = vmax.f32 %v7611_v13, 0.0  ;;  %v6245_v19 = vpack.i.bf16 %v9340_v38, %v9336_v7 }
 0x2da   : > { %6246 = vrot.lane.b32.xlu1 %v6245_v19, %s6870_s14  ;;  %v1841_v36 = vpop.f32.mrb[12].mxu0  ;;  %v6250_v52 = vpack.i.bf16 %v9333_v49, %v9332_v45 }
 0x2db   : > { %v7625_v44 = vadd.f32 %v7554_v26, %v1841_v36  ;;  %v1843_v48 = vpop.f32.mrb[13].mxu0 }
 0x2dc   : > { %v7632_v53 = vadd.f32 %v7561_v29, %v1843_v48  ;;  %v1845_v56 = vpop.f32.mrb[14].mxu0 }
 0x2dd   : > { %v9328_v57 = vmax.f32 %v7625_v44, 0.0  ;;  %v7636_v60 = vadd.f32 %v7554_v26, %v1845_v56  ;;  %v1847_v61 = vpop.f32.mrb[15].mxu0 }
 0x2de   : > { %v9331_v0 = vmax.f32 %v7632_v53, 0.0  ;;  %v7640_v1 = vadd.f32 %v7561_v29, %v1847_v61  ;;  %6251 = vrot.lane.b32.xlu1 %v6250_v52, %s6870_s14 }
 0x2df   : > { %v9324_v3 = vmax.f32 %v7636_v60, 0.0 }
 0x2e0   : > { %v6255_v5 = vpack.i.bf16 %v9331_v0, %v9328_v57  ;;  %v9327_v8 = vmax.f32 %v7640_v1, 0.0 }
 0x2e2   : > { %v6260_v12 = vpack.i.bf16 %v9327_v8, %v9324_v3  ;;  %6256 = vrot.lane.b32.xlu0 %v6255_v5, %s6870_s14  ;;  %v1851_v20 = vpop.f32.mrb[16].mxu0 }
 0x2e3   : > { %v7655_v18 = vadd.f32 %v7554_v26, %v1851_v20  ;;  %v1853_v23 = vpop.f32.mrb[17].mxu0 }
 0x2e4   : > { %v7658_v25 = vadd.f32 %v7561_v29, %v1853_v23  ;;  %6261 = vrot.lane.b32.xlu1 %v6260_v12, %s6870_s14  ;;  %v1855_v28 = vpop.f32.mrb[18].mxu0 }
 0x2e5   : > { %v9320_v31 = vmax.f32 %v7655_v18, 0.0  ;;  %v7663_v33 = vadd.f32 %v7554_v26, %v1855_v28  ;;  %v1857_v35 = vpop.f32.mrb[19].mxu0 }
 0x2e6   : > { %v9323_v37 = vmax.f32 %v7658_v25, 0.0  ;;  %v7667_v41 = vadd.f32 %v7561_v29, %v1857_v35 }
 0x2e7   : > { %v9316_v42 = vmax.f32 %v7663_v33, 0.0 }
 0x2e8   : > { %v6265_v47 = vpack.i.bf16 %v9323_v37, %v9320_v31  ;;  %v9319_v51 = vmax.f32 %v7667_v41, 0.0 }
 0x2ea   : > { %v6270_v54 = vpack.i.bf16 %v9319_v51, %v9316_v42  ;;  %6266 = vrot.lane.b32.xlu0 %v6265_v47, %s6870_s14  ;;  %v1861_v55 = vpop.f32.mrb[20].mxu0 }
 0x2eb   : > { %v7681_v58 = vadd.f32 %v7554_v26, %v1861_v55  ;;  %v1863_v59 = vpop.f32.mrb[21].mxu0 }
 0x2ec   : > { %v7684_v63 = vadd.f32 %v7561_v29, %v1863_v59  ;;  %6271 = vrot.lane.b32.xlu1 %v6270_v54, %s6870_s14  ;;  %v1865_v4 = vpop.f32.mrb[22].mxu0 }
 0x2ed   : > { %v9312_v30 = vmax.f32 %v7681_v58, 0.0  ;;  %v7689_v10 = vadd.f32 %v7554_v26, %v1865_v4  ;;  %v1867_v19 = vpop.f32.mrb[23].mxu0 }
 0x2ee   : > { %v9315_v27 = vmax.f32 %v7684_v63, 0.0  ;;  %v7693_v36 = vadd.f32 %v7561_v29, %v1867_v19 }
 0x2ef   : > { %v9308_v48 = vmax.f32 %v7689_v10, 0.0 }
 0x2f0   : > { %v6275_v52 = vpack.i.bf16 %v9315_v27, %v9312_v30  ;;  %v9311_v56 = vmax.f32 %v7693_v36, 0.0 }
 0x2f2   : > { %v6280_v61 = vpack.i.bf16 %v9311_v56, %v9308_v48  ;;  %6276 = vrot.lane.b32.xlu0 %v6275_v52, %s6870_s14  ;;  %v1871_v5 = vpop.f32.mrb[24].mxu0 }
 0x2f3   : > { %v7707_v12 = vadd.f32 %v7554_v26, %v1871_v5  ;;  %v1873_v20 = vpop.f32.mrb[25].mxu0 }
 0x2f4   : > { %v7710_v23 = vadd.f32 %v7561_v29, %v1873_v20  ;;  %6281 = vrot.lane.b32.xlu1 %v6280_v61, %s6870_s14  ;;  %v1875_v28 = vpop.f32.mrb[26].mxu0 }
 0x2f5   : > { %v9304_v35 = vmax.f32 %v7707_v12, 0.0  ;;  %v7715_v47 = vadd.f32 %v7554_v26, %v1875_v28  ;;  %v1877_v54 = vpop.f32.mrb[27].mxu0 }
 0x2f6   : > { %v9307_v55 = vmax.f32 %v7710_v23, 0.0  ;;  %v7719_v59 = vadd.f32 %v7561_v29, %v1877_v54 }
 0x2f7   : > { %v9305_v4 = vmax.f32 %v7715_v47, 0.0 }
 0x2f8   : > { %v6285_v19 = vpack.i.bf16 %v9307_v55, %v9304_v35  ;;  %v9306_v52 = vmax.f32 %v7719_v59, 0.0 }
 0x2fa   : > { %v6290_v61 = vpack.i.bf16 %v9306_v52, %v9305_v4  ;;  %6286 = vrot.lane.b32.xlu0 %v6285_v19, %s6870_s14  ;;  %v1881_v5 = vpop.f32.mrb[28].mxu0 }
 0x2fb   : > { %v7733_v20 = vadd.f32 %v7554_v26, %v1881_v5  ;;  %v1883_v28 = vpop.f32.mrb[29].mxu0 }
 0x2fc   : > { %v7736_v54 = vadd.f32 %v7561_v29, %v1883_v28  ;;  %6291 = vrot.lane.b32.xlu1 %v6290_v61, %s6870_s14  ;;  %v1885_v24 = vpop.f32.mrb[30].mxu0 }
 0x2fd   : > { %v9309_v21 = vmax.f32 %v7733_v20, 0.0  ;;  %v7741_v2 = vadd.f32 %v7554_v26, %v1885_v24  ;;  %v1887_v35 = vpop.f32.mrb[31].mxu0 }
 0x2fe   : > { %v9310_v4 = vmax.f32 %v7736_v54, 0.0  ;;  %v7745_v19 = vadd.f32 %v7561_v29, %v1887_v35 }
 0x2ff   : > { %v9313_v5 = vmax.f32 %v7741_v2, 0.0 }
 0x300   : > { %v6295_v28 = vpack.i.bf16 %v9310_v4, %v9309_v21  ;;  %v9314_v61 = vmax.f32 %v7745_v19, 0.0 }
 0x302   : > { %v6300_v24 = vpack.i.bf16 %v9314_v61, %v9313_v5  ;;  %6296 = vrot.lane.b32.xlu0 %v6295_v28, %s6870_s14  ;;  %v1891_v52 = vpop.f32.mrb[32].mxu0 }
 0x303   : > { %v7759_v35 = vadd.f32 %v7554_v26, %v1891_v52  ;;  %v1893_v55 = vpop.f32.mrb[33].mxu0 }
 0x304   : > { %v7762_v48 = vadd.f32 %v7561_v29, %v1893_v55  ;;  %6301 = vrot.lane.b32.xlu1 %v6300_v24, %s6870_s14  ;;  %v1895_v21 = vpop.f32.mrb[34].mxu0 }
 0x305   : > { %v9317_v4 = vmax.f32 %v7759_v35, 0.0  ;;  %v7767_v56 = vadd.f32 %v7554_v26, %v1895_v21  ;;  %v1897_v30 = vpop.f32.mrb[35].mxu0 }
 0x306   : > { %v9318_v5 = vmax.f32 %v7762_v48, 0.0  ;;  %v7771_v28 = vadd.f32 %v7561_v29, %v1897_v30 }
 0x307   : > { %v9321_v52 = vmax.f32 %v7767_v56, 0.0 }
 0x308   : > { %v6305_v55 = vpack.i.bf16 %v9318_v5, %v9317_v4  ;;  %v9322_v24 = vmax.f32 %v7771_v28, 0.0 }
 0x30a   : > { %v6310_v21 = vpack.i.bf16 %v9322_v24, %v9321_v52  ;;  %6306 = vrot.lane.b32.xlu0 %v6305_v55, %s6870_s14  ;;  %v1901_v61 = vpop.f32.mrb[36].mxu0 }
 0x30b   : > { %v7785_v30 = vadd.f32 %v7554_v26, %v1901_v61  ;;  %v1903_v27 = vpop.f32.mrb[37].mxu0 }
 0x30c   : > { %v7788_v42 = vadd.f32 %v7561_v29, %v1903_v27  ;;  %6311 = vrot.lane.b32.xlu1 %v6310_v21, %s6870_s14  ;;  %v1905_v4 = vpop.f32.mrb[38].mxu0 }
 0x30d   : > { %v9325_v5 = vmax.f32 %v7785_v30, 0.0  ;;  %v7793_v51 = vadd.f32 %v7554_v26, %v1905_v4  ;;  %v1907_v31 = vpop.f32.mrb[39].mxu0 }
 0x30e   : > { %v9326_v52 = vmax.f32 %v7788_v42, 0.0  ;;  %v7797_v55 = vadd.f32 %v7561_v29, %v1907_v31 }
 0x30f   : > { %v9329_v61 = vmax.f32 %v7793_v51, 0.0 }
 0x310   : > { %v6315_v27 = vpack.i.bf16 %v9326_v52, %v9325_v5  ;;  %v9330_v21 = vmax.f32 %v7797_v55, 0.0 }
 0x312   : > { %v6320_v4 = vpack.i.bf16 %v9330_v21, %v9329_v61  ;;  %6316 = vrot.lane.b32.xlu0 %v6315_v27, %s6870_s14  ;;  %v1911_v24 = vpop.f32.mrb[40].mxu0  ;;  %v7823_v27 = vadd.f32 %v7554_v26, %v7530_v15 }
 0x313   : > { %v7811_v31 = vadd.f32 %v7554_v26, %v1911_v24  ;;  %v1913_v37 = vpop.f32.mrb[41].mxu0  ;;  %v7827_v24 = vadd.f32 %v7561_v29, %v7532_v16 }
 0x314   : > { %v7814_v3 = vadd.f32 %v7561_v29, %v1913_v37  ;;  %6321 = vrot.lane.b32.xlu1 %v6320_v4, %s6870_s14  ;;  %v1915_v5 = vpop.f32.mrb[42].mxu0  ;;  %v9342_v15 = vmax.f32 %v7823_v27, 0.0 }
 0x315   : > { %v9334_v52 = vmax.f32 %v7811_v31, 0.0  ;;  %v7819_v8 = vadd.f32 %v7554_v26, %v1915_v5  ;;  %v1917_v57 = vpop.f32.mrb[43].mxu0  ;;  %v9343_v0 = vmax.f32 %v7827_v24, 0.0 }
 0x316   : > { %v9335_v37 = vmax.f32 %v7814_v3, 0.0  ;;  %v7831_v61 = vadd.f32 %v7561_v29, %v1917_v57 }
 0x317   : > { %v9337_v4 = vmax.f32 %v7819_v8, 0.0 }
 0x318   : > { %v6325_v5 = vpack.i.bf16 %v9335_v37, %v9334_v52  ;;  %v9338_v21 = vmax.f32 %v7831_v61, 0.0  ;;  %v7851_v52 = vadd.f32 %v7554_v26, %v7534_v17  ;;  %v7855_v37 = vadd.f32 %v7561_v29, %v7540_v22 }
 0x319   : > { %v6340_v17 = vpack.i.bf16 %v9343_v0, %v9342_v15 }
 0x31a   : > { %v6330_v16 = vpack.i.bf16 %v9338_v21, %v9337_v4  ;;  %6326 = vrot.lane.b32.xlu0 %v6325_v5, %s6870_s14  ;;  %v1921_v57 = vpop.f32.mrb[44].mxu0  ;;  %v9351_v38 = vmax.f32 %v7855_v37, 0.0 }
 0x31b   : > { %v7847_v45 = vadd.f32 %v7554_v26, %v1921_v57  ;;  %v1923_v49 = vpop.f32.mrb[45].mxu0 }
 0x31c   : > { %v7858_v7 = vadd.f32 %v7561_v29, %v1923_v49  ;;  %6331 = vrot.lane.b32.xlu1 %v6330_v16, %s6870_s14  ;;  %v1925_v4 = vpop.f32.mrb[46].mxu0  ;;  %v9350_v16 = vmax.f32 %v7851_v52, 0.0 }
 0x31d   : > { %v9345_v5 = vmax.f32 %v7847_v45, 0.0  ;;  %v7863_v57 = vadd.f32 %v7554_v26, %v1925_v4  ;;  %v1927_v21 = vpop.f32.mrb[47].mxu0 }
 0x31e   : > { %v9346_v22 = vmax.f32 %v7858_v7, 0.0  ;;  %v7871_v39 = vadd.f32 %v7561_v29, %v1927_v21 }
 0x31f   : > { %9402 = vst [vmem:[#allocation7_spill] sm:$0xff] %v7863_v57  ;;  %v9347_v49 = vmax.f32 %v7863_v57, 0.0 }
 0x320   : > { %9403 = vst [vmem:[#allocation8_spill] sm:$0xff] %v7871_v39  ;;  %v6335_v4 = vpack.i.bf16 %v9346_v22, %v9345_v5  ;;  %v9348_v11 = vmax.f32 %v7871_v39, 0.0  ;;  %6341 = vrot.lane.b32.xlu1 %v6340_v17, %s6870_s14  ;;  %v6345_v5 = vpack.i.bf16 %v9351_v38, %v9350_v16 }
 0x322   : > { %v6350_v21 = vpack.i.bf16 %v9348_v11, %v9347_v49  ;;  %6336 = vrot.lane.b32.xlu0 %v6335_v4, %s6870_s14  ;;  %v1931_v15 = vpop.f32.mrb[48].mxu0 }
 0x323   : > { %v7888_v0 = vadd.f32 %v7554_v26, %v1931_v15  ;;  %v1933_v46 = vpop.f32.mrb[49].mxu0 }
 0x324   : > { %v7895_v22 = vadd.f32 %v7561_v29, %v1933_v46  ;;  %6351 = vrot.lane.b32.xlu1 %v6350_v21, %s6870_s14  ;;  %v1935_v17 = vpop.f32.mrb[50].mxu0 }
 0x325   : > { %9404 = vst [vmem:[#allocation9_spill] sm:$0xff] %v7888_v0  ;;  %v9354_v49 = vmax.f32 %v7888_v0, 0.0  ;;  %v7900_v4 = vadd.f32 %v7554_v26, %v1935_v17  ;;  %v1937_v11 = vpop.f32.mrb[51].mxu0  ;;  %v9414_v0 = vmax.f32 %v7567_v34, 0.0 }
 0x326   : > { %9405 = vst [vmem:[#allocation10_spill] sm:$0xff] %v7895_v22  ;;  %v9355_v15 = vmax.f32 %v7895_v22, 0.0  ;;  %v7904_v50 = vadd.f32 %v7561_v29, %v1937_v11  ;;  %6346 = vrot.lane.b32.xlu0 %v6345_v5, %s6870_s14  ;;  %v9416_v22 = vmax.f32 %v7564_v32, 0.0 }
 0x327   : > { %9406 = vst [vmem:[#allocation11_spill] sm:$0xff] %v7900_v4  ;;  %v9358_v16 = vmax.f32 %v7900_v4, 0.0 }
 0x328   : > { %9407 = vst [vmem:[#allocation12_spill] sm:$0xff] %v7904_v50  ;;  %v6355_v46 = vpack.i.bf16 %v9355_v15, %v9354_v49  ;;  %v9359_v21 = vmax.f32 %v7904_v50, 0.0 }
 0x32a   : > { %v6360_v17 = vpack.i.bf16 %v9359_v21, %v9358_v16  ;;  %6356 = vrot.lane.b32.xlu0 %v6355_v46, %s6870_s14  ;;  %v1941_v11 = vpop.f32.mrb[52].mxu0 }
 0x32b   : > { %v7919_v38 = vadd.f32 %v7554_v26, %v1941_v11  ;;  %v1943_v5 = vpop.f32.mrb[53].mxu0 }
 0x32c   : > { %v7922_v14 = vadd.f32 %v7561_v29, %v1943_v5  ;;  %6361 = vrot.lane.b32.xlu1 %v6360_v17, %s6870_s14  ;;  %v1945_v49 = vpop.f32.mrb[54].mxu0 }
 0x32d   : > { %9408 = vst [vmem:[#allocation13_spill] sm:$0xff] %v7919_v38  ;;  %v9362_v15 = vmax.f32 %v7919_v38, 0.0  ;;  %v7927_v4 = vadd.f32 %v7554_v26, %v1945_v49  ;;  %v1947_v50 = vpop.f32.mrb[55].mxu0 }
 0x32e   : > { %9409 = vst [vmem:[#allocation14_spill] sm:$0xff] %v7922_v14  ;;  %v9363_v16 = vmax.f32 %v7922_v14, 0.0  ;;  %v7931_v46 = vadd.f32 %v7561_v29, %v1947_v50 }
 0x32f   : > { %9410 = vst [vmem:[#allocation15_spill] sm:$0xff] %v7927_v4  ;;  %v9367_v11 = vmax.f32 %v7927_v4, 0.0  ;;  %v9412_v4 = vmax.f32 %v7581_v43, 0.0  ;;  %v9417_v43 = vmax.f32 %v7596_v62, 0.0 }
 0x330   : > { %9411 = vst [vmem:[#allocation16_spill] sm:$0xff] %v7931_v46  ;;  %v6365_v5 = vpack.i.bf16 %v9363_v16, %v9362_v15  ;;  %v9368_v17 = vmax.f32 %v7931_v46, 0.0 }
 0x332   : > { %v6370_v26 = vpack.i.bf16 %v9368_v17, %v9367_v11  ;;  %6366 = vrot.lane.b32.xlu0 %v6365_v5, %s6870_s14  ;;  %v9413_v5 = vmax.f32 %v7574_v40, 0.0 }
 0x334   : > { %6371 = vrot.lane.b32.xlu1 %v6370_v26, %s6870_s14  ;;  %s6871_s14 = smov 112  }
 0x344   : > { %v6237_v29 = vpop.permute.xlu0 %6236 }
 0x345   : > { %v6239_v49 = vunpack.i.h.bf16 %v6237_v29  ;;  %v6238_v21 = vunpack.i.l.bf16 %v6237_v29  ;;  %v9415_v29 = vmax.f32 %v7603_v6, 0.0 }
 0x347   : > { %v2301_v14 = vsel %vm2298_vm2, %v6238_v21, %v6239_v49  ;;  %v7953_v39 = vmax.f32 %v9414_v0, %v6239_v49 }
 0x348   : > { %v6242_v50 = vpop.permute.xlu0 %6241  ;;  %v7960_v21 = vmax.f32 %v9416_v22, %v2301_v14  ;;  %v6618_v14 = vld [vmem:[%s9291_s3] ss:$8 sps:$4 sm:$0xff]   ;;  %v6623_v22 = vld [vmem:[%s9291_s3 + $0x14] ss:$8 sps:$4 sm:$0xff]  }
 0x349   : > { %v6244_v57 = vunpack.i.h.bf16 %v6242_v50  ;;  %v6243_v38 = vunpack.i.l.bf16 %v6242_v50 }
 0x34b   : > { %v2302_v15 = vsel %vm2298_vm2, %v6243_v38, %v6244_v57  ;;  %v2390_v46 = vmax.f32 %v9412_v4, %v6244_v57 }
 0x34c   : > { %v6247_v16 = vpop.permute.xlu1 %6246  ;;  %v2389_v26 = vmax.f32 %v9413_v5, %v2302_v15 }
 0x34d   : > { %v6249_v11 = vunpack.i.h.bf16 %v6247_v16  ;;  %v6248_v17 = vunpack.i.l.bf16 %v6247_v16  ;;  %v2444_v15 = vmax.f32 %v7953_v39, %v2390_v46 }
 0x34e   : > { %v2443_v0 = vmax.f32 %v7960_v21, %v2389_v26 }
 0x34f   : > { %v2392_v50 = vmax.f32 %v9415_v29, %v6249_v11  ;;  %v2303_v38 = vsel %vm2298_vm2, %v6248_v17, %v6249_v11  ;;  %v9419_v29 = vmax.f32 %v7607_v9, 0.0  ;;  %v6626_v9 = vld [vmem:[%s9291_s3 + $0x24] ss:$8 sps:$4 sm:$0xff]  }
 0x350   : > { %v2391_v57 = vmax.f32 %v9417_v43, %v2303_v38  ;;  %v6252_v16 = vpop.permute.xlu1 %6251 }
 0x351   : > { %v6254_v4 = vunpack.i.h.bf16 %v6252_v16  ;;  %v6253_v40 = vunpack.i.l.bf16 %v6252_v16  ;;  %v2446_v34 = vmax.f32 %v2390_v46, %v2392_v50  ;;  %v9418_v46 = vmax.f32 %v7611_v13, 0.0  ;;  %v6621_v13 = vld [vmem:[%s9291_s3 + $0x10] ss:$8 sps:$4 sm:$0xff]  }
 0x352   : > { %v2445_v6 = vmax.f32 %v2389_v26, %v2391_v57  ;;  %v9420_v16 = vmax.f32 %v7632_v53, 0.0 }
 0x353   : > { %v2304_v49 = vsel %vm2298_vm2, %v6253_v40, %v6254_v4  ;;  %v7967_v11 = vpack.c.bf16 %v2446_v34, %v2444_v15  ;;  %v2394_v17 = vmax.f32 %v9418_v46, %v6254_v4  ;;  %v9421_v4 = vmax.f32 %v7625_v44, 0.0 }
 0x354   : > { %v6257_v32 = vpop.permute.xlu0 %6256  ;;  %v7972_v62 = vpack.c.bf16 %v2445_v6, %v2443_v0  ;;  %v2393_v38 = vmax.f32 %v9419_v29, %v2304_v49 }
 0x355   : > { %v6259_v5 = vunpack.i.h.bf16 %v6257_v32  ;;  %v6258_v26 = vunpack.i.l.bf16 %v6257_v32  ;;  %5437 = vmatprep.mubr.msk.bf16.mxu1 %vm2669_vm3, %v7967_v11  ;;  %v2448_v49 = vmax.f32 %v2392_v50, %v2394_v17  ;;  %v6629_v50 = vld [vmem:[%s9291_s3 + $0x34] ss:$8 sps:$4 sm:$0xff]  }
 0x356   : > { %2740 = vmatmul.mubr.bf16.vlgmr.msra.gmra.mrb[0].mxu1 %v7972_v62  ;;  %v6262_v43 = vpop.permute.xlu1 %6261  ;;  %v2447_v32 = vmax.f32 %v2391_v57, %v2393_v38  ;;  %v9422_v57 = vmax.f32 %v7640_v1, 0.0  ;;  %v6627_v1 = vld [vmem:[%s9291_s3 + $0x30] ss:$8 sps:$4 sm:$0xff]  }
 0x357   : > { %v2396_v40 = vmax.f32 %v9420_v16, %v6259_v5  ;;  %v2305_v15 = vsel %vm2298_vm2, %v6258_v26, %v6259_v5  ;;  %v6264_v34 = vunpack.i.h.bf16 %v6262_v43  ;;  %v6263_v0 = vunpack.i.l.bf16 %v6262_v43  ;;  %2951 = vmatpush1.bf16.msra.mxu1 %v6618_v14  ;;  %v6624_v14 = vld [vmem:[%s9291_s3 + $0x20] ss:$8 sps:$4 sm:$0xff]  }
 0x358   : > { %v2395_v6 = vmax.f32 %v9421_v4, %v2305_v15  ;;  %2952 = vmatprep.subr.bf16.mxu1 %v6623_v22  ;;  %v9423_v43 = vmax.f32 %v7636_v60, 0.0  ;;  %v6632_v60 = vld [vmem:[%s9291_s3 + $0x44] ss:$8 sps:$4 sm:$0xff]  }
 0x359   : > { %v2450_v53 = vmax.f32 %v2394_v17, %v2396_v40  ;;  %v2306_v5 = vsel %vm2298_vm2, %v6263_v0, %v6264_v34  ;;  %v2398_v22 = vmax.f32 %v9422_v57, %v6264_v34  ;;  %v9424_v0 = vmax.f32 %v7658_v25, 0.0 }
 0x35a   : > { %v2449_v46 = vmax.f32 %v2393_v38, %v2395_v6  ;;  %v2397_v16 = vmax.f32 %v9423_v43, %v2306_v5  ;;  %v9425_v34 = vmax.f32 %v7655_v18, 0.0  ;;  %v9427_v43 = vmax.f32 %v7663_v33, 0.0  ;;  %v6638_v33 = vld [vmem:[%s9291_s3 + $0x64] ss:$8 sps:$4 sm:$0xff]  }
 0x35b   : > { %v7996_v26 = vpack.c.bf16 %v2450_v53, %v2448_v49  ;;  %2953 = vmatpush1.bf16.msra.mxu1 %v6621_v13 }
 0x35c   : > { %v6267_v44 = vpop.permute.xlu0 %6266  ;;  %v8001_v29 = vpack.c.bf16 %v2449_v46, %v2447_v32  ;;  %2954 = vmatprep.subr.bf16.mxu1 %v6626_v9  ;;  %v2452_v32 = vmax.f32 %v2396_v40, %v2398_v22  ;;  %v2451_v46 = vmax.f32 %v2395_v6, %v2397_v16  ;;  %v6635_v40 = vld [vmem:[%s9291_s3 + $0x54] ss:$8 sps:$4 sm:$0xff]   ;;  %v9426_v6 = vmax.f32 %v7667_v41, 0.0  ;;  %v6633_v41 = vld [vmem:[%s9291_s3 + $0x50] ss:$8 sps:$4 sm:$0xff]  }
 0x35d   : > { %v6269_v17 = vunpack.i.h.bf16 %v6267_v44  ;;  %v6268_v38 = vunpack.i.l.bf16 %v6267_v44  ;;  %5438 = vmatprep.mubr.msk.bf16.mxu1 %vm2669_vm3, %v7996_v26 }
 0x35e   : > { %2750 = vmatmul.mubr.bf16.gmra.mrb[4].mxu1 %v8001_v29  ;;  %v6272_v15 = vpop.permute.xlu1 %6271 }
 0x35f   : > { %v2400_v13 = vmax.f32 %v9424_v0, %v6269_v17  ;;  %v2307_v4 = vsel %vm2298_vm2, %v6268_v38, %v6269_v17  ;;  %v6274_v9 = vunpack.i.h.bf16 %v6272_v15  ;;  %v6273_v49 = vunpack.i.l.bf16 %v6272_v15  ;;  %2955 = vmatpush1.bf16.msra.mxu1 %v6624_v14  ;;  %v6630_v14 = vld [vmem:[%s9291_s3 + $0x40] ss:$8 sps:$4 sm:$0xff]  }
 0x360   : > { %v2399_v53 = vmax.f32 %v9425_v34, %v2307_v4  ;;  %2956 = vmatprep.subr.bf16.mxu1 %v6629_v50  ;;  %v9428_v0 = vmax.f32 %v7684_v63, 0.0 }
 0x361   : > { %v2454_v25 = vmax.f32 %v2398_v22, %v2400_v13  ;;  %v2308_v44 = vsel %vm2298_vm2, %v6273_v49, %v6274_v9  ;;  %v2402_v50 = vmax.f32 %v9426_v6, %v6274_v9  ;;  %v9429_v9 = vmax.f32 %v7681_v58, 0.0 }
 0x362   : > { %v2453_v5 = vmax.f32 %v2397_v16, %v2399_v53  ;;  %v2401_v16 = vmax.f32 %v9427_v43, %v2308_v44 }
 0x363   : > { %v8025_v57 = vpack.c.bf16 %v2454_v25, %v2452_v32  ;;  %2957 = vmatpush1.bf16.msra.mxu1 %v6627_v1  ;;  %v2456_v32 = vmax.f32 %v2400_v13, %v2402_v50  ;;  %v6641_v13 = vld [vmem:[%s9291_s3 + $0x74] ss:$8 sps:$4 sm:$0xff]  }
 0x364   : > { %v6277_v18 = vpop.permute.xlu0 %6276  ;;  %v8030_v17 = vpack.c.bf16 %v2453_v5, %v2451_v46  ;;  %2958 = vmatprep.subr.bf16.mxu1 %v6632_v60  ;;  %v2455_v25 = vmax.f32 %v2399_v53, %v2401_v16  ;;  %v9430_v53 = vmax.f32 %v7693_v36, 0.0  ;;  %v6639_v36 = vld [vmem:[%s9291_s3 + $0x70] ss:$8 sps:$4 sm:$0xff]  }
 0x365   : > { %v6279_v22 = vunpack.i.h.bf16 %v6277_v18  ;;  %v6278_v38 = vunpack.i.l.bf16 %v6277_v18  ;;  %5439 = vmatprep.mubr.msk.bf16.mxu1 %vm2669_vm3, %v8025_v57 }
 0x366   : > { %2760 = vmatmul.mubr.bf16.gmra.mrb[8].mxu1 %v8030_v17  ;;  %v6282_v15 = vpop.permute.xlu1 %6281 }
 0x367   : > { %v2404_v4 = vmax.f32 %v9428_v0, %v6279_v22  ;;  %v2309_v49 = vsel %vm2298_vm2, %v6278_v38, %v6279_v22  ;;  %v6284_v1 = vunpack.i.h.bf16 %v6282_v15  ;;  %v6283_v34 = vunpack.i.l.bf16 %v6282_v15  ;;  %2959 = vmatpush1.bf16.msra.mxu1 %v6630_v14  ;;  %v6636_v14 = vld [vmem:[%s9291_s3 + $0x60] ss:$8 sps:$4 sm:$0xff]  }
 0x368   : > { %v2403_v60 = vmax.f32 %v9429_v9, %v2309_v49  ;;  %2960 = vmatprep.subr.bf16.mxu1 %v6635_v40  ;;  %v9431_v22 = vmax.f32 %v7689_v10, 0.0  ;;  %v6644_v10 = vld [vmem:[%s9291_s3 + $0x84] ss:$8 sps:$4 sm:$0xff]  }
 0x369   : > { %v2458_v63 = vmax.f32 %v2402_v50, %v2404_v4  ;;  %v2310_v44 = vsel %vm2298_vm2, %v6283_v34, %v6284_v1  ;;  %v2406_v40 = vmax.f32 %v9430_v53, %v6284_v1  ;;  %v9433_v1 = vmax.f32 %v7707_v12, 0.0  ;;  %v2541_v53 = vld [vmem:[%s9291_s3 + $0xa0] sm:$0x11] }
 0x36a   : > { %v2457_v46 = vmax.f32 %v2401_v16, %v2403_v60  ;;  %v2405_v38 = vmax.f32 %v9431_v22, %v2310_v44  ;;  %v9432_v16 = vmax.f32 %v7710_v23, 0.0  ;;  %v9436_v22 = vmax.f32 %v7736_v54, 0.0 }
 0x36b   : > { %v8053_v5 = vpack.c.bf16 %v2458_v63, %v2456_v32  ;;  %2961 = vmatpush1.bf16.msra.mxu1 %v6633_v41  ;;  %v2460_v9 = vmax.f32 %v2404_v4, %v2406_v40  ;;  %v6647_v4 = vld [vmem:[%s9291_s3 + $0x94] ss:$8 sps:$4 sm:$0xff]  }
 0x36c   : > { %v8059_v58 = vpack.c.bf16 %v2457_v46, %v2455_v25  ;;  %v6287_v18 = vpop.permute.xlu0 %6286  ;;  %2962 = vmatprep.subr.bf16.mxu1 %v6638_v33  ;;  %v2459_v33 = vmax.f32 %v2403_v60, %v2405_v38  ;;  %v6642_v46 = vld [vmem:[%s9291_s3 + $0x80] ss:$8 sps:$4 sm:$0xff]   ;;  %v9434_v60 = vmax.f32 %v7719_v59, 0.0 }
 0x36d   : > { %v6289_v6 = vunpack.i.h.bf16 %v6287_v18  ;;  %v6288_v50 = vunpack.i.l.bf16 %v6287_v18  ;;  %5440 = vmatprep.mubr.msk.bf16.mxu1 %vm2669_vm3, %v8053_v5 }
 0x36e   : > { %2770 = vmatmul.mubr.bf16.gmra.mrb[12].mxu1 %v8059_v58  ;;  %v6292_v43 = vpop.permute.xlu1 %6291 }
 0x36f   : > { %v2408_v15 = vmax.f32 %v9432_v16, %v6289_v6  ;;  %v2311_v0 = vsel %vm2298_vm2, %v6288_v50, %v6289_v6  ;;  %v6294_v49 = vunpack.i.h.bf16 %v6292_v43  ;;  %v6293_v34 = vunpack.i.l.bf16 %v6292_v43  ;;  %2963 = vmatpush1.bf16.msra.mxu1 %v6636_v14 }
 0x370   : > { %v2407_v41 = vmax.f32 %v9433_v1, %v2311_v0  ;;  %2964 = vmatprep.subr.bf16.mxu1 %v6641_v13  ;;  %v6645_v0 = vld [vmem:[%s9291_s3 + $0x90] ss:$8 sps:$4 sm:$0xff]  }
 0x371   : > { %v2462_v23 = vmax.f32 %v2406_v40, %v2408_v15  ;;  %v2312_v25 = vsel %vm2298_vm2, %v6293_v34, %v6294_v49  ;;  %v2410_v14 = vmax.f32 %v9434_v60, %v6294_v49  ;;  %v9435_v40 = vmax.f32 %v7715_v47, 0.0 }
 0x372   : > { %v2461_v32 = vmax.f32 %v2405_v38, %v2407_v41  ;;  %v9437_v49 = vmax.f32 %v7733_v20, 0.0  ;;  %v5468_v47 = vcombine.high %v2541_v53, %v2541_v53  ;;  %v9439_v60 = vmax.f32 %v7741_v2, 0.0 }
 0x373   : > { %v8082_v63 = vpack.c.bf16 %v2462_v23, %v2460_v9  ;;  %2965 = vmatpush1.bf16.msra.mxu1 %v6639_v36  ;;  %v2409_v6 = vmax.f32 %v9435_v40, %v2312_v25  ;;  %v5467_v36 = vcombine.low %v2541_v53, %v2541_v53  ;;  %v2464_v1 = vmax.f32 %v2408_v15, %v2410_v14 }
 0x374   : > { %v8088_v12 = vpack.c.bf16 %v2461_v32, %v2459_v33  ;;  %v6297_v44 = vpop.permute.xlu0 %6296  ;;  %2966 = vmatprep.subr.bf16.mxu1 %v6644_v10  ;;  %v9438_v15 = vmax.f32 %v7745_v19, 0.0  ;;  %v9441_v19 = vmax.f32 %v7759_v35, 0.0  ;;  %v9443_v35 = vmax.f32 %v7767_v56, 0.0 }
 0x375   : > { %v6299_v18 = vunpack.i.h.bf16 %v6297_v44  ;;  %v6298_v13 = vunpack.i.l.bf16 %v6297_v44  ;;  %5441 = vmatprep.mubr.msk.bf16.mxu1 %vm2669_vm3, %v8082_v63  ;;  %v2463_v9 = vmax.f32 %v2407_v41, %v2409_v6  ;;  %v2945_v20 = vsel %vm2700_vm1, %v5467_v36, 0 }
 0x376   : > { %2780 = vmatmul.mubr.bf16.gmra.mrb[16].mxu1 %v8088_v12  ;;  %v6302_v50 = vpop.permute.xlu1 %6301  ;;  %v9442_v36 = vmax.f32 %v7771_v28, 0.0  ;;  %v9445_v28 = vmax.f32 %v7785_v30, 0.0  ;;  %v9447_v30 = vmax.f32 %v7793_v51, 0.0 }
 0x377   : > { %v2412_v38 = vmax.f32 %v9436_v22, %v6299_v18  ;;  %v2313_v59 = vsel %vm2298_vm2, %v6298_v13, %v6299_v18  ;;  %v6304_v43 = vunpack.i.h.bf16 %v6302_v50  ;;  %v6303_v16 = vunpack.i.l.bf16 %v6302_v50  ;;  %2967 = vmatpush1.bf16.msra.mxu1 %v6642_v46  ;;  %v6652_v46 = vld [vmem:[%s9291_s3 + $0x154] ss:$8 sps:$4 sm:$0xff]  }
 0x378   : > { %v2411_v34 = vmax.f32 %v9437_v49, %v2313_v59  ;;  %2968 = vmatprep.subr.bf16.mxu1 %v6647_v4  ;;  %v9440_v13 = vmax.f32 %v7762_v48, 0.0 }
 0x379   : > { %v2466_v10 = vmax.f32 %v2410_v14, %v2412_v38  ;;  %v2314_v33 = vsel %vm2298_vm2, %v6303_v16, %v6304_v43  ;;  %v2414_v41 = vmax.f32 %v9438_v15, %v6304_v43 }
 0x37a   : > { %v2465_v54 = vmax.f32 %v2409_v6, %v2411_v34  ;;  %v2413_v14 = vmax.f32 %v9439_v60, %v2314_v33 }
 0x37b   : > { %v8111_v23 = vpack.c.bf16 %v2466_v10, %v2464_v1  ;;  %2969 = vmatpush1.bf16.msra.mxu1 %v6645_v0  ;;  %v2468_v59 = vmax.f32 %v2412_v38, %v2414_v41 }
 0x37c   : > { %v8114_v32 = vpack.c.bf16 %v2465_v54, %v2463_v9  ;;  %v6307_v25 = vpop.permute.xlu0 %6306  ;;  %5469 = vmatprep.subr.msk.bf16.mxu1 %vm2700_vm1, %v5468_v47  ;;  %v2467_v16 = vmax.f32 %v2411_v34, %v2413_v14  ;;  %v9444_v54 = vmax.f32 %v7788_v42, 0.0  ;;  %v9446_v42 = vmax.f32 %v7797_v55, 0.0 }
 0x37d   : > { %v6309_v44 = vunpack.i.h.bf16 %v6307_v25  ;;  %v6308_v4 = vunpack.i.l.bf16 %v6307_v25  ;;  %5442 = vmatprep.mubr.msk.bf16.mxu1 %vm2669_vm3, %v8111_v23  ;;  %v9449_v55 = vmax.f32 %v7811_v31, 0.0  ;;  %v9451_v31 = vmax.f32 %v7819_v8, 0.0 }
 0x37e   : > { %2790 = vmatmul.mubr.bf16.gmra.mrb[20].mxu1 %v8114_v32  ;;  %v6312_v18 = vpop.permute.xlu1 %6311 }
 0x37f   : > { %v2416_v53 = vmax.f32 %v9440_v13, %v6309_v44  ;;  %v2315_v40 = vsel %vm2298_vm2, %v6308_v4, %v6309_v44  ;;  %v6314_v6 = vunpack.i.h.bf16 %v6312_v18  ;;  %v6313_v50 = vunpack.i.l.bf16 %v6312_v18  ;;  %2971 = vmatpush1.bf16.msra.mxu1 %v2945_v20 }
 0x380   : > { %v2415_v22 = vmax.f32 %v9441_v19, %v2315_v40  ;;  %3215 = vmatprep.subr.bf16.mxu1 %v6652_v46 }
 0x381   : > { %v2470_v43 = vmax.f32 %v2414_v41, %v2416_v53  ;;  %v2316_v49 = vsel %vm2298_vm2, %v6313_v50, %v6314_v6  ;;  %v2418_v1 = vmax.f32 %v9442_v36, %v6314_v6 }
 0x382   : > { %v2469_v2 = vmax.f32 %v2413_v14, %v2415_v22  ;;  %v2417_v38 = vmax.f32 %v9443_v35, %v2316_v49 }
 0x383   : > { %v8133_v0 = vpack.c.bf16 %v2470_v43, %v2468_v59  ;;  %v2472_v41 = vmax.f32 %v2416_v53, %v2418_v1 }
 0x384   : > { %v8136_v47 = vpack.c.bf16 %v2469_v2, %v2467_v16  ;;  %v6317_v48 = vpop.permute.xlu0 %6316  ;;  %v2471_v4 = vmax.f32 %v2415_v22, %v2417_v38  ;;  %v9448_v22 = vmax.f32 %v7814_v3, 0.0 }
 0x385   : > { %v6319_v10 = vunpack.i.h.bf16 %v6317_v48  ;;  %v6318_v9 = vunpack.i.l.bf16 %v6317_v48  ;;  %5443 = vmatprep.mubr.msk.bf16.mxu1 %vm2669_vm3, %v8133_v0 }
 0x386   : > { %2800 = vmatmul.mubr.bf16.gmra.mrb[24].mxu1 %v8136_v47  ;;  %v6322_v34 = vpop.permute.xlu1 %6321 }
 0x387   : > { %v2420_v33 = vmax.f32 %v9444_v54, %v6319_v10  ;;  %v2317_v25 = vsel %vm2298_vm2, %v6318_v9, %v6319_v10  ;;  %v6324_v20 = vunpack.i.h.bf16 %v6322_v34  ;;  %v6323_v46 = vunpack.i.l.bf16 %v6322_v34 }
 0x388   : > { %v2419_v15 = vmax.f32 %v9445_v28, %v2317_v25  ;;  %v9450_v34 = vmax.f32 %v7831_v61, 0.0  ;;  %v9453_v61 = vmax.f32 %v7847_v45, 0.0 }
 0x389   : > { %v2474_v44 = vmax.f32 %v2418_v1, %v2420_v33  ;;  %v2318_v56 = vsel %vm2298_vm2, %v6323_v46, %v6324_v20  ;;  %v2422_v40 = vmax.f32 %v9446_v42, %v6324_v20 }
 0x38a   : > { %v2473_v60 = vmax.f32 %v2417_v38, %v2419_v15  ;;  %v2421_v53 = vmax.f32 %v9447_v30, %v2318_v56 }
 0x38b   : > { %v8150_v14 = vpack.c.bf16 %v2474_v44, %v2472_v41  ;;  %v2476_v48 = vmax.f32 %v2420_v33, %v2422_v40 }
 0x38c   : > { %v8153_v18 = vpack.c.bf16 %v2473_v60, %v2471_v4  ;;  %v6327_v13 = vpop.permute.xlu0 %6326  ;;  %v2475_v1 = vmax.f32 %v2419_v15, %v2421_v53  ;;  %v9452_v15 = vmax.f32 %v7858_v7, 0.0 }
 0x38d   : > { %v6329_v6 = vunpack.i.h.bf16 %v6327_v13  ;;  %v6328_v50 = vunpack.i.l.bf16 %v6327_v13  ;;  %5444 = vmatprep.mubr.msk.bf16.mxu1 %vm2669_vm3, %v8150_v14 }
 0x38e   : > { %2810 = vmatmul.mubr.bf16.gmra.mrb[28].mxu1 %v8153_v18  ;;  %v6332_v19 = vpop.permute.xlu1 %6331 }
 0x38f   : > { %v2424_v59 = vmax.f32 %v9448_v22, %v6329_v6  ;;  %v2319_v43 = vsel %vm2298_vm2, %v6328_v50, %v6329_v6  ;;  %v6334_v16 = vunpack.i.h.bf16 %v6332_v19  ;;  %v6333_v2 = vunpack.i.l.bf16 %v6332_v19 }
 0x390   : > { %v2423_v49 = vmax.f32 %v9449_v55, %v2319_v43  ;;  %v9454_v50 = vmax.f32 %v7827_v24, 0.0  ;;  %v9457_v24 = vmax.f32 %v7823_v27, 0.0  ;;  %v6653_v27 = vld [vmem:[%s9291_s3 + $0x160] ss:$8 sps:$4 sm:$0xff]  }
 0x391   : > { %v2478_v36 = vmax.f32 %v2422_v40, %v2424_v59  ;;  %v2320_v51 = vsel %vm2298_vm2, %v6333_v2, %v6334_v16  ;;  %v2426_v54 = vmax.f32 %v9450_v34, %v6334_v16  ;;  %v9456_v2 = vmax.f32 %v7851_v52, 0.0  ;;  %v6665_v34 = vld [vmem:[%s9291_s3 + $0x1a0] ss:$8 sps:$4 sm:$0xff]  }
 0x392   : > { %v2477_v10 = vmax.f32 %v2421_v53, %v2423_v49  ;;  %v6342_v38 = vpop.permute.xlu1 %6341  ;;  %v2425_v33 = vmax.f32 %v9451_v31, %v2320_v51  ;;  %v9455_v53 = vmax.f32 %v7855_v37, 0.0  ;;  %v6659_v51 = vld [vmem:[%s9291_s3 + $0x180] ss:$8 sps:$4 sm:$0xff]  }
 0x393   : > { %v8167_v9 = vpack.c.bf16 %v2478_v36, %v2476_v48  ;;  %v6344_v46 = vunpack.i.h.bf16 %v6342_v38  ;;  %v6343_v28 = vunpack.i.l.bf16 %v6342_v38  ;;  %v2480_v56 = vmax.f32 %v2424_v59, %v2426_v54  ;;  %v6664_v38 = vld [vmem:[%s9291_s3 + $0x194] ss:$8 sps:$4 sm:$0xff]   ;;  %v6671_v31 = vld [vmem:[%s9291_s3 + $0x1c0] ss:$8 sps:$4 sm:$0xff]  }
 0x394   : > { %v8170_v35 = vpack.c.bf16 %v2477_v10, %v2475_v1  ;;  %v6337_v3 = vpop.permute.xlu0 %6336  ;;  %v2479_v42 = vmax.f32 %v2423_v49, %v2425_v33  ;;  %v6655_v1 = vld [vmem:[%s9291_s3 + $0x164] ss:$8 sps:$4 sm:$0xff]   ;;  %v6656_v10 = vld [vmem:[%s9291_s3 + $0x170] ss:$8 sps:$4 sm:$0xff]  }
 0x395   : > { %v6339_v25 = vunpack.i.h.bf16 %v6337_v3  ;;  %v6338_v20 = vunpack.i.l.bf16 %v6337_v3  ;;  %5445 = vmatprep.mubr.msk.bf16.mxu1 %vm2669_vm3, %v8167_v9  ;;  %v2384_v7 = vmax.f32 %v9454_v50, %v6344_v46  ;;  %v2299_v30 = vsel %vm2298_vm2, %v6343_v28, %v6344_v46  ;;  %v6662_v3 = vld [vmem:[%s9291_s3 + $0x190] ss:$8 sps:$4 sm:$0xff]   ;;  %v6679_v28 = vld [vmem:[%s9291_s3 + $0x1e4] ss:$8 sps:$4 sm:$0xff]  }
 0x396   : > { %2820 = vmatmul.mubr.bf16.gmra.mrb[32].mxu1 %v8170_v35  ;;  %v2383_v49 = vmax.f32 %v9457_v24, %v2299_v30  ;;  %v6674_v46 = vld [vmem:[%s9291_s3 + $0x1d0] ss:$8 sps:$4 sm:$0xff]  }
 0x397   : > { %v8181_v41 = vmax.f32 %v9452_v15, %v6339_v25  ;;  %v2321_v44 = vsel %vm2298_vm2, %v6338_v20, %v6339_v25  ;;  %v6668_v25 = vld [vmem:[%s9291_s3 + $0x1b0] ss:$8 sps:$4 sm:$0xff]   ;;  %v6673_v20 = vld [vmem:[%s9291_s3 + $0x1c4] ss:$8 sps:$4 sm:$0xff]  }
 0x398   : > { %v8186_v4 = vmax.f32 %v9453_v61, %v2321_v44  ;;  %v6347_v60 = vpop.permute.xlu0 %6346  ;;  %v5500_v15 = vld [vmem:[%s9291_s3 + $0x1f0] sm:$0x11]  ;;  %v6677_v44 = vld [vmem:[%s9291_s3 + $0x1e0] ss:$8 sps:$4 sm:$0xff]  }
 0x399   : > { %v2482_v13 = vmax.f32 %v2426_v54, %v8181_v41  ;;  %v6349_v8 = vunpack.i.h.bf16 %v6347_v60  ;;  %v6348_v6 = vunpack.i.l.bf16 %v6347_v60  ;;  %v6670_v54 = vld [vmem:[%s9291_s3 + $0x1b4] ss:$8 sps:$4 sm:$0xff]   ;;  %v5522_v61 = vcombine.high %v5500_v15, %v5500_v15  ;;  %v6691_v50 = vld [vmem:[%s9291_s3 + $0x228] ss:$8 sps:$4 sm:$0xff]   ;;  %v6694_v30 = vld [vmem:[%s9291_s3 + $0x238] ss:$8 sps:$4 sm:$0xff]  }
 0x39a   : > { %v2481_v40 = vmax.f32 %v2425_v33, %v8186_v4  ;;  %v6676_v33 = vld [vmem:[%s9291_s3 + $0x1d4] ss:$8 sps:$4 sm:$0xff]   ;;  %v5521_v60 = vcombine.low %v5500_v15, %v5500_v15  ;;  %v6706_v24 = vld [vmem:[%s9291_s3 + $0x278] ss:$8 sps:$4 sm:$0xff]   ;;  %v9462_v15 = vld [vmem:[#allocation9_spill] sm:$0xff] }
 0x39b   : > { %v2386_v19 = vmax.f32 %v9455_v53, %v6349_v8  ;;  %v8195_v45 = vpack.c.bf16 %v2482_v13, %v2480_v56  ;;  %v2300_v22 = vsel %vm2298_vm2, %v6348_v6, %v6349_v8  ;;  %v6684_v13 = vld [vmem:[%s9291_s3 + $0x1fc] ss:$8 sps:$4 sm:$0xff]   ;;  %v6682_v8 = vld [vmem:[%s9291_s3 + $0x1f8] ss:$8 sps:$4 sm:$0xff]   ;;  %v6699_v53 = vld [vmem:[%s9291_s3 + $0x24c] ss:$8 sps:$4 sm:$0xff]  }
 0x39c   : > { %v8198_v59 = vpack.c.bf16 %v2481_v40, %v2479_v42  ;;  %v2385_v55 = vmax.f32 %v9456_v2, %v2300_v22  ;;  %v3210_v56 = vsel %vm2700_vm1, %v5521_v60, 0  ;;  %v6687_v42 = vld [vmem:[%s9291_s3 + $0x20c] ss:$8 sps:$4 sm:$0xff]   ;;  %v6685_v40 = vld [vmem:[%s9291_s3 + $0x208] ss:$8 sps:$4 sm:$0xff]  }
 0x39d   : > { %v2440_v43 = vmax.f32 %v2384_v7, %v2386_v19  ;;  %v2442_v16 = vmax.f32 %v2386_v19, %v7953_v39  ;;  %5446 = vmatprep.mubr.msk.bf16.mxu1 %vm2669_vm3, %v8195_v45  ;;  %v6650_v39 = vld [vmem:[%s9291_s3 + $0x150] ss:$8 sps:$4 sm:$0xff]   ;;  %v6696_v7 = vld [vmem:[%s9291_s3 + $0x23c] ss:$8 sps:$4 sm:$0xff]  }
 0x39e   : > { %2828 = vmatmul.mubr.bf16.gmra.mrb[36].mxu1 %v8198_v59  ;;  %v2439_v37 = vmax.f32 %v2383_v49, %v2385_v55  ;;  %v2441_v48 = vmax.f32 %v2385_v55, %v7960_v21  ;;  %v6658_v21 = vld [vmem:[%s9291_s3 + $0x174] ss:$8 sps:$4 sm:$0xff]   ;;  %v6688_v6 = vld [vmem:[%s9291_s3 + $0x218] ss:$8 sps:$4 sm:$0xff]   ;;  %v6697_v19 = vld [vmem:[%s9291_s3 + $0x248] ss:$8 sps:$4 sm:$0xff]  }
 0x39f   : > { %v2494_v36 = vpack.c.bf16 %v2442_v16, %v2440_v43  ;;  %v6702_v22 = vld [vmem:[%s9291_s3 + $0x25c] ss:$8 sps:$4 sm:$0xff]   ;;  %v6700_v43 = vld [vmem:[%s9291_s3 + $0x258] ss:$8 sps:$4 sm:$0xff]   ;;  %v6705_v16 = vld [vmem:[%s9291_s3 + $0x26c] ss:$8 sps:$4 sm:$0xff]  }
 0x3a0   : > { %v2493_v52 = vpack.c.bf16 %v2441_v48, %v2439_v37  ;;  %v6703_v2 = vld [vmem:[%s9291_s3 + $0x268] ss:$8 sps:$4 sm:$0xff]   ;;  %v6708_v55 = vld [vmem:[%s9291_s3 + $0x27c] ss:$8 sps:$4 sm:$0xff]   ;;  %v6711_v49 = vld [vmem:[%s9291_s3 + $0x28c] ss:$8 sps:$4 sm:$0xff]  }
 0x3a1   : > { %5470 = vmatprep.mubr.msk.bf16.mxu1 %vm2669_vm3, %v2494_v36  ;;  %v5554_v37 = vld [vmem:[%s9291_s3 + $0x298] sm:$0x11]  ;;  %v6709_v48 = vld [vmem:[%s9291_s3 + $0x288] ss:$8 sps:$4 sm:$0xff]  }
 0x3a2   : > { %v5576_v36 = vcombine.high %v5554_v37, %v5554_v37 }
 0x3a6   : > { %2983 = vmatmul.mubr.bf16.vlgmr.msra.gmra.mrb[0].mxu1 %v2493_v52 }
 0x3a7   : > { %5471 = vmatprep.mubr.msk.bf16.mxu1 %vm2669_vm3, %v7967_v11  ;;  %3216 = vmatpush1.bf16.msra.mxu1 %v6650_v39  ;;  %v6661_v11 = vld [vmem:[%s9291_s3 + $0x184] ss:$8 sps:$4 sm:$0xff]   ;;  %v5575_v39 = vcombine.low %v5554_v37, %v5554_v37 }
 0x3a8   : > { %3217 = vmatprep.subr.bf16.mxu1 %v6655_v1  ;;  %v6716_v1 = vld [vmem:[%s9291_s3 + $0x2a4] ss:$8 sps:$4 sm:$0xff]  }
 0x3a9   : > { %v3511_v52 = vsel %vm2700_vm1, %v5575_v39, 0  ;;  %v5608_v37 = vld [vmem:[%s9291_s3 + $0x340] sm:$0x11] }
 0x3aa   : > { %v5629_v39 = vcombine.low %v5608_v37, %v5608_v37 }
 0x3ab   : > { %3218 = vmatpush1.bf16.msra.mxu1 %v6653_v27  ;;  %v6357_v27 = vpop.permute.xlu0 %6356 }
 0x3ac   : > { %3219 = vmatprep.subr.bf16.mxu1 %v6658_v21  ;;  %v6352_v21 = vpop.permute.xlu1 %6351 }
 0x3ae   : > { %2993 = vmatmul.mubr.bf16.gmra.mrb[4].mxu1 %v7972_v62  ;;  %v6667_v62 = vld [vmem:[%s9291_s3 + $0x1a4] ss:$8 sps:$4 sm:$0xff]  }
 0x3af   : > { %5472 = vmatprep.mubr.msk.bf16.mxu1 %vm2669_vm3, %v7996_v26  ;;  %3220 = vmatpush1.bf16.msra.mxu1 %v6656_v10  ;;  %v6359_v10 = vunpack.i.h.bf16 %v6357_v27 }
 0x3b0   : > { %3221 = vmatprep.subr.bf16.mxu1 %v6661_v11  ;;  %v6354_v11 = vunpack.i.h.bf16 %v6352_v21 }
 0x3b3   : > { %3222 = vmatpush1.bf16.msra.mxu1 %v6659_v51  ;;  %v9458_v51 = vld [vmem:[#allocation10_spill] sm:$0xff] }
 0x3b4   : > { %3223 = vmatprep.subr.bf16.mxu1 %v6664_v38  ;;  %v9459_v38 = vmax.f32 %v9458_v51, 0.0 }
 0x3b6   : > { %3003 = vmatmul.mubr.bf16.gmra.mrb[8].mxu1 %v8001_v29 }
 0x3b7   : > { %5473 = vmatprep.mubr.msk.bf16.mxu1 %vm2669_vm3, %v8025_v57  ;;  %3224 = vmatpush1.bf16.msra.mxu1 %v6662_v3  ;;  %v8392_v3 = vmax.f32 %v9459_v38, %v6359_v10 }
 0x3b8   : > { %3225 = vmatprep.subr.bf16.mxu1 %v6667_v62  ;;  %v6358_v62 = vunpack.i.l.bf16 %v6357_v27 }
 0x3bb   : > { %3226 = vmatpush1.bf16.msra.mxu1 %v6665_v34  ;;  %v9460_v34 = vld [vmem:[#allocation8_spill] sm:$0xff] }
 0x3bc   : > { %3227 = vmatprep.subr.bf16.mxu1 %v6670_v54  ;;  %v9461_v54 = vmax.f32 %v9460_v34, 0.0 }
 0x3be   : > { %3013 = vmatmul.mubr.bf16.gmra.mrb[12].mxu1 %v8030_v17 }
 0x3bf   : > { %5474 = vmatprep.mubr.msk.bf16.mxu1 %vm2669_vm3, %v8053_v5  ;;  %3228 = vmatpush1.bf16.msra.mxu1 %v6668_v25  ;;  %v2430_v25 = vmax.f32 %v9461_v54, %v6354_v11  ;;  %v6367_v54 = vpop.permute.xlu0 %6366 }
 0x3c0   : > { %3229 = vmatprep.subr.bf16.mxu1 %v6673_v20  ;;  %v6353_v20 = vunpack.i.l.bf16 %v6352_v21 }
 0x3c3   : > { %3230 = vmatpush1.bf16.msra.mxu1 %v6671_v31  ;;  %v2486_v31 = vmax.f32 %v2430_v25, %v8392_v3 }
 0x3c4   : > { %3231 = vmatprep.subr.bf16.mxu1 %v6676_v33  ;;  %v2323_v33 = vsel %vm2298_vm2, %v6358_v62, %v6359_v10  ;;  %v3812_v10 = vsel %vm2700_vm1, %v5629_v39, 0 }
 0x3c6   : > { %3023 = vmatmul.mubr.bf16.gmra.mrb[16].mxu1 %v8059_v58 }
 0x3c7   : > { %5475 = vmatprep.mubr.msk.bf16.mxu1 %vm2669_vm3, %v8082_v63  ;;  %3232 = vmatpush1.bf16.msra.mxu1 %v6674_v46  ;;  %v2484_v46 = vmax.f32 %v8181_v41, %v2430_v25  ;;  %v6362_v25 = vpop.permute.xlu1 %6361 }
 0x3c8   : > { %3233 = vmatprep.subr.bf16.mxu1 %v6679_v28  ;;  %v2322_v28 = vsel %vm2298_vm2, %v6353_v20, %v6354_v11  ;;  %v9466_v11 = vmov 0   ;;  %v6369_v20 = vunpack.i.h.bf16 %v6367_v54 }
 0x3c9   : > { %v8407_v60 = vpack.c.bf16 %v2486_v31, %v2484_v46  ;;  %v6364_v31 = vunpack.i.h.bf16 %v6362_v25 }
 0x3cb   : > { %3234 = vmatpush1.bf16.msra.mxu1 %v6677_v44  ;;  %v9463_v44 = vmax.f32 %v9462_v15, 0.0  ;;  %v6368_v15 = vunpack.i.l.bf16 %v6367_v54 }
 0x3cc   : > { %5523 = vmatprep.subr.msk.bf16.mxu1 %vm2700_vm1, %v5522_v61 }
 0x3cd   : > { %v8405_v61 = vmax.f32 %v9463_v44, %v2323_v33  ;;  %v9467_v33 = vld [vmem:[#allocation14_spill] sm:$0xff]  ;;  %v9469_v44 = vld [vmem:[#allocation12_spill] sm:$0xff] }
 0x3ce   : > { %3033 = vmatmul.mubr.bf16.gmra.mrb[20].mxu1 %v8088_v12  ;;  %v9468_v46 = vmax.f32 %v9467_v33, 0.0  ;;  %v6749_v33 = vld [vmem:[%s9293_s5 + $0x60] sm:$0xff]  }
 0x3cf   : > { %5476 = vmatprep.mubr.msk.bf16.mxu1 %vm2669_vm3, %v8111_v23  ;;  %3236 = vmatpush1.bf16.msra.mxu1 %v3210_v56  ;;  %v9464_v56 = vld [vmem:[#allocation7_spill] sm:$0xff] }
 0x3d0   : > { %3516 = vmatprep.subr.bf16.mxu1 %v6684_v13  ;;  %v9465_v13 = vmax.f32 %v9464_v56, 0.0  ;;  %v9470_v56 = vmax.f32 %v9469_v44, 0.0 }
 0x3d6   : > { %3043 = vmatmul.mubr.bf16.gmra.mrb[24].mxu1 %v8114_v32 }
 0x3d7   : > { %5477 = vmatprep.mubr.msk.bf16.mxu1 %vm2669_vm3, %v8133_v0 }
 0x3de   : > { %3053 = vmatmul.mubr.bf16.gmra.mrb[28].mxu1 %v8136_v47 }
 0x3df   : > { %5478 = vmatprep.mubr.msk.bf16.mxu1 %vm2669_vm3, %v8150_v14 }
 0x3e6   : > { %3063 = vmatmul.mubr.bf16.gmra.mrb[40].mxu1 %v8153_v18 }
 0x3e7   : > { %5479 = vmatprep.mubr.msk.bf16.mxu1 %vm2669_vm3, %v8167_v9 }
 0x3ee   : > { %3071 = vmatmul.mubr.bf16.gmra.mrb[44].mxu1 %v8170_v35 }
 0x3ef   : > { %5524 = vmatprep.mubr.msk.bf16.mxu1 %vm2669_vm3, %v7996_v26  ;;  %v6690_v26 = vld [vmem:[%s9291_s3 + $0x21c] ss:$8 sps:$4 sm:$0xff]  }
 0x3f6   : > { %3248 = vmatmul.mubr.bf16.vlgmr.msra.gmra.mrb[0].mxu1 %v8001_v29  ;;  %v6693_v29 = vld [vmem:[%s9291_s3 + $0x22c] ss:$8 sps:$4 sm:$0xff]  }
 0x3f7   : > { %5525 = vmatprep.mubr.msk.bf16.mxu1 %vm2669_vm3, %v8025_v57  ;;  %3517 = vmatpush1.bf16.msra.mxu1 %v6682_v8  ;;  %v2429_v8 = vmax.f32 %v9465_v13, %v2322_v28  ;;  %v2436_v28 = vmax.f32 %v9468_v46, %v6369_v20  ;;  %v2434_v13 = vmax.f32 %v9470_v56, %v6364_v31  ;;  %v6750_v46 = vld [vmem:[%s9293_s5 + $0x68] sm:$0xff]  }
 0x3f8   : > { %3518 = vmatprep.subr.bf16.mxu1 %v6687_v42 }
 0x3f9   : > { %v2485_v42 = vmax.f32 %v2429_v8, %v8405_v61  ;;  %v2483_v41 = vmax.f32 %v8186_v4, %v2429_v8  ;;  %v6717_v4 = vld [vmem:[%s9291_s3 + $0x2b0] ss:$8 sps:$4 sm:$0xff]   ;;  %v6363_v8 = vunpack.i.l.bf16 %v6362_v25  ;;  %v6746_v25 = vld [vmem:[%s9293_s5 + $0x48] sm:$0xff]  }
 0x3fb   : > { %3519 = vmatpush1.bf16.msra.mxu1 %v6685_v40  ;;  %v8416_v40 = vpack.c.bf16 %v2485_v42, %v2483_v41  ;;  %v2490_v42 = vmax.f32 %v2434_v13, %v2436_v28  ;;  %v2325_v41 = vsel %vm2298_vm2, %v6368_v15, %v6369_v20  ;;  %v6747_v20 = vld [vmem:[%s9293_s5 + $0x50] sm:$0xff]   ;;  %v6752_v15 = vld [vmem:[%s9293_s5 + $0x78] sm:$0xff]  }
 0x3fc   : > { %3520 = vmatprep.subr.bf16.mxu1 %v6690_v26  ;;  %v6714_v26 = vld [vmem:[%s9291_s3 + $0x2a0] ss:$8 sps:$4 sm:$0xff]  }
 0x3fe   : > { %3258 = vmatmul.mubr.bf16.gmra.mrb[4].mxu1 %v8030_v17 }
 0x3ff   : > { %5526 = vmatprep.mubr.msk.bf16.mxu1 %vm2669_vm3, %v8053_v5  ;;  %3521 = vmatpush1.bf16.msra.mxu1 %v6688_v6  ;;  %v6719_v6 = vld [vmem:[%s9291_s3 + $0x2b4] ss:$8 sps:$4 sm:$0xff]  }
 0x400   : > { %3522 = vmatprep.subr.bf16.mxu1 %v6693_v29  ;;  %v6720_v29 = vld [vmem:[%s9291_s3 + $0x2c0] ss:$8 sps:$4 sm:$0xff]  }
 0x403   : > { %3523 = vmatpush1.bf16.msra.mxu1 %v6691_v50  ;;  %v6723_v50 = vld [vmem:[%s9291_s3 + $0x2d0] ss:$8 sps:$4 sm:$0xff]  }
 0x404   : > { %3524 = vmatprep.subr.bf16.mxu1 %v6696_v7  ;;  %v6728_v7 = vld [vmem:[%s9291_s3 + $0x2e4] ss:$8 sps:$4 sm:$0xff]  }
 0x406   : > { %3268 = vmatmul.mubr.bf16.gmra.mrb[8].mxu1 %v8059_v58 }
 0x407   : > { %5527 = vmatprep.mubr.msk.bf16.mxu1 %vm2669_vm3, %v8082_v63  ;;  %3525 = vmatpush1.bf16.msra.mxu1 %v6694_v30  ;;  %v6726_v30 = vld [vmem:[%s9291_s3 + $0x2e0] ss:$8 sps:$4 sm:$0xff]  }
 0x408   : > { %3526 = vmatprep.subr.bf16.mxu1 %v6699_v53  ;;  %v6731_v53 = vld [vmem:[%s9291_s3 + $0x2f4] ss:$8 sps:$4 sm:$0xff]  }
 0x40b   : > { %3527 = vmatpush1.bf16.msra.mxu1 %v6697_v19  ;;  %v6729_v19 = vld [vmem:[%s9291_s3 + $0x2f0] ss:$8 sps:$4 sm:$0xff]  }
 0x40c   : > { %3528 = vmatprep.subr.bf16.mxu1 %v6702_v22  ;;  %v6734_v22 = vld [vmem:[%s9291_s3 + $0x304] ss:$8 sps:$4 sm:$0xff]  }
 0x40e   : > { %3278 = vmatmul.mubr.bf16.gmra.mrb[12].mxu1 %v8088_v12 }
 0x40f   : > { %5528 = vmatprep.mubr.msk.bf16.mxu1 %vm2669_vm3, %v8111_v23  ;;  %3529 = vmatpush1.bf16.msra.mxu1 %v6700_v43  ;;  %v6732_v43 = vld [vmem:[%s9291_s3 + $0x300] ss:$8 sps:$4 sm:$0xff]  }
 0x410   : > { %3530 = vmatprep.subr.bf16.mxu1 %v6705_v16  ;;  %v6737_v16 = vld [vmem:[%s9291_s3 + $0x314] ss:$8 sps:$4 sm:$0xff]  }
 0x413   : > { %3531 = vmatpush1.bf16.msra.mxu1 %v6703_v2  ;;  %v6735_v2 = vld [vmem:[%s9291_s3 + $0x310] ss:$8 sps:$4 sm:$0xff]  }
 0x414   : > { %3532 = vmatprep.subr.bf16.mxu1 %v6708_v55  ;;  %v6740_v55 = vld [vmem:[%s9291_s3 + $0x324] ss:$8 sps:$4 sm:$0xff]  }
 0x416   : > { %3288 = vmatmul.mubr.bf16.gmra.mrb[16].mxu1 %v8114_v32 }
 0x417   : > { %5529 = vmatprep.mubr.msk.bf16.mxu1 %vm2669_vm3, %v8133_v0  ;;  %3533 = vmatpush1.bf16.msra.mxu1 %v6706_v24  ;;  %v6738_v24 = vld [vmem:[%s9291_s3 + $0x320] ss:$8 sps:$4 sm:$0xff]  }
 0x418   : > { %3534 = vmatprep.subr.bf16.mxu1 %v6711_v49  ;;  %v6743_v49 = vld [vmem:[%s9291_s3 + $0x334] ss:$8 sps:$4 sm:$0xff]  }
 0x41b   : > { %3535 = vmatpush1.bf16.msra.mxu1 %v6709_v48  ;;  %v6741_v48 = vld [vmem:[%s9291_s3 + $0x330] ss:$8 sps:$4 sm:$0xff]  }
 0x41c   : > { %5577 = vmatprep.subr.msk.bf16.mxu1 %vm2700_vm1, %v5576_v36  ;;  %v5630_v36 = vcombine.high %v5608_v37, %v5608_v37 }
 0x41e   : > { %3298 = vmatmul.mubr.bf16.gmra.mrb[20].mxu1 %v8136_v47 }
 0x41f   : > { %5530 = vmatprep.mubr.msk.bf16.mxu1 %vm2669_vm3, %v8150_v14  ;;  %3537 = vmatpush1.bf16.msra.mxu1 %v3511_v52 }
 0x420   : > { %3817 = vmatprep.subr.bf16.mxu1 %v6716_v1 }
 0x426   : > { %3308 = vmatmul.mubr.bf16.gmra.mrb[24].mxu1 %v8153_v18 }
 0x427   : > { %5531 = vmatprep.mubr.msk.bf16.mxu1 %vm2669_vm3, %v8167_v9 }
 0x42e   : > { %3318 = vmatmul.mubr.bf16.gmra.mrb[28].mxu1 %v8170_v35 }
 0x42f   : > { %5532 = vmatprep.mubr.msk.bf16.mxu1 %vm2669_vm3, %v8195_v45 }
 0x436   : > { %3328 = vmatmul.mubr.bf16.gmra.mrb[48].mxu1 %v8198_v59 }
 0x437   : > { %5533 = vmatprep.mubr.msk.bf16.mxu1 %vm2669_vm3, %v8407_v60 }
 0x43e   : > { %3336 = vmatmul.mubr.bf16.gmra.mrb[52].mxu1 %v8416_v40 }
 0x43f   : > { %5578 = vmatprep.mubr.msk.bf16.mxu1 %vm2669_vm3, %v8025_v57  ;;  %v6722_v57 = vld [vmem:[%s9291_s3 + $0x2c4] ss:$8 sps:$4 sm:$0xff]  }
 0x446   : > { %3549 = vmatmul.mubr.bf16.vlgmr.msra.gmra.mrb[0].mxu1 %v8030_v17  ;;  %v6725_v17 = vld [vmem:[%s9291_s3 + $0x2d4] ss:$8 sps:$4 sm:$0xff]  }
 0x447   : > { %5579 = vmatprep.mubr.msk.bf16.mxu1 %vm2669_vm3, %v8053_v5  ;;  %3818 = vmatpush1.bf16.msra.mxu1 %v6714_v26  ;;  %v2488_v26 = vmax.f32 %v8392_v3, %v2434_v13 }
 0x448   : > { %3819 = vmatprep.subr.bf16.mxu1 %v6719_v6  ;;  %v2324_v6 = vsel %vm2298_vm2, %v6363_v8, %v6364_v31  ;;  %v6748_v31 = vld [vmem:[%s9293_s5 + $0x58] sm:$0xff]  }
 0x44b   : > { %3820 = vmatpush1.bf16.msra.mxu1 %v6717_v4  ;;  %v9471_v4 = vld [vmem:[#allocation13_spill] sm:$0xff] }
 0x44c   : > { %3821 = vmatprep.subr.bf16.mxu1 %v6722_v57  ;;  %v9472_v57 = vmax.f32 %v9471_v4, 0.0 }
 0x44e   : > { %3559 = vmatmul.mubr.bf16.gmra.mrb[4].mxu1 %v8059_v58 }
 0x44f   : > { %5580 = vmatprep.mubr.msk.bf16.mxu1 %vm2669_vm3, %v8082_v63  ;;  %3822 = vmatpush1.bf16.msra.mxu1 %v6720_v29  ;;  %v2435_v29 = vmax.f32 %v9472_v57, %v2325_v41 }
 0x450   : > { %3823 = vmatprep.subr.bf16.mxu1 %v6725_v17  ;;  %v2518_v17 = vpack.c.bf16 %v2490_v42, %v2488_v26 }
 0x453   : > { %3824 = vmatpush1.bf16.msra.mxu1 %v6723_v50  ;;  %v9473_v50 = vld [vmem:[#allocation11_spill] sm:$0xff] }
 0x454   : > { %3825 = vmatprep.subr.bf16.mxu1 %v6728_v7  ;;  %v9474_v7 = vmax.f32 %v9473_v50, 0.0 }
 0x456   : > { %3569 = vmatmul.mubr.bf16.gmra.mrb[8].mxu1 %v8088_v12 }
 0x457   : > { %5581 = vmatprep.mubr.msk.bf16.mxu1 %vm2669_vm3, %v8111_v23  ;;  %3826 = vmatpush1.bf16.msra.mxu1 %v6726_v30  ;;  %v2433_v30 = vmax.f32 %v9474_v7, %v2324_v6 }
 0x458   : > { %3827 = vmatprep.subr.bf16.mxu1 %v6731_v53 }
 0x459   : > { %v2489_v53 = vmax.f32 %v2433_v30, %v2435_v29 }
 0x45b   : > { %3828 = vmatpush1.bf16.msra.mxu1 %v6729_v19  ;;  %v2487_v19 = vmax.f32 %v8405_v61, %v2433_v30 }
 0x45c   : > { %3829 = vmatprep.subr.bf16.mxu1 %v6734_v22 }
 0x45d   : > { %v2517_v22 = vpack.c.bf16 %v2489_v53, %v2487_v19 }
 0x45e   : > { %3579 = vmatmul.mubr.bf16.gmra.mrb[12].mxu1 %v8114_v32 }
 0x45f   : > { %5582 = vmatprep.mubr.msk.bf16.mxu1 %vm2669_vm3, %v8133_v0  ;;  %3830 = vmatpush1.bf16.msra.mxu1 %v6732_v43  ;;  %v6372_v43 = vpop.permute.xlu1 %6371 }
 0x460   : > { %3831 = vmatprep.subr.bf16.mxu1 %v6737_v16  ;;  %v9475_v16 = vld [vmem:[#allocation16_spill] sm:$0xff] }
 0x463   : > { %3832 = vmatpush1.bf16.msra.mxu1 %v6735_v2  ;;  %v9476_v2 = vmax.f32 %v9475_v16, 0.0 }
 0x464   : > { %3833 = vmatprep.subr.bf16.mxu1 %v6740_v55 }
 0x466   : > { %3589 = vmatmul.mubr.bf16.gmra.mrb[16].mxu1 %v8136_v47 }
 0x467   : > { %5583 = vmatprep.mubr.msk.bf16.mxu1 %vm2669_vm3, %v8150_v14  ;;  %3834 = vmatpush1.bf16.msra.mxu1 %v6738_v24 }
 0x468   : > { %3835 = vmatprep.subr.bf16.mxu1 %v6743_v49  ;;  %v9477_v49 = vld [vmem:[#allocation15_spill] sm:$0xff] }
 0x469   : > { %v2821_v52 = vpop.f32.mrb[32].mxu1  ;;  %v9478_v37 = vmax.f32 %v9477_v49, 0.0 }
 0x46a   : > { %v2823_v1 = vpop.f32.mrb[33].mxu1 }
 0x46b   : > { %v2825_v27 = vpop.f32.mrb[34].mxu1  ;;  %3836 = vmatpush1.bf16.msra.mxu1 %v6741_v48 }
 0x46c   : > { %v2826_v21 = vpop.f32.mrb[35].mxu1  ;;  %5631 = vmatprep.subr.msk.bf16.mxu1 %vm2700_vm1, %v5630_v36 }
 0x46e   : > { %3599 = vmatmul.mubr.bf16.gmra.mrb[20].mxu1 %v8153_v18 }
 0x46f   : > { %5584 = vmatprep.mubr.msk.bf16.mxu1 %vm2669_vm3, %v8167_v9  ;;  %3838 = vmatpush1.bf16.msra.mxu1 %v3812_v10 }
 0x470   : > { %4388 = vmatprep.subr.bf16.mxu1 %v9466_v11 }
 0x471   : > { %v2829_v51 = vpop.f32.mrb[36].mxu1 }
 0x472   : > { %v2831_v38 = vpop.f32.mrb[37].mxu1 }
 0x473   : > { %v2833_v62 = vpop.f32.mrb[38].mxu1 }
 0x474   : > { %v2834_v34 = vpop.f32.mrb[39].mxu1 }
 0x476   : > { %3609 = vmatmul.mubr.bf16.gmra.mrb[24].mxu1 %v8170_v35 }
 0x477   : > { %5585 = vmatprep.mubr.msk.bf16.mxu1 %vm2669_vm3, %v8195_v45 }
 0x47e   : > { %3619 = vmatmul.mubr.bf16.gmra.mrb[28].mxu1 %v8198_v59 }
 0x47f   : > { %5586 = vmatprep.mubr.msk.bf16.mxu1 %vm2669_vm3, %v8407_v60 }
 0x486   : > { %3629 = vmatmul.mubr.bf16.gmra.mrb[56].mxu1 %v8416_v40 }
 0x487   : > { %5587 = vmatprep.mubr.msk.bf16.mxu1 %vm2669_vm3, %v2518_v17 }
 0x48e   : > { %3637 = vmatmul.mubr.bf16.gmra.mrb[60].mxu1 %v2517_v22 }
 0x48f   : > { %5632 = vmatprep.mubr.msk.bf16.mxu1 %vm2669_vm3, %v8053_v5 }
 0x496   : > { %3850 = vmatmul.mubr.bf16.vlgmr.msra.gmra.mrb[0].mxu1 %v8059_v58 }
 0x497   : > { %5633 = vmatprep.mubr.msk.bf16.mxu1 %vm2669_vm3, %v8082_v63  ;;  %4389 = vmatpush1.bf16.msra.mxu1 %v6746_v25 }
 0x498   : > { %4390 = vmatprep.subr.bf16.mxu1 %v9466_v11 }
 0x49b   : > { %4391 = vmatpush1.bf16.msra.mxu1 %v6747_v20 }
 0x49c   : > { %4392 = vmatprep.subr.bf16.mxu1 %v9466_v11 }
 0x49e   : > { %3860 = vmatmul.mubr.bf16.gmra.mrb[4].mxu1 %v8088_v12 }
 0x49f   : > { %5634 = vmatprep.mubr.msk.bf16.mxu1 %vm2669_vm3, %v8111_v23  ;;  %4393 = vmatpush1.bf16.msra.mxu1 %v6748_v31 }
 0x4a0   : > { %4394 = vmatprep.subr.bf16.mxu1 %v9466_v11 }
 0x4a3   : > { %4395 = vmatpush1.bf16.msra.mxu1 %v6749_v33 }
 0x4a4   : > { %4396 = vmatprep.subr.bf16.mxu1 %v9466_v11 }
 0x4a6   : > { %3870 = vmatmul.mubr.bf16.gmra.mrb[8].mxu1 %v8114_v32 }
 0x4a7   : > { %5635 = vmatprep.mubr.msk.bf16.mxu1 %vm2669_vm3, %v8133_v0  ;;  %4397 = vmatpush1.bf16.msra.mxu1 %v6750_v46 }
 0x4a8   : > { %4398 = vmatprep.subr.bf16.mxu1 %v9466_v11 }
 0x4ae   : > { %3880 = vmatmul.mubr.bf16.gmra.mrb[12].mxu1 %v8136_v47 }
 0x4af   : > { %5636 = vmatprep.mubr.msk.bf16.mxu1 %vm2669_vm3, %v8150_v14 }
 0x4b6   : > { %3890 = vmatmul.mubr.bf16.gmra.mrb[16].mxu1 %v8153_v18 }
 0x4b7   : > { %5637 = vmatprep.mubr.msk.bf16.mxu1 %vm2669_vm3, %v8167_v9  ;;  %v6374_v9 = vunpack.i.h.bf16 %v6372_v43 }
 0x4b9   : > { %v3064_v5 = vpop.f32.mrb[40].mxu1  ;;  %v2438_v55 = vmax.f32 %v9476_v2, %v6374_v9 }
 0x4ba   : > { %v3065_v58 = vadd.f32 %v3064_v5, %v2821_v52  ;;  %v3066_v63 = vpop.f32.mrb[41].mxu1 }
 0x4bb   : > { %v3067_v12 = vadd.f32 %v3066_v63, %v2823_v1  ;;  %v3068_v23 = vpop.f32.mrb[42].mxu1  ;;  %v3982_v63 = vld [vmem:[%s9292_s4] sm:$0x3] }
 0x4bc   : > { %v3069_v3 = vpop.f32.mrb[43].mxu1 }
 0x4be   : > { %3900 = vmatmul.mubr.bf16.gmra.mrb[20].mxu1 %v8170_v35  ;;  %v6373_v35 = vunpack.i.l.bf16 %v6372_v43 }
 0x4bf   : > { %5638 = vmatprep.mubr.msk.bf16.mxu1 %vm2669_vm3, %v8195_v45  ;;  %v2492_v45 = vmax.f32 %v2436_v28, %v2438_v55  ;;  %v6751_v28 = vld [vmem:[%s9293_s5 + $0x70] sm:$0xff]  }
 0x4c0   : > { %v2326_v24 = vsel %vm2298_vm2, %v6373_v35, %v6374_v9  ;;  %4399 = vmatpush1.bf16.msra.mxu1 %v6751_v28 }
 0x4c1   : > { %v3072_v32 = vpop.f32.mrb[44].mxu1  ;;  %v2437_v48 = vmax.f32 %v9478_v37, %v2326_v24  ;;  %v2520_v36 = vpack.c.bf16 %v2492_v45, %v2492_v45  ;;  %4400 = vmatprep.subr.bf16.mxu1 %v9466_v11 }
 0x4c2   : > { %v3073_v0 = vadd.f32 %v3072_v32, %v2829_v51  ;;  %v3074_v47 = vpop.f32.mrb[45].mxu1 }
 0x4c3   : > { %v3075_v14 = vadd.f32 %v3074_v47, %v2831_v38  ;;  %v3076_v61 = vpop.f32.mrb[46].mxu1 }
 0x4c4   : > { %v3077_v18 = vpop.f32.mrb[47].mxu1  ;;  %4401 = vmatpush1.bf16.msra.mxu1 %v6752_v15 }
 0x4c5   : > { %4402 = vmatprep.subr.bf16.mxu1 %v9466_v11 }
 0x4c6   : > { %3910 = vmatmul.mubr.bf16.gmra.mrb[24].mxu1 %v8198_v59  ;;  %v2491_v59 = vmax.f32 %v2435_v29, %v2437_v48 }
 0x4c7   : > { %5639 = vmatprep.mubr.msk.bf16.mxu1 %vm2669_vm3, %v8407_v60 }
 0x4c8   : > { %v2519_v60 = vpack.c.bf16 %v2491_v59, %v2491_v59 }
 0x4ce   : > { %3920 = vmatmul.mubr.bf16.gmra.mrb[28].mxu1 %v8416_v40 }
 0x4cf   : > { %5640 = vmatprep.mubr.msk.bf16.mxu1 %vm2669_vm3, %v2518_v17 }
 0x4d6   : > { %3930 = vmatmul.mubr.bf16.gmra.mrb[64].mxu1 %v2517_v22 }
 0x4d7   : > { %5641 = vmatprep.mubr.msk.bf16.mxu1 %vm2669_vm3, %v2520_v36 }
 0x4de   : > { %3938 = vmatmul.mubr.bf16.gmra.mrb[68].mxu1 %v2519_v60 }
 0x509   : > { %v3329_v39 = vpop.f32.mrb[48].mxu1 }
 0x50a   : > { %v3376_v52 = vadd.f32 %v3329_v39, %v3065_v58  ;;  %v3331_v1 = vpop.f32.mrb[49].mxu1 }
 0x50b   : > { %v3377_v27 = vadd.f32 %v3331_v1, %v3067_v12  ;;  %v3333_v40 = vpop.f32.mrb[50].mxu1  ;;  %v9479_v12 = vld [vmem:[#allocation6_spill] sm:$0xff]  ;;  %v6754_v1 = vld [vmem:[%s9293_s5 + $0x88] sm:$0xff]  }
 0x50c   : > { %v3334_v21 = vpop.f32.mrb[51].mxu1  ;;  %v9480_v23 = vsub.s32 0, %v9479_v12  ;;  %v9481_v32 = vsub.s32 1, %v9479_v12 }
 0x50e   : > { %v8594_v3 = vrot.slane %v3982_v63, %v9480_v23 }
 0x511   : > { %v3337_v10 = vpop.f32.mrb[52].mxu1 }
 0x512   : > { %v3378_v51 = vadd.f32 %v3337_v10, %v3073_v0  ;;  %v3339_v38 = vpop.f32.mrb[53].mxu1  ;;  %v8598_v0 = vrot.slane %v3982_v63, %v9481_v32 }
 0x513   : > { %v3379_v62 = vadd.f32 %v3339_v38, %v3075_v14  ;;  %v3341_v34 = vpop.f32.mrb[54].mxu1  ;;  %v6753_v14 = vld [vmem:[%s9293_s5 + $0x80] sm:$0xff]  }
 0x514   : > { %v3342_v54 = vpop.f32.mrb[55].mxu1  ;;  %4403 = vmatpush1.bf16.msra.mxu1 %v6753_v14 }
 0x515   : > { %4404 = vmatprep.subr.bf16.mxu1 %v9466_v11 }
 0x518   : > { %4405 = vmatpush1.bf16.msra.mxu1 %v6754_v1 }
 0x519   : > { %4485 = vmatprep.subr.bf16.mxu1 %v9466_v11 }
 0x559   : > { %v3630_v44 = vpop.f32.mrb[56].mxu1 }
 0x55a   : > { %v8581_v56 = vadd.f32 %v3630_v44, %v3376_v52  ;;  %v3632_v13 = vpop.f32.mrb[57].mxu1 }
 0x55b   : > { %v8583_v8 = vadd.f32 %v3632_v13, %v3377_v27  ;;  %v3634_v42 = vpop.f32.mrb[58].mxu1 }
 0x55c   : > { %v3635_v41 = vpop.f32.mrb[59].mxu1 }
 0x561   : > { %v3638_v26 = vpop.f32.mrb[60].mxu1 }
 0x562   : > { %v8585_v6 = vadd.f32 %v3638_v26, %v3378_v51  ;;  %v3640_v4 = vpop.f32.mrb[61].mxu1 }
 0x563   : > { %v8587_v57 = vadd.f32 %v3640_v4, %v3379_v62  ;;  %v3642_v29 = vpop.f32.mrb[62].mxu1 }
 0x564   : > { %v3643_v17 = vpop.f32.mrb[63].mxu1 }
 0x569   : > { %v3851_v50 = vpop.f32.mrb[0].mxu1 }
 0x56a   : > { %v3853_v7 = vpop.f32.mrb[1].mxu1  ;;  %v8630_v59 = vadd.f32 %v8594_v3, %v3851_v50  ;;  %v6755_v50 = vld [vmem:[%s9293_s5 + $0x120] sm:$0xff]  }
 0x56b   : > { %v3855_v30 = vpop.f32.mrb[2].mxu1  ;;  %v8633_v60 = vadd.f32 %v8598_v0, %v3853_v7  ;;  %4836 = vmatpush1.bf16.msra.mxu0 %v6755_v50 }
 0x56c   : > { %v3857_v53 = vpop.f32.mrb[3].mxu1  ;;  %v8646_v21 = vadd.f32 %v8594_v3, %v3855_v30  ;;  %v9378_v25 = vmax.f32 %v8630_v59, 0.0  ;;  %4837 = vmatprep.subr.bf16.mxu0 %v9466_v11 }
 0x56d   : > { %v8649_v10 = vadd.f32 %v8598_v0, %v3857_v53  ;;  %v9394_v20 = vmax.f32 %v8633_v60, 0.0 }
 0x56e   : > { %v9383_v44 = vmax.f32 %v8646_v21, 0.0 }
 0x56f   : > { %v4033_v13 = vmax.f32 %v8649_v10, 0.0  ;;  %v6395_v29 = vpack.i.bf16 %v9394_v20, %v9378_v25 }
 0x571   : > { %v3861_v19 = vpop.f32.mrb[4].mxu1 }
 0x572   : > { %v3863_v22 = vpop.f32.mrb[5].mxu1  ;;  %v8664_v33 = vadd.f32 %v8594_v3, %v3861_v19 }
 0x573   : > { %v3865_v5 = vpop.f32.mrb[6].mxu1  ;;  %v8667_v46 = vadd.f32 %v8598_v0, %v3863_v22 }
 0x574   : > { %v3867_v58 = vpop.f32.mrb[7].mxu1  ;;  %v8677_v42 = vadd.f32 %v8594_v3, %v3865_v5  ;;  %v9382_v7 = vmax.f32 %v8664_v33, 0.0  ;;  %v6400_v5 = vpack.i.bf16 %v4033_v13, %v9383_v44 }
 0x575   : > { %v8680_v41 = vadd.f32 %v8598_v0, %v3867_v58  ;;  %v4035_v30 = vmax.f32 %v8667_v46, 0.0  ;;  %v6757_v46 = vld [vmem:[%s9293_s5 + $0x8] sm:$0xff]  }
 0x576   : > { %v9386_v63 = vmax.f32 %v8677_v42, 0.0 }
 0x577   : > { %v9397_v12 = vmax.f32 %v8680_v41, 0.0 }
 0x579   : > { %v3871_v47 = vpop.f32.mrb[8].mxu1 }
 0x57a   : > { %v8604_v61 = vadd.f32 %v8594_v3, %v3871_v47  ;;  %v3873_v18 = vpop.f32.mrb[9].mxu1  ;;  %v6405_v47 = vpack.i.bf16 %v4035_v30, %v9382_v7  ;;  %v6769_v7 = vld [vmem:[%s9293_s5 + $0x148] sm:$0xff]  }
 0x57b   : > { %v8607_v43 = vadd.f32 %v8598_v0, %v3873_v18  ;;  %v3875_v9 = vpop.f32.mrb[10].mxu1 }
 0x57c   : > { %v4038_v16 = vmax.f32 %v8604_v61, 0.0  ;;  %v8611_v2 = vadd.f32 %v8594_v3, %v3875_v9  ;;  %v3877_v55 = vpop.f32.mrb[11].mxu1  ;;  %v6410_v9 = vpack.i.bf16 %v9397_v12, %v9386_v63 }
 0x57d   : > { %v4039_v35 = vmax.f32 %v8607_v43, 0.0  ;;  %v8616_v45 = vadd.f32 %v8598_v0, %v3877_v55 }
 0x57e   : > { %v4040_v24 = vmax.f32 %v8611_v2, 0.0 }
 0x57f   : > { %v6375_v49 = vpack.i.bf16 %v4039_v35, %v4038_v16  ;;  %v4041_v37 = vmax.f32 %v8616_v45, 0.0 }
 0x581   : > { %v6380_v48 = vpack.i.bf16 %v4041_v37, %v4040_v24  ;;  %6376 = vrot.lane.b32.xlu0 %v6375_v49, %s6871_s14  ;;  %v3881_v36 = vpop.f32.mrb[12].mxu1 }
 0x582   : > { %v8636_v39 = vadd.f32 %v8594_v3, %v3881_v36  ;;  %v3883_v52 = vpop.f32.mrb[13].mxu1 }
 0x583   : > { %v8642_v27 = vadd.f32 %v8598_v0, %v3883_v52  ;;  %v3885_v40 = vpop.f32.mrb[14].mxu1  ;;  %6381 = vrot.lane.b32.xlu1 %v6380_v48, %s6871_s14 }
 0x584   : > { %v4042_v51 = vmax.f32 %v8636_v39, 0.0  ;;  %v8653_v38 = vadd.f32 %v8594_v3, %v3885_v40  ;;  %v3887_v62 = vpop.f32.mrb[15].mxu1 }
 0x585   : > { %v4043_v34 = vmax.f32 %v8642_v27, 0.0  ;;  %v8657_v54 = vadd.f32 %v8598_v0, %v3887_v62 }
 0x586   : > { %v4044_v31 = vmax.f32 %v8653_v38, 0.0  ;;  %v6756_v38 = vld [vmem:[%s9293_s5] sm:$0xff]  }
 0x587   : > { %v6385_v28 = vpack.i.bf16 %v4043_v34, %v4042_v51  ;;  %v4045_v15 = vmax.f32 %v8657_v54, 0.0 }
 0x589   : > { %v6390_v26 = vpack.i.bf16 %v4045_v15, %v4044_v31  ;;  %6386 = vrot.lane.b32.xlu0 %v6385_v28, %s6871_s14  ;;  %v3891_v4 = vpop.f32.mrb[16].mxu1  ;;  %v6759_v28 = vld [vmem:[%s9293_s5 + $0x128] sm:$0xff]  }
 0x58a   : > { %v3893_v17 = vpop.f32.mrb[17].mxu1  ;;  %v8697_v53 = vadd.f32 %v8594_v3, %v3891_v4  ;;  %4838 = vmatpush1.bf16.msra.mxu0 %v6759_v28 }
 0x58b   : > { %v8700_v19 = vadd.f32 %v8598_v0, %v3893_v17  ;;  %v3895_v22 = vpop.f32.mrb[18].mxu1  ;;  %6391 = vrot.lane.b32.xlu1 %v6390_v26, %s6871_s14  ;;  %4839 = vmatprep.subr.bf16.mxu0 %v9466_v11 }
 0x58c   : > { %v3897_v58 = vpop.f32.mrb[19].mxu1  ;;  %v8710_v23 = vadd.f32 %v8594_v3, %v3895_v22  ;;  %v9372_v14 = vmax.f32 %v8697_v53, 0.0 }
 0x58d   : > { %v8713_v32 = vadd.f32 %v8598_v0, %v3897_v58  ;;  %6396 = vrot.lane.b32.xlu0 %v6395_v29, %s6871_s14  ;;  %v9377_v18 = vmax.f32 %v8700_v19, 0.0 }
 0x58e   : > { %v9374_v55 = vmax.f32 %v8710_v23, 0.0 }
 0x58f   : > { %6401 = vrot.lane.b32.xlu1 %v6400_v5, %s6871_s14  ;;  %v9381_v49 = vmax.f32 %v8713_v32, 0.0  ;;  %v6415_v1 = vpack.i.bf16 %v9377_v18, %v9372_v14 }
 0x591   : > { %6406 = vrot.lane.b32.xlu0 %v6405_v47, %s6871_s14  ;;  %v3901_v48 = vpop.f32.mrb[20].mxu1  ;;  %v6420_v17 = vpack.i.bf16 %v9381_v49, %v9374_v55  ;;  %v6765_v55 = vld [vmem:[%s9293_s5 + $0x138] sm:$0xff]  }
 0x592   : > { %v8732_v36 = vadd.f32 %v8594_v3, %v3901_v48  ;;  %v3903_v52 = vpop.f32.mrb[21].mxu1 }
 0x593   : > { %v8739_v40 = vadd.f32 %v8598_v0, %v3903_v52  ;;  %v3905_v62 = vpop.f32.mrb[22].mxu1  ;;  %6411 = vrot.lane.b32.xlu1 %v6410_v9, %s6871_s14 }
 0x594   : > { %v9373_v26 = vmax.f32 %v8732_v36, 0.0  ;;  %v8747_v4 = vadd.f32 %v8594_v3, %v3905_v62  ;;  %v3907_v29 = vpop.f32.mrb[23].mxu1 }
 0x595   : > { %v9379_v50 = vmax.f32 %v8739_v40, 0.0  ;;  %v8755_v22 = vadd.f32 %v8598_v0, %v3907_v29  ;;  %6416 = vrot.lane.b32.xlu0 %v6415_v1, %s6871_s14 }
 0x596   : > { %v9375_v5 = vmax.f32 %v8747_v4, 0.0 }
 0x597   : > { %v6425_v58 = vpack.i.bf16 %v9379_v50, %v9373_v26  ;;  %v9384_v47 = vmax.f32 %v8755_v22, 0.0  ;;  %6421 = vrot.lane.b32.xlu1 %v6420_v17, %s6871_s14 }
 0x599   : > { %v6430_v9 = vpack.i.bf16 %v9384_v47, %v9375_v5  ;;  %6426 = vrot.lane.b32.xlu0 %v6425_v58, %s6871_s14  ;;  %v3911_v48 = vpop.f32.mrb[24].mxu1  ;;  %v6763_v58 = vld [vmem:[%s9293_s5 + $0x130] sm:$0xff]  }
 0x59a   : > { %v8772_v52 = vadd.f32 %v8594_v3, %v3911_v48  ;;  %v3913_v1 = vpop.f32.mrb[25].mxu1  ;;  %4840 = vmatpush1.bf16.msra.mxu0 %v6763_v58 }
 0x59b   : > { %v8775_v62 = vadd.f32 %v8598_v0, %v3913_v1  ;;  %v3915_v28 = vpop.f32.mrb[26].mxu1  ;;  %6431 = vrot.lane.b32.xlu1 %v6430_v9, %s6871_s14  ;;  %4841 = vmatprep.subr.bf16.mxu0 %v9466_v11 }
 0x59c   : > { %v9393_v29 = vmax.f32 %v8772_v52, 0.0  ;;  %v8780_v17 = vadd.f32 %v8594_v3, %v3915_v28  ;;  %v3917_v14 = vpop.f32.mrb[27].mxu1 }
 0x59d   : > { %v9376_v48 = vmax.f32 %v8775_v62, 0.0  ;;  %v8787_v26 = vadd.f32 %v8598_v0, %v3917_v14 }
 0x59e   : > { %v9387_v1 = vmax.f32 %v8780_v17, 0.0  ;;  %4842 = vmatpush1.bf16.msra.mxu0 %v6765_v55 }
 0x59f   : > { %v6435_v9 = vpack.i.bf16 %v9376_v48, %v9393_v29  ;;  %v9380_v28 = vmax.f32 %v8787_v26, 0.0  ;;  %4843 = vmatprep.subr.bf16.mxu0 %v9466_v11 }
 0x5a1   : > { %v6440_v14 = vpack.i.bf16 %v9380_v28, %v9387_v1  ;;  %6436 = vrot.lane.b32.xlu0 %v6435_v9, %s6871_s14  ;;  %v3921_v58 = vpop.f32.mrb[28].mxu1 }
 0x5a2   : > { %v8805_v5 = vadd.f32 %v8594_v3, %v3921_v58  ;;  %v3923_v48 = vpop.f32.mrb[29].mxu1  ;;  %v6767_v58 = vld [vmem:[%s9293_s5 + $0x140] sm:$0xff]  }
 0x5a3   : > { %v8808_v18 = vadd.f32 %v8598_v0, %v3923_v48  ;;  %v3925_v25 = vpop.f32.mrb[30].mxu1  ;;  %6441 = vrot.lane.b32.xlu1 %v6440_v14, %s6871_s14  ;;  %4844 = vmatpush1.bf16.msra.mxu0 %v6767_v58 }
 0x5a4   : > { %v9388_v50 = vmax.f32 %v8805_v5, 0.0  ;;  %v8814_v28 = vadd.f32 %v8594_v3, %v3925_v25  ;;  %v3927_v9 = vpop.f32.mrb[31].mxu1  ;;  %4845 = vmatprep.subr.bf16.mxu0 %v9466_v11 }
 0x5a5   : > { %v9385_v55 = vmax.f32 %v8808_v18, 0.0  ;;  %v8821_v48 = vadd.f32 %v8598_v0, %v3927_v9 }
 0x5a6   : > { %v9390_v49 = vmax.f32 %v8814_v28, 0.0 }
 0x5a7   : > { %v6445_v14 = vpack.i.bf16 %v9385_v55, %v9388_v50  ;;  %v9389_v25 = vmax.f32 %v8821_v48, 0.0  ;;  %4846 = vmatpush1.bf16.msra.mxu0 %v6769_v7 }
 0x5a8   : > { %4847 = vmatprep.subr.bf16.mxu0 %v9466_v11 }
 0x5a9   : > { %v6450_v9 = vpack.i.bf16 %v9389_v25, %v9390_v49  ;;  %6446 = vrot.lane.b32.xlu0 %v6445_v14, %s6871_s14  ;;  %v3931_v58 = vpop.f32.mrb[64].mxu1  ;;  %v6771_v14 = vld [vmem:[%s9293_s5 + $0x150] sm:$0xff]   ;;  %v6775_v49 = vld [vmem:[%s9293_s5 + $0x160] sm:$0xff]  }
 0x5aa   : > { %v3978_v44 = vadd.f32 %v3931_v58, %v8581_v56  ;;  %v3933_v47 = vpop.f32.mrb[65].mxu1 }
 0x5ab   : > { %v3979_v55 = vadd.f32 %v3933_v47, %v8583_v8  ;;  %v3935_v63 = vpop.f32.mrb[66].mxu1  ;;  %6451 = vrot.lane.b32.xlu1 %v6450_v9, %s6871_s14  ;;  %4848 = vmatpush1.bf16.msra.mxu0 %v6771_v14 }
 0x5ac   : > { %v8843_v1 = vadd.f32 %v8594_v3, %v3978_v44  ;;  %v3936_v50 = vpop.f32.mrb[67].mxu1  ;;  %4849 = vmatprep.subr.bf16.mxu0 %v9466_v11  ;;  %v6773_v44 = vld [vmem:[%s9293_s5 + $0x158] sm:$0xff]  }
 0x5ad   : > { %v8849_v25 = vadd.f32 %v8598_v0, %v3979_v55 }
 0x5ae   : > { %v9391_v56 = vmax.f32 %v8843_v1, 0.0 }
 0x5af   : > { %v9392_v8 = vmax.f32 %v8849_v25, 0.0  ;;  %4850 = vmatpush1.bf16.msra.mxu0 %v6773_v44 }
 0x5b0   : > { %4851 = vmatprep.subr.bf16.mxu0 %v9466_v11 }
 0x5b1   : > { %v3939_v7 = vpop.f32.mrb[68].mxu1  ;;  %v6455_v63 = vpack.i.bf16 %v9392_v8, %v9391_v56 }
 0x5b2   : > { %v3980_v50 = vadd.f32 %v3939_v7, %v8585_v6  ;;  %v3941_v47 = vpop.f32.mrb[69].mxu1 }
 0x5b3   : > { %v3981_v55 = vadd.f32 %v3941_v47, %v8587_v57  ;;  %6456 = vrot.lane.b32.xlu0 %v6455_v63, %s6871_s14  ;;  %v3943_v9 = vpop.f32.mrb[70].mxu1  ;;  %4852 = vmatpush1.bf16.msra.mxu0 %v6775_v49 }
 0x5b4   : > { %v8866_v58 = vadd.f32 %v8594_v3, %v3980_v50  ;;  %v3944_v14 = vpop.f32.mrb[71].mxu1 }
 0x5b5   : > { %v8872_v56 = vadd.f32 %v8598_v0, %v3981_v55 }
 0x5b6   : > { %v9395_v6 = vmax.f32 %v8866_v58, 0.0 }
 0x5b7   : > { %v9396_v57 = vmax.f32 %v8872_v56, 0.0 }
 0x5b9   : > { %v6460_v44 = vpack.i.bf16 %v9396_v57, %v9395_v6 }
 0x5bb   : > { %6461 = vrot.lane.b32.xlu1 %v6460_v44, %s6871_s14  ;;  %s6809_s14 = sshll.u32 %s6874_s13, 4  ;;  %s6810_s14 = int_to_ptr.vmem [resolvable:$false] %s6809_s14 }
 0x5bc   : > { %s6811_s15 = scalar_lea.vmem %s6810_s14, 256  ;;  %p6812_p0 = scmp.lt.s32.totalorder %s9248_s12, %s6810_s14 }
 0x5bd   : > { %p6813_p1 = scmp.lt.s32.totalorder %s6811_s15, %s6805_s16 }
 0x5bf   : > { %p6814_p2 = por %p6813_p1, %p6812_p0 }
 0x5c1   : > { %p6815_p3 = pnand %p6814_p2, %p6808_p13 }
 0x5f3   : > { %v6377_v3 = vpop.permute.xlu0 %6376 }
 0x5f4   : > { %v6379_v63 = vunpack.i.h.bf16 %v6377_v3  ;;  %v6378_v50 = vunpack.i.l.bf16 %v6377_v3 }
 0x5f5   : > { %v6382_v7 = vpop.permute.xlu1 %6381 }
 0x5f6   : > { %v6384_v47 = vunpack.i.h.bf16 %v6382_v7  ;;  %v6383_v0 = vunpack.i.l.bf16 %v6382_v7  ;;  %v4179_v49 = vsel %vm4174_vm4, %v6378_v50, %v6379_v63 }
 0x5f7   : > { %v4237_v27 = vmax.f32 %v4038_v16, %v4179_v49 }
 0x5f8   : > { %v4180_v29 = vsel %vm4174_vm4, %v6383_v0, %v6384_v47  ;;  %v4240_v7 = vmax.f32 %v4041_v37, %v6384_v47 }
 0x5f9   : > { %v4239_v39 = vmax.f32 %v4040_v24, %v4180_v29 }
 0x5fb   : > { %v6387_v55 = vpop.permute.xlu0 %6386 }
 0x5fc   : > { %v6389_v9 = vunpack.i.h.bf16 %v6387_v55  ;;  %v6388_v14 = vunpack.i.l.bf16 %v6387_v55  ;;  %v4238_v55 = vmax.f32 %v4039_v35, %v6379_v63  ;;  %v9483_v63 = vmax.f32 %v8633_v60, 0.0  ;;  %v6758_v60 = vld [vmem:[%s9293_s5 + $0x10] sm:$0xff]  }
 0x5fd   : > { %v6392_v8 = vpop.permute.xlu1 %6391 }
 0x5fe   : > { %v4181_v20 = vsel %vm4174_vm4, %v6388_v14, %v6389_v9  ;;  %v6394_v6 = vunpack.i.h.bf16 %v6392_v8  ;;  %v6393_v57 = vunpack.i.l.bf16 %v6392_v8  ;;  %v4242_v44 = vmax.f32 %v4043_v34, %v6389_v9 }
 0x5ff   : > { %v4241_v3 = vmax.f32 %v4042_v51, %v4181_v20  ;;  %v8888_v12 = vpop.permute.xlu0 %6396 }
 0x600   : > { %v4244_v50 = vmax.f32 %v4045_v15, %v6394_v6  ;;  %v4182_v0 = vsel %vm4174_vm4, %v6393_v57, %v6394_v6  ;;  %v4270_v37 = vmax.f32 %v4238_v55, %v4242_v44  ;;  %v6399_v16 = vunpack.i.h.bf16 %v8888_v12  ;;  %v6760_v44 = vld [vmem:[%s9293_s5 + $0x18] sm:$0xff]   ;;  %v6761_v55 = vld [vmem:[%s9293_s5 + $0x20] sm:$0xff]  }
 0x601   : > { %v4243_v51 = vmax.f32 %v4044_v31, %v4182_v0  ;;  %v8903_v34 = vpop.permute.xlu1 %6401  ;;  %v4269_v54 = vmax.f32 %v4237_v27, %v4241_v3  ;;  %v9482_v6 = vmax.f32 %v8680_v41, 0.0 }
 0x602   : > { %v4272_v45 = vmax.f32 %v4240_v7, %v4244_v50  ;;  %v6404_v43 = vunpack.i.h.bf16 %v8903_v34  ;;  %v4230_v47 = vmax.f32 %v9483_v63, %v6399_v16 }
 0x603   : > { %v4271_v20 = vmax.f32 %v4239_v39, %v4243_v51  ;;  %v8905_v15 = vpop.permute.xlu0 %6406 }
 0x604   : > { %v6409_v35 = vunpack.i.h.bf16 %v8905_v15  ;;  %v4286_v24 = vpack.c.bf16 %v4272_v45, %v4270_v37  ;;  %v4232_v8 = vmax.f32 %v4033_v13, %v6404_v43  ;;  %v6762_v37 = vld [vmem:[%s9293_s5 + $0x28] sm:$0xff]  }
 0x605   : > { %v4285_v61 = vpack.c.bf16 %v4271_v20, %v4269_v54  ;;  %v6412_v2 = vpop.permute.xlu1 %6411 }
 0x606   : > { %v6414_v31 = vunpack.i.h.bf16 %v6412_v2  ;;  %v4234_v29 = vmax.f32 %v4035_v30, %v6409_v35  ;;  %5669 = vmatprep.mubr.msk.bf16.mxu1 %vm4384_vm5, %v4286_v24  ;;  %v6413_v54 = vunpack.i.l.bf16 %v6412_v2  ;;  %v6408_v24 = vunpack.i.l.bf16 %v8905_v15  ;;  %v6766_v15 = vld [vmem:[%s9293_s5 + $0x38] sm:$0xff]  }
 0x607   : > { %4421 = vmatmul.mubr.bf16.vlgmr.msra.gmra.mrb[72].mxu1 %v4285_v61  ;;  %v8928_v9 = vpop.permute.xlu0 %6416  ;;  %v6403_v61 = vunpack.i.l.bf16 %v8903_v34  ;;  %v9487_v34 = vmax.f32 %v8814_v28, 0.0  ;;  %v9489_v28 = vmax.f32 %v8755_v22, 0.0  ;;  %v6768_v22 = vld [vmem:[%s9293_s5 + $0x40] sm:$0xff]  }
 0x608   : > { %v4236_v57 = vmax.f32 %v9482_v6, %v6414_v31  ;;  %4486 = vmatpush1.bf16.msra.mxu1 %v6756_v38  ;;  %v4266_v10 = vmax.f32 %v4230_v47, %v4234_v29  ;;  %v6764_v6 = vld [vmem:[%s9293_s5 + $0x30] sm:$0xff]  }
 0x609   : > { %4487 = vmatprep.subr.bf16.mxu1 %v9466_v11  ;;  %v8934_v13 = vpop.permute.xlu1 %6421 }
 0x60a   : > { %v4268_v30 = vmax.f32 %v4232_v8, %v4236_v57  ;;  %v6398_v57 = vunpack.i.l.bf16 %v8888_v12  ;;  %v9492_v12 = vmax.f32 %v8713_v32, 0.0  ;;  %v9495_v32 = vmax.f32 %v8700_v19, 0.0 }
 0x60b   : > { %v8940_v14 = vpop.permute.xlu0 %6426 }
 0x60c   : > { %4488 = vmatpush1.bf16.msra.mxu1 %v6757_v46  ;;  %v4284_v41 = vpack.c.bf16 %v4268_v30, %v4266_v10  ;;  %v4178_v46 = vsel %vm4174_vm4, %v6413_v54, %v6414_v31  ;;  %v9484_v10 = vmax.f32 %v8772_v52, 0.0  ;;  %v6429_v52 = vunpack.i.h.bf16 %v8940_v14 }
 0x60d   : > { %4489 = vmatprep.subr.bf16.mxu1 %v9466_v11  ;;  %v8943_v49 = vpop.permute.xlu1 %6431 }
 0x60e   : > { %5679 = vmatprep.mubr.msk.bf16.mxu1 %vm4384_vm5, %v4284_v41  ;;  %v6434_v30 = vunpack.i.h.bf16 %v8943_v49 }
 0x610   : > { %4490 = vmatpush1.bf16.msra.mxu1 %v6758_v60  ;;  %v9485_v60 = vmax.f32 %v8805_v5, 0.0 }
 0x611   : > { %4491 = vmatprep.subr.bf16.mxu1 %v9466_v11 }
 0x613   : > { %v8949_v3 = vpop.permute.xlu0 %6436 }
 0x614   : > { %v6439_v7 = vunpack.i.h.bf16 %v8949_v3  ;;  %v6438_v50 = vunpack.i.l.bf16 %v8949_v3  ;;  %4492 = vmatpush1.bf16.msra.mxu1 %v6760_v44  ;;  %v6784_v3 = vld [vmem:[%s9293_s5 + $0xe8] sm:$0xff]  }
 0x615   : > { %v8953_v0 = vpop.permute.xlu1 %6441  ;;  %4493 = vmatprep.subr.bf16.mxu1 %v9466_v11 }
 0x616   : > { %v4187_v27 = vsel %vm4174_vm4, %v6438_v50, %v6439_v7  ;;  %v6444_v39 = vunpack.i.h.bf16 %v8953_v0  ;;  %v6443_v51 = vunpack.i.l.bf16 %v8953_v0  ;;  %v4176_v50 = vsel %vm4174_vm4, %v6403_v61, %v6404_v43 }
 0x617   : > { %v4253_v41 = vmax.f32 %v9484_v10, %v4187_v27  ;;  %v9486_v27 = vmax.f32 %v8780_v17, 0.0  ;;  %v9488_v43 = vmax.f32 %v8677_v42, 0.0  ;;  %v4175_v61 = vsel %vm4174_vm4, %v6398_v57, %v6399_v16 }
 0x618   : > { %v4188_v45 = vsel %vm4174_vm4, %v6443_v51, %v6444_v39  ;;  %4494 = vmatpush1.bf16.msra.mxu1 %v6761_v55  ;;  %v4177_v55 = vsel %vm4174_vm4, %v6408_v24, %v6409_v35  ;;  %v6424_v51 = vunpack.i.h.bf16 %v8934_v13  ;;  %v6419_v17 = vunpack.i.h.bf16 %v8928_v9 }
 0x619   : > { %4495 = vmatprep.subr.bf16.mxu1 %v9466_v11  ;;  %v4255_v5 = vmax.f32 %v9486_v27, %v4188_v45  ;;  %v4235_v35 = vmax.f32 %v9488_v43, %v4178_v46  ;;  %v4252_v45 = vmax.f32 %v9489_v28, %v6434_v30  ;;  %v9491_v42 = vmax.f32 %v8664_v33, 0.0 }
 0x61a   : > { %v9493_v16 = vmax.f32 %v8739_v40, 0.0  ;;  %v9494_v33 = vmax.f32 %v8630_v59, 0.0  ;;  %v9496_v43 = vmax.f32 %v8849_v25, 0.0 }
 0x61b   : > { %v8971_v20 = vpop.permute.xlu0 %6446 }
 0x61c   : > { %v6449_v38 = vunpack.i.h.bf16 %v8971_v20  ;;  %v6448_v29 = vunpack.i.l.bf16 %v8971_v20  ;;  %4496 = vmatpush1.bf16.msra.mxu1 %v6762_v37  ;;  %v4250_v57 = vmax.f32 %v9493_v16, %v6429_v52  ;;  %v4229_v46 = vmax.f32 %v9494_v33, %v4175_v61  ;;  %v6778_v16 = vld [vmem:[%s9293_s5 + $0xb8] sm:$0xff]  }
 0x61d   : > { %v8977_v8 = vpop.permute.xlu1 %6451  ;;  %4497 = vmatprep.subr.bf16.mxu1 %v9466_v11  ;;  %v9497_v61 = vmax.f32 %v8872_v56, 0.0  ;;  %v6428_v33 = vunpack.i.l.bf16 %v8940_v14  ;;  %v9501_v14 = vmax.f32 %v8821_v48, 0.0  ;;  %v6781_v48 = vld [vmem:[%s9293_s5 + $0xd0] sm:$0xff]  }
 0x61e   : > { %v4189_v2 = vsel %vm4174_vm4, %v6448_v29, %v6449_v38  ;;  %v6454_v63 = vunpack.i.h.bf16 %v8977_v8  ;;  %v6453_v47 = vunpack.i.l.bf16 %v8977_v8  ;;  %v9490_v29 = vmax.f32 %v8646_v21, 0.0 }
 0x61f   : > { %v4257_v44 = vmax.f32 %v9485_v60, %v4189_v2  ;;  %v4233_v2 = vmax.f32 %v9491_v42, %v4177_v55  ;;  %v6770_v55 = vld [vmem:[%s9293_s5 + $0x90] sm:$0xff]  }
 0x620   : > { %v4190_v31 = vsel %vm4174_vm4, %v6453_v47, %v6454_v63  ;;  %4498 = vmatpush1.bf16.msra.mxu1 %v6764_v6  ;;  %v4231_v6 = vmax.f32 %v9490_v29, %v4176_v50  ;;  %v4248_v47 = vmax.f32 %v9492_v12, %v6424_v51 }
 0x621   : > { %v4277_v37 = vmax.f32 %v4253_v41, %v4257_v44  ;;  %v4259_v54 = vmax.f32 %v9487_v34, %v4190_v31  ;;  %4499 = vmatprep.subr.bf16.mxu1 %v9466_v11  ;;  %v4246_v41 = vmax.f32 %v9495_v32, %v6419_v17  ;;  %v4265_v44 = vmax.f32 %v4229_v46, %v4233_v2  ;;  %v6774_v2 = vld [vmem:[%s9293_s5 + $0xa0] sm:$0xff]  }
 0x622   : > { %v4267_v10 = vmax.f32 %v4231_v6, %v4235_v35  ;;  %v4276_v40 = vmax.f32 %v4248_v47, %v4252_v45  ;;  %v9499_v6 = vmax.f32 %v8866_v58, 0.0  ;;  %v6777_v58 = vld [vmem:[%s9293_s5 + $0xb0] sm:$0xff]   ;;  %v6779_v46 = vld [vmem:[%s9293_s5 + $0xc0] sm:$0xff]  }
 0x623   : > { %v4279_v24 = vmax.f32 %v4255_v5, %v4259_v54  ;;  %v4274_v50 = vmax.f32 %v4246_v41, %v4250_v57  ;;  %v6433_v57 = vunpack.i.l.bf16 %v8943_v49  ;;  %v4260_v49 = vmax.f32 %v9501_v14, %v6454_v63 }
 0x624   : > { %4500 = vmatpush1.bf16.msra.mxu1 %v6766_v15  ;;  %v4283_v27 = vpack.c.bf16 %v4267_v10, %v4265_v44  ;;  %v6418_v10 = vunpack.i.l.bf16 %v8928_v9  ;;  %v9500_v44 = vmax.f32 %v8747_v4, 0.0  ;;  %v9504_v4 = vmax.f32 %v8787_v26, 0.0 }
 0x625   : > { %v9039_v21 = vpack.c.bf16 %v4279_v24, %v4277_v37  ;;  %4501 = vmatprep.subr.bf16.mxu1 %v9466_v11  ;;  %v6457_v60 = vpop.permute.xlu0 %6456  ;;  %v4288_v5 = vpack.c.bf16 %v4276_v40, %v4274_v50  ;;  %v6772_v37 = vld [vmem:[%s9293_s5 + $0x98] sm:$0xff]   ;;  %v9498_v24 = vmax.f32 %v8843_v1, 0.0  ;;  %v6776_v1 = vld [vmem:[%s9293_s5 + $0xa8] sm:$0xff]   ;;  %v4186_v32 = vsel %vm4174_vm4, %v6433_v57, %v6434_v30 }
 0x626   : > { %v6459_v31 = vunpack.i.h.bf16 %v6457_v60  ;;  %v6458_v59 = vunpack.i.l.bf16 %v6457_v60  ;;  %v4185_v40 = vsel %vm4174_vm4, %v6428_v33, %v6429_v52  ;;  %v6780_v60 = vld [vmem:[%s9293_s5 + $0xc8] sm:$0xff]   ;;  %v4251_v50 = vmax.f32 %v9500_v44, %v4186_v32 }
 0x627   : > { %v9502_v30 = vmax.f32 %v8710_v23, 0.0  ;;  %v9503_v52 = vmax.f32 %v8732_v36, 0.0  ;;  %v9505_v9 = vmax.f32 %v8808_v18, 0.0  ;;  %v9506_v23 = vmax.f32 %v8697_v53, 0.0 }
 0x628   : > { %4502 = vmatpush1.bf16.msra.mxu1 %v6768_v22  ;;  %v4191_v34 = vsel %vm4174_vm4, %v6458_v59, %v6459_v31  ;;  %v4262_v35 = vmax.f32 %v9496_v43, %v6459_v31  ;;  %v6423_v22 = vunpack.i.l.bf16 %v8934_v13  ;;  %v4183_v13 = vsel %vm4174_vm4, %v6418_v10, %v6419_v17  ;;  %v6786_v59 = vld [vmem:[%s9293_s5 + $0xf8] sm:$0xff]   ;;  %v6795_v43 = vld [vmem:[%s9295_s7 + $0x20] sm:$0xff]  }
 0x629   : > { %4601 = vmatprep.subr.bf16.mxu1 %v9466_v11  ;;  %v4261_v29 = vmax.f32 %v9498_v24, %v4191_v34  ;;  %v4256_v31 = vmax.f32 %v9504_v4, %v6444_v39  ;;  %v4258_v17 = vmax.f32 %v9505_v9, %v6449_v38  ;;  %v4245_v8 = vmax.f32 %v9506_v23, %v4183_v13  ;;  %v6782_v38 = vld [vmem:[%s9293_s5 + $0xd8] sm:$0xff]   ;;  %v6791_v34 = vld [vmem:[%s9295_s7] sm:$0xff]  }
 0x62a   : > { %v4184_v41 = vsel %vm4174_vm4, %v6423_v22, %v6424_v51  ;;  %v9507_v26 = vmax.f32 %v8775_v62, 0.0  ;;  %v6783_v62 = vld [vmem:[%s9293_s5 + $0xe0] sm:$0xff]  }
 0x62b   : > { %4518 = vmatmul.mubr.bf16.vlgmr.msra.gmra.mrb[76].mxu1 %v4283_v27  ;;  %v4247_v51 = vmax.f32 %v9502_v30, %v4184_v41  ;;  %v4280_v39 = vmax.f32 %v4256_v31, %v4260_v49  ;;  %v6787_v27 = vld [vmem:[%s9293_s5 + $0x100] sm:$0xff]  }
 0x62c   : > { %4602 = vmatpush1.bf16.msra.mxu1 %v6770_v55  ;;  %5707 = vmatprep.mubr.msk.bf16.mxu1 %vm4384_vm5, %v4288_v5  ;;  %v4249_v55 = vmax.f32 %v9503_v52, %v4185_v40  ;;  %v4254_v0 = vmax.f32 %v9507_v26, %v6439_v7  ;;  %v6785_v7 = vld [vmem:[%s9293_s5 + $0xf0] sm:$0xff]   ;;  %v6788_v5 = vld [vmem:[%s9293_s5 + $0x108] sm:$0xff]   ;;  %v6799_v24 = vld [vmem:[%s9297_s9] sm:$0xff]  }
 0x62d   : > { %v6462_v19 = vpop.permute.xlu1 %6461  ;;  %4603 = vmatprep.subr.bf16.mxu1 %v9466_v11  ;;  %v4275_v36 = vmax.f32 %v4247_v51, %v4251_v50  ;;  %v5764_v49 = vld [vmem:[%s9294_s6] ss:$0 sm:$0xff] }
 0x62e   : > { %v6464_v54 = vunpack.i.h.bf16 %v6462_v19  ;;  %v6463_v15 = vunpack.i.l.bf16 %v6462_v19  ;;  %v4273_v20 = vmax.f32 %v4245_v8, %v4249_v55  ;;  %v4278_v18 = vmax.f32 %v4254_v0, %v4258_v17  ;;  %v6789_v19 = vld [vmem:[%s9293_s5 + $0x110] sm:$0xff]   ;;  %v6803_v9 = vld [vmem:[%s9297_s9 + $0x20] sm:$0xff]   ;;  %v6804_v17 = vld [vmem:[%s9297_s9 + $0x28] ss:$0 sps:$4 sm:$0x33]  }
 0x62f   : > { %v5765_v23 = vld [vmem:[%s9296_s8] ss:$0 sm:$0xff] }
 0x630   : > { %v4264_v28 = vmax.f32 %v9497_v61, %v6464_v54  ;;  %v4192_v45 = vsel %vm4174_vm4, %v6463_v15, %v6464_v54  ;;  %4604 = vmatpush1.bf16.msra.mxu1 %v6772_v37  ;;  %v4287_v63 = vpack.c.bf16 %v4275_v36, %v4273_v20  ;;  %v4290_v53 = vpack.c.bf16 %v4280_v39, %v4278_v18  ;;  %v6790_v37 = vld [vmem:[%s9293_s5 + $0x118] sm:$0xff]   ;;  %v6792_v15 = vld [vmem:[%s9295_s7 + $0x8] sm:$0xff]   ;;  %v6797_v61 = vld [vmem:[%s9295_s7 + $0x30] sm:$0xff]  }
 0x631   : > { %v4263_v42 = vmax.f32 %v9499_v6, %v4192_v45  ;;  %4605 = vmatprep.subr.bf16.mxu1 %v9466_v11  ;;  %v6872_v54 = vmov 0.0   ;;  %v6801_v6 = vld [vmem:[%s9297_s9 + $0x10] sm:$0xff]  }
 0x632   : > { %v4282_v12 = vmax.f32 %v4262_v35, %v4264_v28  ;;  %5823 = vmatprep.subr.bf16.mxu0 %v6872_v54  ;;  %v6796_v35 = vld [vmem:[%s9295_s7 + $0x28] sm:$0xff]   ;;  %v6798_v28 = vld [vmem:[%s9295_s7 + $0x38] ss:$0 sps:$4 sm:$0xff]  }
 0x633   : > { %v4281_v25 = vmax.f32 %v4261_v29, %v4263_v42  ;;  %v4959_v45 = vsel %vm4957_vm6, %v6798_v28, 0  ;;  %v6800_v29 = vld [vmem:[%s9297_s9 + $0x8] sm:$0xff]  }
 0x634   : > { %v4292_v47 = vpack.c.bf16 %v4282_v12, %v4282_v12  ;;  %4606 = vmatpush1.bf16.msra.mxu1 %v6774_v2  ;;  %v6802_v12 = vld [vmem:[%s9297_s9 + $0x18] sm:$0xff]  }
 0x635   : > { %v4291_v56 = vpack.c.bf16 %v4281_v25, %v4281_v25  ;;  %4607 = vmatprep.subr.bf16.mxu1 %v9466_v11 }
 0x636   : > { %5763 = vmatprep.mubr.msk.bf16.mxu0 %vm4384_vm5, %v4292_v47 }
 0x637   : > { %4868 = vmatmul.mubr.bf16.vlgmr.msra.gmra.mrb[56].mxu0 %v4291_v56 }
 0x638   : > { %4608 = vmatpush1.bf16.msra.mxu1 %v6776_v1  ;;  %5835 = vmatprep.mubr.msk.bf16.mxu0 %vm6873_vm7, %v6872_v54 }
 0x639   : > { %4609 = vmatprep.subr.bf16.mxu1 %v9466_v11  ;;  %5824 = vmatpush3.bf16.msra.mxu0 %v6799_v24 }
 0x63a   : > { %5825 = vmatprep.subr.bf16.mxu0 %v6872_v54 }
 0x63c   : > { %4610 = vmatpush1.bf16.msra.mxu1 %v6777_v58 }
 0x63d   : > { %4611 = vmatprep.subr.bf16.mxu1 %v9466_v11  ;;  %5826 = vmatpush3.bf16.msra.mxu0 %v6800_v29 }
 0x63e   : > { %5827 = vmatprep.subr.bf16.mxu0 %v6872_v54 }
 0x640   : > { %4612 = vmatpush1.bf16.msra.mxu1 %v6778_v16 }
 0x641   : > { %4613 = vmatprep.subr.bf16.mxu1 %v9466_v11  ;;  %5828 = vmatpush3.bf16.msra.mxu0 %v6801_v6 }
 0x642   : > { %5829 = vmatprep.subr.bf16.mxu0 %v6872_v54 }
 0x644   : > { %4614 = vmatpush1.bf16.msra.mxu1 %v6779_v46 }
 0x645   : > { %4615 = vmatprep.subr.bf16.mxu1 %v9466_v11  ;;  %5830 = vmatpush3.bf16.msra.mxu0 %v6802_v12 }
 0x646   : > { %5831 = vmatprep.subr.bf16.mxu0 %v6872_v54 }
 0x648   : > { %4616 = vmatpush1.bf16.msra.mxu1 %v6780_v60 }
 0x649   : > { %4617 = vmatprep.subr.bf16.mxu1 %v9466_v11  ;;  %5832 = vmatpush3.bf16.msra.mxu0 %v6803_v9 }
 0x64a   : > { %5833 = vmatprep.subr.bf16.mxu0 %v6872_v54 }
 0x64c   : > { %4618 = vmatpush1.bf16.msra.mxu1 %v6781_v48  ;;  %v5060_v48 = vsel %vm5058_vm9, %v6804_v17, 0 }
 0x64d   : > { %4718 = vmatprep.subr.bf16.mxu1 %v9466_v11  ;;  %5834 = vmatpush3.bf16.msra.mxu0 %v5060_v48 }
 0x64f   : > { %4634 = vmatmul.mubr.bf16.vlgmr.msra.gmra.mrb[80].mxu1 %v4287_v63 }
 0x650   : > { %4719 = vmatpush1.bf16.msra.mxu1 %v6782_v38  ;;  %5735 = vmatprep.mubr.msk.bf16.mxu1 %vm4384_vm5, %v4290_v53  ;;  %v5775_v38 = vld [vmem:[%s9298_s10] ss:$0 sm:$0xff] }
 0x651   : > { %4720 = vmatprep.subr.bf16.mxu1 %v9466_v11 }
 0x654   : > { %4721 = vmatpush1.bf16.msra.mxu1 %v6783_v62 }
 0x655   : > { %4722 = vmatprep.subr.bf16.mxu1 %v9466_v11 }
 0x658   : > { %4723 = vmatpush1.bf16.msra.mxu1 %v6784_v3 }
 0x659   : > { %4724 = vmatprep.subr.bf16.mxu1 %v9466_v11 }
 0x65c   : > { %4725 = vmatpush1.bf16.msra.mxu1 %v6785_v7 }
 0x65d   : > { %4726 = vmatprep.subr.bf16.mxu1 %v9466_v11 }
 0x660   : > { %4727 = vmatpush1.bf16.msra.mxu1 %v6786_v59 }
 0x661   : > { %4728 = vmatprep.subr.bf16.mxu1 %v9466_v11 }
 0x664   : > { %4729 = vmatpush1.bf16.msra.mxu1 %v6787_v27 }
 0x665   : > { %4730 = vmatprep.subr.bf16.mxu1 %v9466_v11 }
 0x668   : > { %4731 = vmatpush1.bf16.msra.mxu1 %v6788_v5 }
 0x669   : > { %4732 = vmatprep.subr.bf16.mxu1 %v9466_v11 }
 0x66c   : > { %4733 = vmatpush1.bf16.msra.mxu1 %v6789_v19 }
 0x66d   : > { %4734 = vmatprep.subr.bf16.mxu1 %v9466_v11  ;;  %v6793_v11 = vld [vmem:[%s9295_s7 + $0x10] sm:$0xff]  }
 0x670   : > { %4735 = vmatpush1.bf16.msra.mxu1 %v6790_v37 }
 0x671   : > { %5803 = vmatprep.subr.bf16.mxu1 %v6872_v54 }
 0x673   : > { %4751 = vmatmul.mubr.bf16.vlgmr.msra.gmra.mrb[84].mxu1 %v9039_v21  ;;  %v6794_v21 = vld [vmem:[%s9295_s7 + $0x18] sm:$0xff]  }
 0x674   : > { %5804 = vmatpush3.bf16.msra.mxu1 %v6791_v34  ;;  %5819 = vmatprep.mubr.msk.bf16.mxu1 %vm6873_vm7, %v6872_v54 }
 0x675   : > { %5805 = vmatprep.subr.bf16.mxu1 %v6872_v54 }
 0x678   : > { %5806 = vmatpush3.bf16.msra.mxu1 %v6792_v15 }
 0x679   : > { %5807 = vmatprep.subr.bf16.mxu1 %v6872_v54 }
 0x67c   : > { %5808 = vmatpush3.bf16.msra.mxu1 %v6793_v11 }
 0x67d   : > { %5809 = vmatprep.subr.bf16.mxu1 %v6872_v54 }
 0x680   : > { %5810 = vmatpush3.bf16.msra.mxu1 %v6794_v21 }
 0x681   : > { %5811 = vmatprep.subr.bf16.mxu1 %v6872_v54 }
 0x684   : > { %5812 = vmatpush3.bf16.msra.mxu1 %v6795_v43 }
 0x685   : > { %5813 = vmatprep.subr.bf16.mxu1 %v6872_v54 }
 0x688   : > { %5814 = vmatpush3.bf16.msra.mxu1 %v6796_v35 }
 0x689   : > { %5815 = vmatprep.subr.bf16.mxu1 %v6872_v54 }
 0x68c   : > { %5816 = vmatpush3.bf16.msra.mxu1 %v6797_v61 }
 0x68d   : > { %5817 = vmatprep.subr.bf16.mxu1 %v6872_v54 }
 0x690   : > { %5818 = vmatpush3.bf16.msra.mxu1 %v4959_v45 }
 0x6da   : > { %v4422_v42 = vpop.f32.mrb[72].mxu1 }
 0x6db   : > { %v4424_v2 = vpop.f32.mrb[73].mxu1 }
 0x6dc   : > { %v4425_v25 = vpop.f32.mrb[74].mxu1 }
 0x6dd   : > { %v4426_v47 = vpop.f32.mrb[75].mxu1 }
 0x6fe   : > { %v4519_v56 = vpop.f32.mrb[76].mxu1 }
 0x6ff   : > { %v4520_v1 = vadd.f32 %v4519_v56, %v4422_v42  ;;  %v4521_v58 = vpop.f32.mrb[77].mxu1 }
 0x700   : > { %v4522_v16 = vpop.f32.mrb[78].mxu1 }
 0x701   : > { %v4523_v57 = vpop.f32.mrb[79].mxu1 }
 0x70a   : > { %v4869_v22 = vpop.f32.mrb[56].mxu0 }
 0x70b   : > { %v4871_v33 = vpop.f32.mrb[57].mxu0 }
 0x70c   : > { %v4872_v46 = vpop.f32.mrb[58].mxu0 }
 0x70d   : > { %v4873_v10 = vpop.f32.mrb[59].mxu0 }
 0x722   : > { %v4635_v32 = vpop.f32.mrb[80].mxu1 }
 0x723   : > { %v4641_v41 = vadd.f32 %v4635_v32, %v4520_v1  ;;  %v4637_v40 = vpop.f32.mrb[81].mxu1 }
 0x724   : > { %v4638_v60 = vpop.f32.mrb[82].mxu1 }
 0x725   : > { %v4639_v44 = vpop.f32.mrb[83].mxu1 }
 0x746   : > { %v4752_v50 = vpop.f32.mrb[84].mxu1 }
 0x747   : > { %v4758_v13 = vadd.f32 %v4752_v50, %v4641_v41  ;;  %v4754_v14 = vpop.f32.mrb[85].mxu1 }
 0x748   : > { %v4755_v30 = vpop.f32.mrb[86].mxu1 }
 0x749   : > { %v4875_v51 = vadd.f32 %v4869_v22, %v4758_v13  ;;  %v4756_v52 = vpop.f32.mrb[87].mxu1 }
 0x74b   : > { %v4883_v55 = vadd.f32 %v5764_v49, %v4875_v51 }
 0x74d   : > { %v4884_v4 = vmax.f32 %v4883_v55, 0.0 }
 0x74f   : > { %v4885_v31 = vpack.c.bf16 %v4884_v4, %v4884_v4 }
 0x751   : > { %5820 = vmatmul.mubr.msk.bf16.vlgmr.msra.gmra.mrb[88].mxu1 %vm4953_vm8, %v4885_v31 }
 0x824   : > { %v4995_v8 = vpop.f32.mrb[88].mxu1 }
 0x825   : > { %v4996_v36 = vadd.f32 %v5765_v23, %v4995_v8  ;;  %v5821_v26 = vpop.f32.mrb[89].mxu1 }
 0x826   : > { %v4998_v0 = vpop.f32.mrb[90].mxu1 }
 0x827   : > { %v5001_v39 = vmax.f32 %v4996_v36, 0.0  ;;  %v5822_v20 = vpop.f32.mrb[91].mxu1 }
 0x829   : > { %v5002_v18 = vpack.c.bf16 %v5001_v39, %v5001_v39 }
 0x82b   : > { %5836 = vmatmul.mubr.msk.bf16.vlgmr.msra.gmra.mrb[60].mxu0 %vm5054_vm10, %v5002_v18 }
 0x8fe   : > { %v5096_v63 = vpop.f32.mrb[60].mxu0 }
 0x8ff   : > { %v5097_v53 = vadd.f32 %v5775_v38, %v5096_v63  ;;  %v5837_v62 = vpop.f32.mrb[61].mxu0 }
 0x900   : > { %v5099_v3 = vpop.f32.mrb[62].mxu0 }
 0x901   : > { %v5838_v7 = vpop.f32.mrb[63].mxu0  ;;  %5103 = vst.msk [vmem:[%s380_s24] sm:$0xff] %vm5102_vm11, %v5097_v53 }
 0x902   : > { %6818 = shalt.err (!%p6815_p3)
}
 0x903   : > { %s6819_s30 = scalar_lea.hbm %s9246_s29, 128  ;;  %s6823_s25 = scalar_lea.hbm %s9299_s11, 256 }
 0x904   : > { %p6820_p4 = scmp.ne.s32.totalorder %s9246_s29, %s6819_s30  ;;  %p6824_p9 = scmp.lt.u32.totalorder %s9246_s29, %s9299_s11 }
 0x905   : > { %p6825_p10 = scmp.lt.u32.totalorder %s6823_s25, %s6819_s30  ;;  %p6827_p12 = scmp.lt.u32.totalorder %s6819_s30, %s9246_s29 }
 0x906   : > { %p6821_p7 = pnand %p6820_p4, %p6973_p5 }
 0x907   : > { %p6826_p11 = por %p6825_p10, %p6824_p9 }
 0x908   : > { %p6822_p8 = pneg %p6821_p7 }
 0x909   : > { %p6828_p13 = por %p6827_p12, %p6826_p11 }
 0x90b   : > { %p6829_p0 = pnand %p6828_p13, %p6822_p8 }
 0x90d   : > { %6832 = shalt.err (!%p6829_p0)
}
 0x90e   : > { %6191 = dma.vmem_to_hbm [thread:$0]  (%p6973_p5), %s9248_s12, 128, %s9246_s29, %s5105_s21  }
 0x90f PF: > { %p6197_p1 = scmp.ge.s32.totalorder %s6867_s20, 2  ;;  %s5130_s16 = sand.u32 1, %s6855_s17  }
 0x910   : > { %s5131_s14 = scalar_lea.sflag [#allocation3], %s5130_s16 }
 0x911   : > { %p6194_p2 = pnand %p6197_p1, %p6977_p6 }
 0x913   : > { %6850 = dma.done.wait (!%p6194_p2), %s5131_s14, 128  }
 0x914   : > { %6852 = vsyncadd (!%p6194_p2), %s5131_s14, 4294967168  ;;  %s9508_s15 = sld [smem:[#allocation5_spill]]  ;;  %p21_p3 = scmp.ge.s32.totalorder %s6960_s23, 4  }
 0x915   : > { %s9509_s17 = smov %s6859_s18  ;;  %s9510_s18 = smov %s6863_s19 }
 0x916   : > { %s9512_s20 = smov %s6960_s23  ;;  %23 = sbr.rel (!%p21_p3) target bundleno = 3 (0x3), region = 111 }
 0x91a   : > { %s9511_s19 = smov %s9508_s15 }
 0x91d   :  { %5136 = vsyncpa [#allocation3], 1 }
 0x91e   :  { %5138 = vsyncpa [#allocation3 + $0x1], 1 }

</bundles_post_ra>
